<compile_context>
chip_gen: v5e
topology: v5e:2x2
jax: 0.10.0
libtpu: 0.0.40
codegen_flags: <defaults>
</compile_context>

<pallas_src>
import jax
import jax.numpy as jnp
from jax.experimental import pallas as pl
from jax.experimental.pallas import tpu as pltpu

HEAD_PAD = 128     # lane-aligned padded width of the logits matmul output
FEAT_PAD = 128     # lane-aligned padded width of the tabular feature vector
LANE = 128         # packing granularity of the coalesced bias/LN-parameter vector
BATCH_TILE = 8     # batch rows per grid step (f32 sublane-aligned)


# ----------------------------------------------------------------------------- helpers

def _layernorm(x, g, b, eps=1e-5):
    mu = jnp.mean(x, axis=-1, keepdims=True)
    var = jnp.mean((x - mu) ** 2, axis=-1, keepdims=True)
    return (x - mu) * jax.lax.rsqrt(var + eps) * g + b


def _pack_biases(named):
    """Coalesce many small 1-D f32 params into one (1, K) vector with 128-aligned
    static offsets (fewer DMA descriptors / VMEM buffers at kernel launch)."""
    offsets, segments, cur = {}, [], 0
    for name, vec in named:
        v = jnp.asarray(vec, jnp.float32).reshape(-1)
        n = int(v.shape[0])
        seg = ((n + LANE - 1) // LANE) * LANE
        offsets[name] = cur
        segments.append(jnp.pad(v, (0, seg - n)))
        cur += seg
    return jnp.concatenate(segments).reshape(1, cur), offsets


def _to_patches(img, kernel):
    """(B, 1, D, H, W) NCDHW -> (B, n_patches, patch_size); a single image-sized XLA
    copy (far cheaper than streaming a dim2x-inflated folded conv+proj weight)."""
    B = img.shape[0]
    D, H, W = img.shape[-3:]
    kD, kH, kW = kernel
    oD, oH, oW = D // kD, H // kH, W // kW
    x = img.reshape(B, oD, kD, oH, kH, oW, kW)
    x = x.transpose(0, 1, 3, 5, 2, 4, 6)            # (B, oD, oH, oW, kD, kH, kW)
    return x.reshape(B, oD * oH * oW, kD * kH * kW)


# ----------------------------------------------------------------------------- kernel

def _make_kernel(off, dnn_h, dim, dim2, hidden):
    """Build the fused kernel; `off` holds the static offsets into the packed bias
    vector, the remaining ints are the (static) feature widths."""

    def kernel(tab_ref, mri_ref, pet_ref,
               cw_mri_ref, cw_pet_ref, wproj_mri_ref, wproj_pet_ref,
               dnn_w1_ref, dnn_w2_ref,
               wv_mri_ref, wv_pet_ref, wo_ref,
               ffwv_ref, ffwg_ref, ffw2_ref, wh_ref,
               bias_ref, out_ref):
        f32, bf16 = jnp.float32, jnp.bfloat16

        def b(name, n):                              # (1, n) slice of the packed params
            o = off[name]
            return bias_ref[:, o:o + n]

        # ---- tabular branch: x = DNN(cat([x_categ + offsets, x_numer]))
        # TODO(synk): GCondNet (GNN-conditioned MLP) stand-in: plain 2-layer MLP -> dim.
        tab = tab_ref[...].astype(bf16)                                        # (TB, F_PAD)
        h1 = jnp.dot(tab, dnn_w1_ref[...], preferred_element_type=f32) + b("dnn_b1", dnn_h)
        h1 = jnp.maximum(h1, 0.0)
        x = jnp.dot(h1.astype(bf16), dnn_w2_ref[...],
                    preferred_element_type=f32) + b("dnn_b2", dim)             # (TB, dim)

        # ---- image branch: Conv3d(1->1, k=s) as VPU multiply + per-patch lane reduce,
        # then a tiny (n_patches, dim2) matmul (graph-head stand-in).  Conv bias is
        # folded into b_img_*.  eval-mode dropout on whole_condition is identity.
        mri_conv = jnp.sum(mri_ref[...].astype(f32) * cw_mri_ref[...], axis=-1)  # (TB, P)
        pet_conv = jnp.sum(pet_ref[...].astype(f32) * cw_pet_ref[...], axis=-1)  # (TB, P)
        mri_feat = (jnp.dot(mri_conv.astype(bf16), wproj_mri_ref[...],
                            preferred_element_type=f32) + b("b_img_mri", dim2))
        pet_feat = (jnp.dot(pet_conv.astype(bf16), wproj_pet_ref[...],
                            preferred_element_type=f32) + b("b_img_pet", dim2))

        # ---- CrossAttention with a single query and a single key/value token:
        # softmax over one key == 1 => output == out_proj(value_proj(context)); q/k dead.
        # cat([mri_feat, pet_feat]) is folded away by splitting wv row-wise.
        v = (jnp.dot(mri_feat.astype(bf16), wv_mri_ref[...], preferred_element_type=f32)
             + jnp.dot(pet_feat.astype(bf16), wv_pet_ref[...], preferred_element_type=f32)
             + b("bv", dim))
        x = jnp.dot(v.astype(bf16), wo_ref[...], preferred_element_type=f32) + b("bo", dim) + x

        # ---- FeedForward: LayerNorm -> GEGLU (split value/gate matmuls) -> Linear, +res
        h = _layernorm(x, b("ff_g", dim), b("ff_b", dim)).astype(bf16)
        val = jnp.dot(h, ffwv_ref[...], preferred_element_type=f32) + b("ff_b_val", hidden)
        gate = jnp.dot(h, ffwg_ref[...], preferred_element_type=f32) + b("ff_b_gate", hidden)
        g = val * jax.nn.gelu(gate, approximate=True)        # tanh GELU -> EUP slot
        x = jnp.dot(g.astype(bf16), ffw2_ref[...],
                    preferred_element_type=f32) + b("ff_b2", dim) + x

        # ---- to_logits: LayerNorm -> Linear (output lane-padded; wrapper slices)
        xln = _layernorm(x, b("head_g", dim), b("head_bln", dim)).astype(bf16)
        out_ref[...] = (jnp.dot(xln, wh_ref[...], preferred_element_type=f32)
                        + b("head_b", HEAD_PAD)).astype(out_ref.dtype)

    return kernel


# ----------------------------------------------------------------------------- weight prep

def prepare_params(params, vol_shape, conv_kernel=(16, 16, 8)):
    """One-time, mathematically-equivalent splitting / padding / packing of the module's
    weights for the fused inference kernel (matmul weights -> bf16, biases/LN -> f32)."""
    bf16, f32 = jnp.bfloat16, jnp.float32
    D, H, W = vol_shape
    kD, kH, kW = conv_kernel
    n_patches = (D // kD) * (H // kH) * (W // kW)
    patch_size = kD * kH * kW

    dim2 = params["mri_proj_w"].shape[-1]
    dim, dim_out = params["head_w"].shape
    hidden = params["ff_w2"].shape[0]
    dnn_h = params["dnn_w1"].shape[1]
    wv = params["wv"]
    ff_w1, ff_b1 = params["ff_w1"], params["ff_b1"]

    # exact fold of the conv bias into the per-patch projection bias
    b_img_mri = params["mri_conv_b"] * jnp.sum(params["mri_proj_w"], axis=0) + params["mri_proj_b"]
    b_img_pet = params["pet_conv_b"] * jnp.sum(params["pet_proj_w"], axis=0) + params["pet_proj_b"]

    # tabular features zero-padded to a lane-aligned width (exact: zero weight rows)
    dnn_w1 = params["dnn_w1"]
    f_in = dnn_w1.shape[0]
    assert f_in <= FEAT_PAD
    dnn_w1 = jnp.pad(dnn_w1, ((0, FEAT_PAD - f_in), (0, 0)))

    head_w = jnp.pad(params["head_w"], ((0, 0), (0, HEAD_PAD - dim_out)))
    head_b = jnp.pad(params["head_b"], ((0, HEAD_PAD - dim_out),))

    bias_packed, bias_off = _pack_biases([
        ("dnn_b1", params["dnn_b1"]), ("dnn_b2", params["dnn_b2"]),
        ("b_img_mri", b_img_mri), ("b_img_pet", b_img_pet),
        ("bv", params["bv"]), ("bo", params["bo"]),
        ("ff_g", params["ff_g"]), ("ff_b", params["ff_b"]),
        ("ff_b_val", ff_b1[:hidden]), ("ff_b_gate", ff_b1[hidden:]),
        ("ff_b2", params["ff_b2"]),
        ("head_g", params["head_g"]), ("head_bln", params["head_bln"]),
        ("head_b", head_b),
    ])

    return dict(
        dim=dim, dim2=dim2, hidden=hidden, dnn_h=dnn_h, dim_out=dim_out,
        conv_kernel=conv_kernel, n_patches=n_patches, patch_size=patch_size,
        categories_offset=params["categories_offset"],
        bias=bias_packed, bias_off=bias_off,
        # flat conv kernels (f32, tiny) applied on the VPU inside the kernel
        cw_mri=params["mri_conv_w"].reshape(1, 1, patch_size).astype(f32),
        cw_pet=params["pet_conv_w"].reshape(1, 1, patch_size).astype(f32),
        wproj_mri=params["mri_proj_w"].astype(bf16),
        wproj_pet=params["pet_proj_w"].astype(bf16),
        dnn_w1=dnn_w1.astype(bf16), dnn_w2=params["dnn_w2"].astype(bf16),
        wv_mri=wv[:dim2].astype(bf16), wv_pet=wv[dim2:].astype(bf16),
        wo=params["wo"].astype(bf16),
        ff_w_val=ff_w1[:, :hidden].astype(bf16),     # torch GEGLU chunk order: value first
        ff_w_gate=ff_w1[:, hidden:].astype(bf16),
        ff_w2=params["ff_w2"].astype(bf16),
        head_w=head_w.astype(bf16),
    )


# ----------------------------------------------------------------------------- forward

def graph_mamba5_forward(prep, x_categ, x_numer, image_condition):
    mri_img, pet_img = image_condition
    B = x_categ.shape[0]
    tb = BATCH_TILE if B % BATCH_TILE == 0 else B
    n_grid = B // tb

    # tabular DNN input: x_categ + categories_offset, concatenated with x_numer,
    # zero-padded to FEAT_PAD (kept f32: native (8,128) sublane tile for the batch grid)
    x_categ = x_categ + prep["categories_offset"][None, :]
    tab = jnp.concatenate([x_categ.astype(jnp.float32),
                           x_numer.astype(jnp.float32)], axis=1)
    tab = jnp.pad(tab, ((0, 0), (0, FEAT_PAD - tab.shape[1])))

    # image volumes -> (B, n_patches, patch_size) bf16 patches (one XLA copy each)
    mri_p = _to_patches(mri_img, prep["conv_kernel"]).astype(jnp.bfloat16)
    pet_p = _to_patches(pet_img, prep["conv_kernel"]).astype(jnp.bfloat16)
    P, K = prep["n_patches"], prep["patch_size"]

    def const_spec(arr):                     # weights: constant block -> VMEM-resident
        nd = arr.ndim
        return pl.BlockSpec(arr.shape, lambda i, _nd=nd: (0,) * _nd)

    in_specs = [
        pl.BlockSpec((tb, FEAT_PAD), lambda i: (i, 0)),        # tab
        pl.BlockSpec((tb, P, K), lambda i: (i, 0, 0)),         # mri patches
        pl.BlockSpec((tb, P, K), lambda i: (i, 0, 0)),         # pet patches
        const_spec(prep["cw_mri"]), const_spec(prep["cw_pet"]),
        const_spec(prep["wproj_mri"]), const_spec(prep["wproj_pet"]),
        const_spec(prep["dnn_w1"]), const_spec(prep["dnn_w2"]),
        const_spec(prep["wv_mri"]), const_spec(prep["wv_pet"]), const_spec(prep["wo"]),
        const_spec(prep["ff_w_val"]), const_spec(prep["ff_w_gate"]), const_spec(prep["ff_w2"]),
        const_spec(prep["head_w"]),
        const_spec(prep["bias"]),
    ]
    out_spec = pl.BlockSpec((tb, HEAD_PAD), lambda i: (i, 0))

    kernel = _make_kernel(prep["bias_off"], prep["dnn_h"], prep["dim"],
                          prep["dim2"], prep["hidden"])

    logits_pad = pl.pallas_call(
        kernel,
        out_shape=jax.ShapeDtypeStruct((B, HEAD_PAD), jnp.float32),
        grid=(n_grid,),                      # batch grid: parallel -> both v7x TCs
        in_specs=in_specs,
        out_specs=out_spec,
        compiler_params=pltpu.CompilerParams(
            dimension_semantics=("parallel",),
            vmem_limit_bytes=32 * 1024 * 1024),
    )(tab, mri_p, pet_p,
      prep["cw_mri"], prep["cw_pet"], prep["wproj_mri"], prep["wproj_pet"],
      prep["dnn_w1"], prep["dnn_w2"],
      prep["wv_mri"], prep["wv_pet"], prep["wo"],
      prep["ff_w_val"], prep["ff_w_gate"], prep["ff_w2"], prep["head_w"],
      prep["bias"])

    return logits_pad[:, :prep["dim_out"]]


# ----------------------------------------------------------------------------- params

def init_params(key, *, categories, num_continuous, dim, heads, dim2, dim_out, mult,
                n_patches, dnn_hidden=128):
    del heads  # multi-head cross attention collapses for a single key/value token
    num_special_tokens = 2
    # categories_offset = cumsum(pad(categories, (1,0), value=num_special))[:-1]
    offsets = jnp.cumsum(
        jnp.array((num_special_tokens,) + tuple(categories[:-1]), jnp.int32))

    keys = iter(jax.random.split(key, 32))

    def nrm(shape, scale=0.02):
        return (scale * jax.random.normal(next(keys), shape)).astype(jnp.float32)

    n_feat = len(categories) + num_continuous
    d_cross = 2 * dim2
    hidden = dim * mult
    z = lambda *s: jnp.zeros(s, jnp.float32)
    o = lambda *s: jnp.ones(s, jnp.float32)

    return dict(
        categories_offset=offsets,
        # Conv3d(1, 1, kernel=(16,16,8), stride=(16,16,8)) per modality (exact).
        mri_conv_w=nrm((16, 16, 8)), mri_conv_b=jnp.zeros((), jnp.float32),
        pet_conv_w=nrm((16, 16, 8)), pet_conv_b=jnp.zeros((), jnp.float32),
        # TODO(synk): build_graph_from_img + AddRandomWalkPE + GraphModel (graph-mamba)
        # are not defined in the reference source; per-patch linear projection stand-in.
        mri_proj_w=nrm((n_patches, dim2)), mri_proj_b=z(dim2),
        pet_proj_w=nrm((n_patches, dim2)), pet_proj_b=z(dim2),
        # TODO(synk): GCondNet is not defined in the reference source; 2-layer MLP.
        dnn_w1=nrm((n_feat, dnn_hidden)), dnn_b1=z(dnn_hidden),
        dnn_w2=nrm((dnn_hidden, dim)), dnn_b2=z(dim),
        # CrossAttention: q/k projections are mathematically dead (single key) -> omitted.
        wv=nrm((d_cross, dim)), bv=z(dim),
        wo=nrm((dim, dim)), bo=z(dim),
        ff_g=o(dim), ff_b=z(dim),
        ff_w1=nrm((dim, 2 * hidden)), ff_b1=z(2 * hidden),
        ff_w2=nrm((hidden, dim)), ff_b2=z(dim),
        head_g=o(dim), head_bln=z(dim),
        head_w=nrm((dim, dim_out)), head_b=z(dim_out),
    )


# ----------------------------------------------------------------------------- main

if __name__ == "__main__":
    B = 16                  # two grid steps of BATCH_TILE=8 -> exercises the parallel grid
    categories = (3, 5)
    num_continuous = 4
    dim = 64
    heads = 4
    dim2 = 128              # small (lane-dense) stand-in for the default dim2=256
    dim_out = 1
    mult = 2                # cross_ff_multi
    D, H, W = 32, 32, 8
    conv_kernel = (16, 16, 8)
    n_patches = (D // 16) * (H // 16) * (W // 8)

    key = jax.random.PRNGKey(0)
    kp, kc, kn, km, kpet = jax.random.split(key, 5)
    params = init_params(kp, categories=categories, num_continuous=num_continuous,
                         dim=dim, heads=heads, dim2=dim2, dim_out=dim_out, mult=mult,
                         n_patches=n_patches)
    prep = prepare_params(params, (D, H, W), conv_kernel)

    x_categ = jnp.stack(
        [jax.random.randint(jax.random.fold_in(kc, i), (B,), 0, c)
         for i, c in enumerate(categories)], axis=1).astype(jnp.int32)      # (B, 2)
    x_numer = jax.random.normal(kn, (B, num_continuous), jnp.float32)       # (B, 4)
    mri_img = jax.random.normal(km, (B, 1, D, H, W), jnp.float32)           # NCDHW
    pet_img = jax.random.normal(kpet, (B, 1, D, H, W), jnp.float32)         # NCDHW

    logits = graph_mamba5_forward(prep, x_categ, x_numer, (mri_img, pet_img))
    logits = jax.block_until_ready(logits)
    assert logits.shape == (B, dim_out), logits.shape
    print("KERNEL_OK")
</pallas_src>

<mosaic_0001>
module attributes {stable_mosaic.version = 11 : i64} {
  func.func @kernel(%arg0: i32, %arg1: memref<8x128xf32, #tpu.memory_space<vmem>>, %arg2: memref<8x4x2048xbf16, #tpu.memory_space<vmem>>, %arg3: memref<8x4x2048xbf16, #tpu.memory_space<vmem>>, %arg4: memref<1x1x2048xf32, #tpu.memory_space<vmem>>, %arg5: memref<1x1x2048xf32, #tpu.memory_space<vmem>>, %arg6: memref<4x128xbf16, #tpu.memory_space<vmem>>, %arg7: memref<4x128xbf16, #tpu.memory_space<vmem>>, %arg8: memref<128x128xbf16, #tpu.memory_space<vmem>>, %arg9: memref<128x64xbf16, #tpu.memory_space<vmem>>, %arg10: memref<128x64xbf16, #tpu.memory_space<vmem>>, %arg11: memref<128x64xbf16, #tpu.memory_space<vmem>>, %arg12: memref<64x64xbf16, #tpu.memory_space<vmem>>, %arg13: memref<64x128xbf16, #tpu.memory_space<vmem>>, %arg14: memref<64x128xbf16, #tpu.memory_space<vmem>>, %arg15: memref<128x64xbf16, #tpu.memory_space<vmem>>, %arg16: memref<64x128xbf16, #tpu.memory_space<vmem>>, %arg17: memref<1x1792xf32, #tpu.memory_space<vmem>>, %arg18: memref<8x128xf32, #tpu.memory_space<vmem>>) attributes {dimension_semantics = [#tpu.dimension_semantics<parallel>], iteration_bounds = array<i64: 2>, scalar_prefetch = 0 : i64, scratch_operands = 0 : i64, tpu.core_type = #tpu.core_type<tc>, window_params = [{transform_indices = @transform_0, window_bounds = array<i64: 8, 128>}, {transform_indices = @transform_1, window_bounds = array<i64: 8, 4, 2048>}, {transform_indices = @transform_2, window_bounds = array<i64: 8, 4, 2048>}, {pipeline_mode = #tpu.pipeline_mode<synchronous>, transform_indices = @transform_3, window_bounds = array<i64: 1, 1, 2048>}, {pipeline_mode = #tpu.pipeline_mode<synchronous>, transform_indices = @transform_4, window_bounds = array<i64: 1, 1, 2048>}, {pipeline_mode = #tpu.pipeline_mode<synchronous>, transform_indices = @transform_5, window_bounds = array<i64: 4, 128>}, {pipeline_mode = #tpu.pipeline_mode<synchronous>, transform_indices = @transform_6, window_bounds = array<i64: 4, 128>}, {pipeline_mode = #tpu.pipeline_mode<synchronous>, transform_indices = @transform_7, window_bounds = array<i64: 128, 128>}, {pipeline_mode = #tpu.pipeline_mode<synchronous>, transform_indices = @transform_8, window_bounds = array<i64: 128, 64>}, {pipeline_mode = #tpu.pipeline_mode<synchronous>, transform_indices = @transform_9, window_bounds = array<i64: 128, 64>}, {pipeline_mode = #tpu.pipeline_mode<synchronous>, transform_indices = @transform_10, window_bounds = array<i64: 128, 64>}, {pipeline_mode = #tpu.pipeline_mode<synchronous>, transform_indices = @transform_11, window_bounds = array<i64: 64, 64>}, {pipeline_mode = #tpu.pipeline_mode<synchronous>, transform_indices = @transform_12, window_bounds = array<i64: 64, 128>}, {pipeline_mode = #tpu.pipeline_mode<synchronous>, transform_indices = @transform_13, window_bounds = array<i64: 64, 128>}, {pipeline_mode = #tpu.pipeline_mode<synchronous>, transform_indices = @transform_14, window_bounds = array<i64: 128, 64>}, {pipeline_mode = #tpu.pipeline_mode<synchronous>, transform_indices = @transform_15, window_bounds = array<i64: 64, 128>}, {pipeline_mode = #tpu.pipeline_mode<synchronous>, transform_indices = @transform_16, window_bounds = array<i64: 1, 1792>}, {transform_indices = @transform_17, window_bounds = array<i64: 8, 128>}]} {
    %c0 = arith.constant 0 : index
    %c0_0 = arith.constant 0 : index
    %0 = vector.load %arg1[%c0, %c0_0] : memref<8x128xf32, #tpu.memory_space<vmem>>, vector<8x128xf32>
    %1 = arith.truncf %0 : vector<8x128xf32> to vector<8x128xbf16>
    %c0_1 = arith.constant 0 : index
    %c0_2 = arith.constant 0 : index
    %2 = vector.load %arg8[%c0_1, %c0_2] : memref<128x128xbf16, #tpu.memory_space<vmem>>, vector<128x128xbf16>
    %cst = arith.constant dense<0.000000e+00> : vector<8x128xf32>
    %3 = tpu.matmul %1, %2, %cst {dimension_numbers = #tpu.dot_dimension_numbers<[1], [0], [0], [1], [0, 0, 1, 1], [], []>} : vector<8x128xbf16>, vector<128x128xbf16>, vector<8x128xf32> -> vector<8x128xf32>
    %c0_3 = arith.constant 0 : index
    %c0_4 = arith.constant 0 : index
    %4 = vector.load %arg17[%c0_3, %c0_4] : memref<1x1792xf32, #tpu.memory_space<vmem>>, vector<1x128xf32>
    %5 = vector.broadcast %4 : vector<1x128xf32> to vector<8x128xf32>
    %6 = arith.addf %3, %5 : vector<8x128xf32>
    %cst_5 = arith.constant 0.000000e+00 : f32
    %7 = vector.broadcast %cst_5 : f32 to vector<8x128xf32>
    %8 = arith.maximumf %6, %7 : vector<8x128xf32>
    %9 = arith.truncf %8 : vector<8x128xf32> to vector<8x128xbf16>
    %c0_6 = arith.constant 0 : index
    %c0_7 = arith.constant 0 : index
    %10 = vector.load %arg9[%c0_6, %c0_7] : memref<128x64xbf16, #tpu.memory_space<vmem>>, vector<128x64xbf16>
    %cst_8 = arith.constant dense<0.000000e+00> : vector<8x64xf32>
    %11 = tpu.matmul %9, %10, %cst_8 {dimension_numbers = #tpu.dot_dimension_numbers<[1], [0], [0], [1], [0, 0, 1, 1], [], []>} : vector<8x128xbf16>, vector<128x64xbf16>, vector<8x64xf32> -> vector<8x64xf32>
    %c0_9 = arith.constant 0 : index
    %c128 = arith.constant 128 : index
    %12 = vector.load %arg17[%c0_9, %c128] : memref<1x1792xf32, #tpu.memory_space<vmem>>, vector<1x64xf32>
    %13 = vector.broadcast %12 : vector<1x64xf32> to vector<8x64xf32>
    %14 = arith.addf %11, %13 : vector<8x64xf32>
    %c0_10 = arith.constant 0 : index
    %c0_11 = arith.constant 0 : index
    %c0_12 = arith.constant 0 : index
    %15 = vector.load %arg2[%c0_10, %c0_11, %c0_12] : memref<8x4x2048xbf16, #tpu.memory_space<vmem>>, vector<8x4x2048xbf16>
    %16 = arith.extf %15 : vector<8x4x2048xbf16> to vector<8x4x2048xf32>
    %c0_13 = arith.constant 0 : index
    %c0_14 = arith.constant 0 : index
    %c0_15 = arith.constant 0 : index
    %17 = vector.load %arg4[%c0_13, %c0_14, %c0_15] : memref<1x1x2048xf32, #tpu.memory_space<vmem>>, vector<1x1x2048xf32>
    %18 = vector.broadcast %17 : vector<1x1x2048xf32> to vector<8x4x2048xf32>
    %19 = arith.mulf %16, %18 : vector<8x4x2048xf32>
    %cst_16 = arith.constant dense<0.000000e+00> : vector<8x4xf32>
    %20 = vector.multi_reduction <add>, %19, %cst_16 [2] : vector<8x4x2048xf32> to vector<8x4xf32>
    %c0_17 = arith.constant 0 : index
    %c0_18 = arith.constant 0 : index
    %c0_19 = arith.constant 0 : index
    %21 = vector.load %arg3[%c0_17, %c0_18, %c0_19] : memref<8x4x2048xbf16, #tpu.memory_space<vmem>>, vector<8x4x2048xbf16>
    %22 = arith.extf %21 : vector<8x4x2048xbf16> to vector<8x4x2048xf32>
    %c0_20 = arith.constant 0 : index
    %c0_21 = arith.constant 0 : index
    %c0_22 = arith.constant 0 : index
    %23 = vector.load %arg5[%c0_20, %c0_21, %c0_22] : memref<1x1x2048xf32, #tpu.memory_space<vmem>>, vector<1x1x2048xf32>
    %24 = vector.broadcast %23 : vector<1x1x2048xf32> to vector<8x4x2048xf32>
    %25 = arith.mulf %22, %24 : vector<8x4x2048xf32>
    %cst_23 = arith.constant dense<0.000000e+00> : vector<8x4xf32>
    %26 = vector.multi_reduction <add>, %25, %cst_23 [2] : vector<8x4x2048xf32> to vector<8x4xf32>
    %27 = arith.truncf %20 : vector<8x4xf32> to vector<8x4xbf16>
    %c0_24 = arith.constant 0 : index
    %c0_25 = arith.constant 0 : index
    %28 = vector.load %arg6[%c0_24, %c0_25] : memref<4x128xbf16, #tpu.memory_space<vmem>>, vector<4x128xbf16>
    %cst_26 = arith.constant dense<0.000000e+00> : vector<8x128xf32>
    %29 = tpu.matmul %27, %28, %cst_26 {dimension_numbers = #tpu.dot_dimension_numbers<[1], [0], [0], [1], [0, 0, 1, 1], [], []>} : vector<8x4xbf16>, vector<4x128xbf16>, vector<8x128xf32> -> vector<8x128xf32>
    %c0_27 = arith.constant 0 : index
    %c256 = arith.constant 256 : index
    %30 = vector.load %arg17[%c0_27, %c256] : memref<1x1792xf32, #tpu.memory_space<vmem>>, vector<1x128xf32>
    %31 = vector.broadcast %30 : vector<1x128xf32> to vector<8x128xf32>
    %32 = arith.addf %29, %31 : vector<8x128xf32>
    %33 = arith.truncf %26 : vector<8x4xf32> to vector<8x4xbf16>
    %c0_28 = arith.constant 0 : index
    %c0_29 = arith.constant 0 : index
    %34 = vector.load %arg7[%c0_28, %c0_29] : memref<4x128xbf16, #tpu.memory_space<vmem>>, vector<4x128xbf16>
    %cst_30 = arith.constant dense<0.000000e+00> : vector<8x128xf32>
    %35 = tpu.matmul %33, %34, %cst_30 {dimension_numbers = #tpu.dot_dimension_numbers<[1], [0], [0], [1], [0, 0, 1, 1], [], []>} : vector<8x4xbf16>, vector<4x128xbf16>, vector<8x128xf32> -> vector<8x128xf32>
    %c0_31 = arith.constant 0 : index
    %c384 = arith.constant 384 : index
    %36 = vector.load %arg17[%c0_31, %c384] : memref<1x1792xf32, #tpu.memory_space<vmem>>, vector<1x128xf32>
    %37 = vector.broadcast %36 : vector<1x128xf32> to vector<8x128xf32>
    %38 = arith.addf %35, %37 : vector<8x128xf32>
    %39 = arith.truncf %32 : vector<8x128xf32> to vector<8x128xbf16>
    %c0_32 = arith.constant 0 : index
    %c0_33 = arith.constant 0 : index
    %40 = vector.load %arg10[%c0_32, %c0_33] : memref<128x64xbf16, #tpu.memory_space<vmem>>, vector<128x64xbf16>
    %cst_34 = arith.constant dense<0.000000e+00> : vector<8x64xf32>
    %41 = tpu.matmul %39, %40, %cst_34 {dimension_numbers = #tpu.dot_dimension_numbers<[1], [0], [0], [1], [0, 0, 1, 1], [], []>} : vector<8x128xbf16>, vector<128x64xbf16>, vector<8x64xf32> -> vector<8x64xf32>
    %42 = arith.truncf %38 : vector<8x128xf32> to vector<8x128xbf16>
    %c0_35 = arith.constant 0 : index
    %c0_36 = arith.constant 0 : index
    %43 = vector.load %arg11[%c0_35, %c0_36] : memref<128x64xbf16, #tpu.memory_space<vmem>>, vector<128x64xbf16>
    %cst_37 = arith.constant dense<0.000000e+00> : vector<8x64xf32>
    %44 = tpu.matmul %42, %43, %cst_37 {dimension_numbers = #tpu.dot_dimension_numbers<[1], [0], [0], [1], [0, 0, 1, 1], [], []>} : vector<8x128xbf16>, vector<128x64xbf16>, vector<8x64xf32> -> vector<8x64xf32>
    %45 = arith.addf %41, %44 : vector<8x64xf32>
    %c0_38 = arith.constant 0 : index
    %c512 = arith.constant 512 : index
    %46 = vector.load %arg17[%c0_38, %c512] : memref<1x1792xf32, #tpu.memory_space<vmem>>, vector<1x64xf32>
    %47 = vector.broadcast %46 : vector<1x64xf32> to vector<8x64xf32>
    %48 = arith.addf %45, %47 : vector<8x64xf32>
    %49 = arith.truncf %48 : vector<8x64xf32> to vector<8x64xbf16>
    %c0_39 = arith.constant 0 : index
    %c0_40 = arith.constant 0 : index
    %50 = vector.load %arg12[%c0_39, %c0_40] : memref<64x64xbf16, #tpu.memory_space<vmem>>, vector<64x64xbf16>
    %cst_41 = arith.constant dense<0.000000e+00> : vector<8x64xf32>
    %51 = tpu.matmul %49, %50, %cst_41 {dimension_numbers = #tpu.dot_dimension_numbers<[1], [0], [0], [1], [0, 0, 1, 1], [], []>} : vector<8x64xbf16>, vector<64x64xbf16>, vector<8x64xf32> -> vector<8x64xf32>
    %c0_42 = arith.constant 0 : index
    %c640 = arith.constant 640 : index
    %52 = vector.load %arg17[%c0_42, %c640] : memref<1x1792xf32, #tpu.memory_space<vmem>>, vector<1x64xf32>
    %53 = vector.broadcast %52 : vector<1x64xf32> to vector<8x64xf32>
    %54 = arith.addf %51, %53 : vector<8x64xf32>
    %55 = arith.addf %54, %14 : vector<8x64xf32>
    %c0_43 = arith.constant 0 : index
    %c768 = arith.constant 768 : index
    %56 = vector.load %arg17[%c0_43, %c768] : memref<1x1792xf32, #tpu.memory_space<vmem>>, vector<1x64xf32>
    %c0_44 = arith.constant 0 : index
    %c896 = arith.constant 896 : index
    %57 = vector.load %arg17[%c0_44, %c896] : memref<1x1792xf32, #tpu.memory_space<vmem>>, vector<1x64xf32>
    %cst_45 = arith.constant dense<0.000000e+00> : vector<8xf32>
    %58 = vector.multi_reduction <add>, %55, %cst_45 [1] : vector<8x64xf32> to vector<8xf32>
    %59 = vector.shape_cast %58 : vector<8xf32> to vector<8x1xf32>
    %cst_46 = arith.constant 6.400000e+01 : f32
    %60 = vector.broadcast %cst_46 : f32 to vector<8x1xf32>
    %61 = arith.divf %59, %60 : vector<8x1xf32>
    %62 = vector.broadcast %61 : vector<8x1xf32> to vector<8x64xf32>
    %63 = arith.subf %55, %62 : vector<8x64xf32>
    %64 = arith.mulf %63, %63 : vector<8x64xf32>
    %cst_47 = arith.constant dense<0.000000e+00> : vector<8xf32>
    %65 = vector.multi_reduction <add>, %64, %cst_47 [1] : vector<8x64xf32> to vector<8xf32>
    %66 = vector.shape_cast %65 : vector<8xf32> to vector<8x1xf32>
    %cst_48 = arith.constant 6.400000e+01 : f32
    %67 = vector.broadcast %cst_48 : f32 to vector<8x1xf32>
    %68 = arith.divf %66, %67 : vector<8x1xf32>
    %69 = vector.broadcast %61 : vector<8x1xf32> to vector<8x64xf32>
    %70 = arith.subf %55, %69 : vector<8x64xf32>
    %cst_49 = arith.constant 9.99999974E-6 : f32
    %71 = vector.broadcast %cst_49 : f32 to vector<8x1xf32>
    %72 = arith.addf %68, %71 : vector<8x1xf32>
    %73 = math.rsqrt %72 : vector<8x1xf32>
    %74 = vector.broadcast %73 : vector<8x1xf32> to vector<8x64xf32>
    %75 = arith.mulf %70, %74 : vector<8x64xf32>
    %76 = vector.broadcast %56 : vector<1x64xf32> to vector<8x64xf32>
    %77 = arith.mulf %75, %76 : vector<8x64xf32>
    %78 = vector.broadcast %57 : vector<1x64xf32> to vector<8x64xf32>
    %79 = arith.addf %77, %78 : vector<8x64xf32>
    %80 = arith.truncf %79 : vector<8x64xf32> to vector<8x64xbf16>
    %c0_50 = arith.constant 0 : index
    %c0_51 = arith.constant 0 : index
    %81 = vector.load %arg13[%c0_50, %c0_51] : memref<64x128xbf16, #tpu.memory_space<vmem>>, vector<64x128xbf16>
    %cst_52 = arith.constant dense<0.000000e+00> : vector<8x128xf32>
    %82 = tpu.matmul %80, %81, %cst_52 {dimension_numbers = #tpu.dot_dimension_numbers<[1], [0], [0], [1], [0, 0, 1, 1], [], []>} : vector<8x64xbf16>, vector<64x128xbf16>, vector<8x128xf32> -> vector<8x128xf32>
    %c0_53 = arith.constant 0 : index
    %c1024 = arith.constant 1024 : index
    %83 = vector.load %arg17[%c0_53, %c1024] : memref<1x1792xf32, #tpu.memory_space<vmem>>, vector<1x128xf32>
    %84 = vector.broadcast %83 : vector<1x128xf32> to vector<8x128xf32>
    %85 = arith.addf %82, %84 : vector<8x128xf32>
    %c0_54 = arith.constant 0 : index
    %c0_55 = arith.constant 0 : index
    %86 = vector.load %arg14[%c0_54, %c0_55] : memref<64x128xbf16, #tpu.memory_space<vmem>>, vector<64x128xbf16>
    %cst_56 = arith.constant dense<0.000000e+00> : vector<8x128xf32>
    %87 = tpu.matmul %80, %86, %cst_56 {dimension_numbers = #tpu.dot_dimension_numbers<[1], [0], [0], [1], [0, 0, 1, 1], [], []>} : vector<8x64xbf16>, vector<64x128xbf16>, vector<8x128xf32> -> vector<8x128xf32>
    %c0_57 = arith.constant 0 : index
    %c1152 = arith.constant 1152 : index
    %88 = vector.load %arg17[%c0_57, %c1152] : memref<1x1792xf32, #tpu.memory_space<vmem>>, vector<1x128xf32>
    %89 = vector.broadcast %88 : vector<1x128xf32> to vector<8x128xf32>
    %90 = arith.addf %87, %89 : vector<8x128xf32>
    %91 = arith.mulf %90, %90 : vector<8x128xf32>
    %92 = arith.mulf %90, %91 : vector<8x128xf32>
    %cst_58 = arith.constant 4.471500e-02 : f32
    %93 = vector.broadcast %cst_58 : f32 to vector<8x128xf32>
    %94 = arith.mulf %93, %92 : vector<8x128xf32>
    %95 = arith.addf %90, %94 : vector<8x128xf32>
    %cst_59 = arith.constant 0.797884583 : f32
    %96 = vector.broadcast %cst_59 : f32 to vector<8x128xf32>
    %97 = arith.mulf %96, %95 : vector<8x128xf32>
    %98 = math.tanh %97 : vector<8x128xf32>
    %cst_60 = arith.constant 1.000000e+00 : f32
    %99 = vector.broadcast %cst_60 : f32 to vector<8x128xf32>
    %100 = arith.addf %99, %98 : vector<8x128xf32>
    %cst_61 = arith.constant 5.000000e-01 : f32
    %101 = vector.broadcast %cst_61 : f32 to vector<8x128xf32>
    %102 = arith.mulf %101, %100 : vector<8x128xf32>
    %103 = arith.mulf %90, %102 : vector<8x128xf32>
    %104 = arith.mulf %85, %103 : vector<8x128xf32>
    %105 = arith.truncf %104 : vector<8x128xf32> to vector<8x128xbf16>
    %c0_62 = arith.constant 0 : index
    %c0_63 = arith.constant 0 : index
    %106 = vector.load %arg15[%c0_62, %c0_63] : memref<128x64xbf16, #tpu.memory_space<vmem>>, vector<128x64xbf16>
    %cst_64 = arith.constant dense<0.000000e+00> : vector<8x64xf32>
    %107 = tpu.matmul %105, %106, %cst_64 {dimension_numbers = #tpu.dot_dimension_numbers<[1], [0], [0], [1], [0, 0, 1, 1], [], []>} : vector<8x128xbf16>, vector<128x64xbf16>, vector<8x64xf32> -> vector<8x64xf32>
    %c0_65 = arith.constant 0 : index
    %c1280 = arith.constant 1280 : index
    %108 = vector.load %arg17[%c0_65, %c1280] : memref<1x1792xf32, #tpu.memory_space<vmem>>, vector<1x64xf32>
    %109 = vector.broadcast %108 : vector<1x64xf32> to vector<8x64xf32>
    %110 = arith.addf %107, %109 : vector<8x64xf32>
    %111 = arith.addf %110, %55 : vector<8x64xf32>
    %c0_66 = arith.constant 0 : index
    %c1408 = arith.constant 1408 : index
    %112 = vector.load %arg17[%c0_66, %c1408] : memref<1x1792xf32, #tpu.memory_space<vmem>>, vector<1x64xf32>
    %c0_67 = arith.constant 0 : index
    %c1536 = arith.constant 1536 : index
    %113 = vector.load %arg17[%c0_67, %c1536] : memref<1x1792xf32, #tpu.memory_space<vmem>>, vector<1x64xf32>
    %cst_68 = arith.constant dense<0.000000e+00> : vector<8xf32>
    %114 = vector.multi_reduction <add>, %111, %cst_68 [1] : vector<8x64xf32> to vector<8xf32>
    %115 = vector.shape_cast %114 : vector<8xf32> to vector<8x1xf32>
    %cst_69 = arith.constant 6.400000e+01 : f32
    %116 = vector.broadcast %cst_69 : f32 to vector<8x1xf32>
    %117 = arith.divf %115, %116 : vector<8x1xf32>
    %118 = vector.broadcast %117 : vector<8x1xf32> to vector<8x64xf32>
    %119 = arith.subf %111, %118 : vector<8x64xf32>
    %120 = arith.mulf %119, %119 : vector<8x64xf32>
    %cst_70 = arith.constant dense<0.000000e+00> : vector<8xf32>
    %121 = vector.multi_reduction <add>, %120, %cst_70 [1] : vector<8x64xf32> to vector<8xf32>
    %122 = vector.shape_cast %121 : vector<8xf32> to vector<8x1xf32>
    %cst_71 = arith.constant 6.400000e+01 : f32
    %123 = vector.broadcast %cst_71 : f32 to vector<8x1xf32>
    %124 = arith.divf %122, %123 : vector<8x1xf32>
    %125 = vector.broadcast %117 : vector<8x1xf32> to vector<8x64xf32>
    %126 = arith.subf %111, %125 : vector<8x64xf32>
    %cst_72 = arith.constant 9.99999974E-6 : f32
    %127 = vector.broadcast %cst_72 : f32 to vector<8x1xf32>
    %128 = arith.addf %124, %127 : vector<8x1xf32>
    %129 = math.rsqrt %128 : vector<8x1xf32>
    %130 = vector.broadcast %129 : vector<8x1xf32> to vector<8x64xf32>
    %131 = arith.mulf %126, %130 : vector<8x64xf32>
    %132 = vector.broadcast %112 : vector<1x64xf32> to vector<8x64xf32>
    %133 = arith.mulf %131, %132 : vector<8x64xf32>
    %134 = vector.broadcast %113 : vector<1x64xf32> to vector<8x64xf32>
    %135 = arith.addf %133, %134 : vector<8x64xf32>
    %136 = arith.truncf %135 : vector<8x64xf32> to vector<8x64xbf16>
    %c0_73 = arith.constant 0 : index
    %c0_74 = arith.constant 0 : index
    %137 = vector.load %arg16[%c0_73, %c0_74] : memref<64x128xbf16, #tpu.memory_space<vmem>>, vector<64x128xbf16>
    %cst_75 = arith.constant dense<0.000000e+00> : vector<8x128xf32>
    %138 = tpu.matmul %136, %137, %cst_75 {dimension_numbers = #tpu.dot_dimension_numbers<[1], [0], [0], [1], [0, 0, 1, 1], [], []>} : vector<8x64xbf16>, vector<64x128xbf16>, vector<8x128xf32> -> vector<8x128xf32>
    %c0_76 = arith.constant 0 : index
    %c1664 = arith.constant 1664 : index
    %139 = vector.load %arg17[%c0_76, %c1664] : memref<1x1792xf32, #tpu.memory_space<vmem>>, vector<1x128xf32>
    %140 = vector.broadcast %139 : vector<1x128xf32> to vector<8x128xf32>
    %141 = arith.addf %138, %140 : vector<8x128xf32>
    %c0_77 = arith.constant 0 : index
    %c0_78 = arith.constant 0 : index
    %142 = vector.load %arg18[%c0_77, %c0_78] : memref<8x128xf32, #tpu.memory_space<vmem>>, vector<8x128xf32>
    tpu.vector_store %arg18[%c0_77, %c0_78], %141 {strides = array<i32>} : memref<8x128xf32, #tpu.memory_space<vmem>>, vector<8x128xf32>,
    return
  }
  func.func @transform_0(%arg0: i32) -> (i32, i32) {
    %c0_i32 = arith.constant 0 : i32
    %c0_i32_0 = arith.constant 0 : i32
    return %arg0, %c0_i32 : i32, i32
  }
  func.func @transform_1(%arg0: i32) -> (i32, i32, i32) {
    %c0_i32 = arith.constant 0 : i32
    %c0_i32_0 = arith.constant 0 : i32
    %c0_i32_1 = arith.constant 0 : i32
    return %arg0, %c0_i32, %c0_i32_0 : i32, i32, i32
  }
  func.func @transform_2(%arg0: i32) -> (i32, i32, i32) {
    %c0_i32 = arith.constant 0 : i32
    %c0_i32_0 = arith.constant 0 : i32
    %c0_i32_1 = arith.constant 0 : i32
    return %arg0, %c0_i32, %c0_i32_0 : i32, i32, i32
  }
  func.func @transform_3(%arg0: i32) -> (i32, i32, i32) {
    %c0_i32 = arith.constant 0 : i32
    %c0_i32_0 = arith.constant 0 : i32
    %c0_i32_1 = arith.constant 0 : i32
    %c0_i32_2 = arith.constant 0 : i32
    return %c0_i32, %c0_i32_0, %c0_i32_1 : i32, i32, i32
  }
  func.func @transform_4(%arg0: i32) -> (i32, i32, i32) {
    %c0_i32 = arith.constant 0 : i32
    %c0_i32_0 = arith.constant 0 : i32
    %c0_i32_1 = arith.constant 0 : i32
    %c0_i32_2 = arith.constant 0 : i32
    return %c0_i32, %c0_i32_0, %c0_i32_1 : i32, i32, i32
  }
  func.func @transform_5(%arg0: i32) -> (i32, i32) {
    %c0_i32 = arith.constant 0 : i32
    %c0_i32_0 = arith.constant 0 : i32
    %c0_i32_1 = arith.constant 0 : i32
    return %c0_i32, %c0_i32_0 : i32, i32
  }
  func.func @transform_6(%arg0: i32) -> (i32, i32) {
    %c0_i32 = arith.constant 0 : i32
    %c0_i32_0 = arith.constant 0 : i32
    %c0_i32_1 = arith.constant 0 : i32
    return %c0_i32, %c0_i32_0 : i32, i32
  }
  func.func @transform_7(%arg0: i32) -> (i32, i32) {
    %c0_i32 = arith.constant 0 : i32
    %c0_i32_0 = arith.constant 0 : i32
    %c0_i32_1 = arith.constant 0 : i32
    return %c0_i32, %c0_i32_0 : i32, i32
  }
  func.func @transform_8(%arg0: i32) -> (i32, i32) {
    %c0_i32 = arith.constant 0 : i32
    %c0_i32_0 = arith.constant 0 : i32
    %c0_i32_1 = arith.constant 0 : i32
    return %c0_i32, %c0_i32_0 : i32, i32
  }
  func.func @transform_9(%arg0: i32) -> (i32, i32) {
    %c0_i32 = arith.constant 0 : i32
    %c0_i32_0 = arith.constant 0 : i32
    %c0_i32_1 = arith.constant 0 : i32
    return %c0_i32, %c0_i32_0 : i32, i32
  }
  func.func @transform_10(%arg0: i32) -> (i32, i32) {
    %c0_i32 = arith.constant 0 : i32
    %c0_i32_0 = arith.constant 0 : i32
    %c0_i32_1 = arith.constant 0 : i32
    return %c0_i32, %c0_i32_0 : i32, i32
  }
  func.func @transform_11(%arg0: i32) -> (i32, i32) {
    %c0_i32 = arith.constant 0 : i32
    %c0_i32_0 = arith.constant 0 : i32
    %c0_i32_1 = arith.constant 0 : i32
    return %c0_i32, %c0_i32_0 : i32, i32
  }
  func.func @transform_12(%arg0: i32) -> (i32, i32) {
    %c0_i32 = arith.constant 0 : i32
    %c0_i32_0 = arith.constant 0 : i32
    %c0_i32_1 = arith.constant 0 : i32
    return %c0_i32, %c0_i32_0 : i32, i32
  }
  func.func @transform_13(%arg0: i32) -> (i32, i32) {
    %c0_i32 = arith.constant 0 : i32
    %c0_i32_0 = arith.constant 0 : i32
    %c0_i32_1 = arith.constant 0 : i32
    return %c0_i32, %c0_i32_0 : i32, i32
  }
  func.func @transform_14(%arg0: i32) -> (i32, i32) {
    %c0_i32 = arith.constant 0 : i32
    %c0_i32_0 = arith.constant 0 : i32
    %c0_i32_1 = arith.constant 0 : i32
    return %c0_i32, %c0_i32_0 : i32, i32
  }
  func.func @transform_15(%arg0: i32) -> (i32, i32) {
    %c0_i32 = arith.constant 0 : i32
    %c0_i32_0 = arith.constant 0 : i32
    %c0_i32_1 = arith.constant 0 : i32
    return %c0_i32, %c0_i32_0 : i32, i32
  }
  func.func @transform_16(%arg0: i32) -> (i32, i32) {
    %c0_i32 = arith.constant 0 : i32
    %c0_i32_0 = arith.constant 0 : i32
    %c0_i32_1 = arith.constant 0 : i32
    return %c0_i32, %c0_i32_0 : i32, i32
  }
  func.func @transform_17(%arg0: i32) -> (i32, i32) {
    %c0_i32 = arith.constant 0 : i32
    %c0_i32_0 = arith.constant 0 : i32
    return %arg0, %c0_i32 : i32, i32
  }
}

</mosaic_0001>

<bundles_post_ra>
// kernel: tpu_custom_call.1
= control target key start
LH: loop header
LB: loop body
LE: loop exit
PB: predicated region body
PF: predicated region fallthrough
CT: control target
= control target key end

     0   :  { %s5047_s0 = inlined_call_operand.vmem [shape: f32[16,128], index: 0, kind: input, shape index: {}]   ;;  %s5048_s1 = inlined_call_operand.hbm [shape: bf16[16,4,2048], index: 1, kind: input, shape index: {}]   ;;  %s5049_s2 = inlined_call_operand.hbm [shape: bf16[16,4,2048], index: 2, kind: input, shape index: {}]   ;;  %s5050_s3 = inlined_call_operand.vmem [shape: f32[1,1,2048], index: 3, kind: input, shape index: {}]   ;;  %s5051_s4 = inlined_call_operand.vmem [shape: f32[1,1,2048], index: 4, kind: input, shape index: {}]   ;;  %s5052_s5 = inlined_call_operand.vmem [shape: bf16[4,128], index: 5, kind: input, shape index: {}]   ;;  %s5053_s6 = inlined_call_operand.vmem [shape: bf16[4,128], index: 6, kind: input, shape index: {}]   ;;  %s5054_s7 = inlined_call_operand.vmem [shape: bf16[128,128], index: 7, kind: input, shape index: {}]   ;;  %s5055_s8 = inlined_call_operand.vmem [shape: bf16[128,64], index: 8, kind: input, shape index: {}]   ;;  %s5056_s9 = inlined_call_operand.vmem [shape: bf16[128,64], index: 9, kind: input, shape index: {}]   ;;  %s5057_s10 = inlined_call_operand.vmem [shape: bf16[128,64], index: 10, kind: input, shape index: {}]   ;;  %s5058_s11 = inlined_call_operand.vmem [shape: bf16[64,64], index: 11, kind: input, shape index: {}]   ;;  %s5059_s12 = inlined_call_operand.vmem [shape: bf16[64,128], index: 12, kind: input, shape index: {}]   ;;  %s5060_s13 = inlined_call_operand.vmem [shape: bf16[64,128], index: 13, kind: input, shape index: {}]   ;;  %s5061_s14 = inlined_call_operand.vmem [shape: bf16[128,64], index: 14, kind: input, shape index: {}]   ;;  %s5062_s15 = inlined_call_operand.vmem [shape: bf16[64,128], index: 15, kind: input, shape index: {}]   ;;  %s5063_s16 = inlined_call_operand.vmem [shape: f32[1,1792], index: 16, kind: input, shape index: {}]   ;;  %s5064_s17 = inlined_call_operand.hbm [shape: f32[16,128], index: 17, kind: output, shape index: {}]  }
   0x1   :  { %5084 = sst [smem:[#allocation17_spill]] %s5047_s0 }
   0x2   :  { %5085 = sst [smem:[#allocation18_spill]] %s5048_s1 }
   0x3   :  { %5086 = sst [smem:[#allocation19_spill]] %s5049_s2 }
   0x4   :  { %5087 = sst [smem:[#allocation20_spill]] %s5057_s10 }
   0x5   :  { %5088 = sst [smem:[#allocation21_spill]] %s5058_s11 }
   0x6   :  { %5089 = sst [smem:[#allocation22_spill]] %s5059_s12 }
   0x7   :  { %5090 = sst [smem:[#allocation23_spill]] %s5060_s13 }
   0x8   :  { %5091 = sst [smem:[#allocation24_spill]] %s5061_s14 }
   0x9   :  { %5092 = sst [smem:[#allocation25_spill]] %s5062_s15 }
   0xa   :  { %5093 = sst [smem:[#allocation26_spill]] %s5064_s17 }
   0xb   :  { %22 = vsyncpa [#allocation3], 0 }
   0xc   :  { %24 = vsyncpa [#allocation3 + $0x1], 0 }
   0xd   :  { %25 = vsyncpa [#allocation6], 0 }
   0xe   :  { %27 = vsyncpa [#allocation6 + $0x1], 0 }
   0xf   :  { %28 = vsyncpa [#allocation4], 0 }
  0x10   :  { %30 = vsyncpa [#allocation4 + $0x1], 0  ;;  %s3917_s24 = smov 0   ;;  %s3919_s25 = smov 0  }
  0x11   :  { %s3921_s26 = smov 0   ;;  %s3923_s27 = smov 0  }
  0x12 LB: > { %5094 = sst [smem:[#allocation11_spill]] %s3810_s24  ;;  %s3938_s28 = sadd.s32 4294967295, %s3822_s27   ;;  %s3822_s27 = sphi %s3923_s27, %s5123_s27   ;;  %s3818_s26 = sphi %s3921_s26, %s5125_s26   ;;  %s3814_s25 = sphi %s3919_s25, %s5127_s25   ;;  %s3810_s24 = sphi %s3917_s24, %s5126_s24  }
  0x13   : > { %5095 = sst [smem:[#allocation12_spill]] %s3818_s26  ;;  %s3306_s29 = sadd.s32 4294967294, %s3822_s27  }
  0x14   : > { %s3942_s0 = sadd.s32 1, %s3822_s27   ;;  %s69_s30 = sadd.s32 1, %s3818_s26 }
  0x15   : > { %5096 = sst [smem:[#allocation13_spill]] %s3942_s0  ;;  %s66_s18 = ssub.s32 %s3822_s27, %s3942_s0 }
  0x16   : > { %p76_p0 = scmp.ne.s32.totalorder %s3818_s26, %s3814_s25  ;;  %p67_p1 = scmp.eq.s32.totalorder %s66_s18, 0 }
  0x17   : > { %p77_p2 = scmp.eq.s32.totalorder %s3822_s27, 0  ;;  %p82_p3 = scmp.ne.s32.totalorder %s3814_s25, %s3810_s24 }
  0x18   : > { %p83_p4 = scmp.eq.s32.totalorder %s3938_s28, 0  ;;  %p426_p7 = scmp.eq.s32.totalorder %s3938_s28, 1 }
  0x19   : > { %s3954_s19 = scalar_select %p67_p1, %s3818_s26, %s69_s30  }
  0x1a   : > { %p3956_p5 = por %p77_p2, %p76_p0  ;;  %p3960_p6 = por %p83_p4, %p82_p3 }
  0x1b   : > { %5097 = sst [smem:[#allocation14_spill]] %s3954_s19  ;;  %p432_p8 = scmp.eq.s32.totalorder %s3306_s29, 1 }
  0x1c   : > { %p3633_p10 = scmp.lt.s32.totalorder %s3822_s27, 2  ;;  %p3967_p11 = por %p426_p7, %p76_p0 }
  0x1d   : > { %p3971_p12 = por %p432_p8, %p82_p3  ;;  %s3976_s23 = sand.u32 1, %s3818_s26  }
  0x1e   : > { %s5100_s21 = scalar_select %p3967_p11, 1, 0 }
  0x1f   : > { %s5102_s22 = scalar_select %p3971_p12, 1, 0 }
  0x20   : > { %5101 = sst [smem:[#allocation15_spill]] %s5100_s21  ;;  %s5077_s30 = sshll.u32 %s3822_s27, 8 }
  0x21   : > { %5103 = sst [smem:[#allocation16_spill]] %s5102_s22  ;;  %s5076_s18 = sshll.u32 %s3976_s23, 8 }
  0x22   : > { %s5104_s0 = sld [smem:[#allocation18_spill]]  ;;  %s505_s15 = scalar_lea.vmem [#allocation2], %s5076_s18 }
  0x23   : > { %s514_s21 = sshll.u32 %s505_s15, 4  ;;  %p3989_p13 = pnand %p3633_p10, %p3956_p5  ;;  %s515_s21 = int_to_ptr.vmem [resolvable:$true] %s514_s21 }
  0x24   : > { %p3317_p0 = scmp.ge.s32.totalorder %s3822_s27, 1  ;;  %p545_p1 = scmp.lt.s32.totalorder %s3822_s27, 3 }
  0x25   : > { %s502_s22 = scalar_lea.sflag [#allocation3], %s3976_s23  ;;  %p3696_p3 = pneg %p3989_p13 }
  0x28   : > { %s511_s24 = scalar_lea.hbm %s5104_s0, %s5077_s30  ;;  %s3699_s1 = scalar_lea.hbm %s5104_s0, 512 }
  0x29   : > { %s512_s17 = sshll.u32 %s511_s24, 4  ;;  %s513_s17 = int_to_ptr.hbm [resolvable:$true] %s512_s17 }
  0x2a   : > { %s3692_s14 = sshra.s32 %s513_s17, 4  ;;  %s3693_s14 = int_to_ptr.hbm [resolvable:$true] %s3692_s14 }
  0x2b   : > { %s3694_s19 = scalar_lea.hbm %s3693_s14, 256  ;;  %p3700_p5 = scmp.lt.s32.totalorder %s3693_s14, %s5104_s0 }
  0x2c   : > { %p3695_p2 = scmp.ne.s32.totalorder %s3693_s14, %s3694_s19  ;;  %p3701_p8 = scmp.lt.s32.totalorder %s3699_s1, %s3694_s19 }
  0x2e   : > { %p3697_p4 = pnand %p3696_p3, %p3695_p2  ;;  %p3702_p10 = por %p3701_p8, %p3700_p5 }
  0x30   : > { %p3698_p7 = pneg %p3697_p4 }
  0x32   : > { %p3703_p9 = pnand %p3702_p10, %p3698_p7 }
  0x34   : > { %3706 = shalt.err (!%p3703_p9)
}
  0x35   : > { %s3824_s30 = smov 512   ;;  %s3825_s12 = smov 32  }
  0x36   : > { %3625 = dma.hbm_to_vmem [thread:$0]  (!%p3989_p13), %s513_s17, 4096, %s515_s21, %s502_s22, %s3824_s30, %s3824_s30, %s3825_s12  }
  0x37   : > { %p4013_p2 = pnand %p3317_p0, %p545_p1  ;;  %s5107_s14 = sshll.u32 %s3822_s27, 8 }
  0x38   : > { %s5108_s2 = sld [smem:[#allocation19_spill]]  ;;  %s5109_s29 = sshll.u32 %s3976_s23, 8 }
  0x39   : > { %s528_s0 = scalar_lea.vmem [#allocation5], %s5109_s29  ;;  %s525_s11 = scalar_lea.sflag [#allocation6], %s3976_s23 }
  0x3a   : > { %s537_s13 = sshll.u32 %s528_s0, 4  ;;  %s538_s13 = int_to_ptr.vmem [resolvable:$true] %s537_s13 }
  0x3e   : > { %s534_s24 = scalar_lea.hbm %s5108_s2, %s5107_s14  ;;  %s3729_s19 = scalar_lea.hbm %s5108_s2, 512 }
  0x3f   : > { %s535_s1 = sshll.u32 %s534_s24, 4  ;;  %s536_s1 = int_to_ptr.hbm [resolvable:$true] %s535_s1 }
  0x40   : > { %s3722_s10 = sshra.s32 %s536_s1, 4  ;;  %s3723_s10 = int_to_ptr.hbm [resolvable:$true] %s3722_s10 }
  0x41   : > { %s3724_s17 = scalar_lea.hbm %s3723_s10, 256  ;;  %p3730_p4 = scmp.lt.s32.totalorder %s3723_s10, %s5108_s2 }
  0x42   : > { %p3725_p9 = scmp.ne.s32.totalorder %s3723_s10, %s3724_s17  ;;  %p3731_p7 = scmp.lt.s32.totalorder %s3729_s19, %s3724_s17 }
  0x44   : > { %p3727_p0 = pnand %p3725_p9, %p3696_p3  ;;  %p3732_p5 = por %p3731_p7, %p3730_p4 }
  0x46   : > { %p3728_p1 = pneg %p3727_p0 }
  0x48   : > { %p3733_p8 = pnand %p3732_p5, %p3728_p1 }
  0x4a   : > { %3736 = shalt.err (!%p3733_p8)
}
  0x4b   : > { %3628 = dma.hbm_to_vmem [thread:$0]  (!%p3989_p13), %s536_s1, 4096, %s538_s13, %s525_s11, %s3824_s30, %s3824_s30, %s3825_s12  }
  0x4c   : > { %549 = sbr.rel (%p4013_p2) target bundleno = 1958 (0x7a6), region = 88  ;;  %s4039_s0 = sand.u32 (!%p4013_p2), 1, %s3814_s25  }
  0x4d   : > { %s3318_s23 = sshll.u32 (!%p4013_p2), %s4039_s0, 8  ;;  %s552_s24 = scalar_lea.sflag (!%p4013_p2), [#allocation3], %s4039_s0 }
  0x4e   : > { %s4043_s29 = scalar_lea.vmem (!%p4013_p2), [#allocation2], %s3318_s23 }
  0x51   : > { %3797 = dma.done.wait (%p3960_p6), %s552_s24, 4096  }
  0x52   : > { %3799 = vsyncadd (%p3960_p6), %s552_s24, 4294963200  ;;  %s562_s10 = scalar_lea.sflag [#allocation6], %s4039_s0  ;;  %s4050_s11 = scalar_lea.vmem [#allocation5], %s3318_s23 }
  0x53   : > { %3801 = dma.done.wait (%p3960_p6), %s562_s10, 4096  }
  0x54   : > { %3803 = vsyncadd (%p3960_p6), %s562_s10, 4294963200  ;;  %v3567_v0 = vld [vmem:[%s5054_s7 + $0x38] sm:$0xff]  ;;  %v895_v1 = vld [vmem:[%s5050_s3] sm:$0xff]  ;;  %vm923_vm0 = vcmask 1043456   ;;  %p626_p6 = scmp.lt.s32.totalorder %s3938_s28, 1  ;;  %s5110_s17 = sld [smem:[#allocation17_spill]] }
  0x55   : > { %703 = vmatpush.bf16.msra.mxu0 %v3567_v0  ;;  %v799_v2 = vld [vmem:[%s4043_s29] sm:$0xff]  ;;  %v800_v3 = vld [vmem:[%s4043_s29 + $0x8] sm:$0xff]  ;;  %v900_v4 = vperm.slane %v895_v1, 1  ;;  %v902_v5 = vperm.slane %v895_v1, 3  ;;  %v904_v6 = vperm.slane %v895_v1, 5  ;;  %v906_v7 = vperm.slane %v895_v1, 7 }
  0x56   : > { %v896_v8 = vld [vmem:[%s5050_s3 + $0x8] sm:$0xff]  ;;  %v899_v9 = vperm.slane %v895_v1, 0  ;;  %v901_v10 = vperm.slane %v895_v1, 2  ;;  %v903_v11 = vperm.slane %v895_v1, 4  ;;  %v905_v12 = vperm.slane %v895_v1, 6  ;;  %v801_v33 = vld [vmem:[%s4043_s29 + $0x10] sm:$0xff] }
  0x57   : > { %v831_v13 = vunpack.c.l.bf16 %v799_v2  ;;  %v832_v14 = vunpack.c.h.bf16 %v799_v2  ;;  %v833_v15 = vunpack.c.l.bf16 %v800_v3  ;;  %v915_v16 = vrot.slane %v900_v4, 4  ;;  %v802_v38 = vld [vmem:[%s4043_s29 + $0x18] sm:$0xff]  ;;  %v804_v2 = vld [vmem:[%s4043_s29 + $0x28] sm:$0xff]  ;;  %v803_v4 = vld [vmem:[%s4043_s29 + $0x20] sm:$0xff]  ;;  %s5112_s13 = sld [smem:[#allocation21_spill]]  ;;  %s3553_s18 = sshll.u32 %s3938_s28, 3 }
  0x58   : > { %v916_v17 = vrot.slane %v902_v5, 4  ;;  %v917_v18 = vrot.slane %v904_v6, 4  ;;  %v918_v19 = vrot.slane %v906_v7, 4  ;;  %v834_v20 = vunpack.c.h.bf16 %v800_v3  ;;  %s5115_s1 = sld [smem:[#allocation22_spill]]  ;;  %s3320_s20 = sshll.u32 %s4039_s0, 3 }
  0x59   : > { %v908_v21 = vperm.slane %v896_v8, 1  ;;  %v4068_v22 = vsel %vm923_vm0, %v899_v9, %v915_v16  ;;  %v910_v26 = vperm.slane %v896_v8, 3  ;;  %v912_v27 = vperm.slane %v896_v8, 5  ;;  %s5116_s15 = sld [smem:[#allocation24_spill]] }
  0x5a   : > { %v4071_v23 = vsel %vm923_vm0, %v901_v10, %v916_v17  ;;  %v4074_v24 = vsel %vm923_vm0, %v903_v11, %v917_v18  ;;  %v4077_v25 = vsel %vm923_vm0, %v905_v12, %v918_v19  ;;  %v940_v28 = vmul.f32 %v4068_v22, %v831_v13  ;;  %s5118_s14 = sld [smem:[#allocation26_spill]] }
  0x5b   : > { %v941_v29 = vmul.f32 %v4071_v23, %v832_v14  ;;  %v942_v30 = vmul.f32 %v4074_v24, %v833_v15  ;;  %v914_v31 = vperm.slane %v896_v8, 7  ;;  %v943_v32 = vmul.f32 %v4077_v25, %v834_v20 }
  0x5c   : > { %v907_v34 = vperm.slane %v896_v8, 0  ;;  %v919_v35 = vrot.slane %v908_v21, 4  ;;  %1068 = vst [vmem:[#allocation1] ss:$2 sm:$0xff] %v940_v28  ;;  %v909_v36 = vperm.slane %v896_v8, 2  ;;  %v920_v37 = vrot.slane %v910_v26, 4 }
  0x5d   : > { %1070 = vst [vmem:[#allocation1 + $0x10] ss:$2 sm:$0xff] %v941_v29  ;;  %v911_v39 = vperm.slane %v896_v8, 4  ;;  %v921_v40 = vrot.slane %v912_v27, 4  ;;  %v835_v41 = vunpack.c.l.bf16 %v801_v33  ;;  %v913_v42 = vperm.slane %v896_v8, 6 }
  0x5e   : > { %1072 = vst [vmem:[#allocation1 + $0x20] ss:$2 sm:$0xff] %v942_v30  ;;  %v922_v43 = vrot.slane %v914_v31, 4  ;;  %v836_v44 = vunpack.c.h.bf16 %v801_v33  ;;  %v4086_v45 = vsel %vm923_vm0, %v907_v34, %v919_v35  ;;  %v837_v46 = vunpack.c.l.bf16 %v802_v38  ;;  %v805_v35 = vld [vmem:[%s4043_s29 + $0x30] sm:$0xff] }
  0x5f   : > { %1074 = vst [vmem:[#allocation1 + $0x30] ss:$2 sm:$0xff] %v943_v32  ;;  %v4089_v47 = vsel %vm923_vm0, %v909_v36, %v920_v37  ;;  %v838_v48 = vunpack.c.h.bf16 %v802_v38  ;;  %v4092_v49 = vsel %vm923_vm0, %v911_v39, %v921_v40  ;;  %v944_v51 = vmul.f32 %v4086_v45, %v835_v41  ;;  %v806_v38 = vld [vmem:[%s4043_s29 + $0x38] sm:$0xff] }
  0x60   : > { %v4095_v50 = vsel %vm923_vm0, %v913_v42, %v922_v43  ;;  %v945_v54 = vmul.f32 %v4089_v47, %v836_v44  ;;  %v946_v57 = vmul.f32 %v4092_v49, %v837_v46  ;;  %v840_v6 = vunpack.c.h.bf16 %v803_v4  ;;  %s3196_s23 = scalar_lea.hbm %s5118_s14, %s3553_s18  ;;  %s3772_s19 = scalar_lea.hbm %s5118_s14, 16 }
  0x61   : > { %v947_v60 = vmul.f32 %v4095_v50, %v838_v48  ;;  %v841_v8 = vunpack.c.l.bf16 %v804_v2  ;;  %v842_v10 = vunpack.c.h.bf16 %v804_v2  ;;  %v839_v12 = vunpack.c.l.bf16 %v803_v4 }
  0x62   : > { %v949_v14 = vmul.f32 %v4071_v23, %v840_v6  ;;  %v843_v40 = vunpack.c.l.bf16 %v805_v35  ;;  %v844_v42 = vunpack.c.h.bf16 %v805_v35  ;;  %v845_v44 = vunpack.c.l.bf16 %v806_v38 }
  0x63   : > { %v1075_v52 = vld.sshfl [vmem:[#allocation1] sm:$0xff pattern:$0x75316420]  ;;  %v1076_v53 = vld.sshfl [vmem:[#allocation1 + $0x8] sm:$0xff pattern:$0x75316420]  ;;  %v950_v18 = vmul.f32 %v4074_v24, %v841_v8  ;;  %v951_v21 = vmul.f32 %v4077_v25, %v842_v10  ;;  %v948_v30 = vmul.f32 %v4068_v22, %v839_v12  ;;  %v846_v48 = vunpack.c.h.bf16 %v806_v38 }
  0x64   : > { %v1077_v55 = vld.sshfl [vmem:[#allocation1 + $0x10] sm:$0xff pattern:$0x75316420]  ;;  %v1078_v56 = vld.sshfl [vmem:[#allocation1 + $0x18] sm:$0xff pattern:$0x75316420] }
  0x65   : > { %v1079_v58 = vld.sshfl [vmem:[#allocation1 + $0x20] sm:$0xff pattern:$0x75316420]  ;;  %v1080_v59 = vld.sshfl [vmem:[#allocation1 + $0x28] sm:$0xff pattern:$0x75316420]  ;;  %v955_v2 = vmul.f32 %v4095_v50, %v846_v48 }
  0x66   : > { %v1081_v61 = vld.sshfl [vmem:[#allocation1 + $0x30] sm:$0xff pattern:$0x75316420]  ;;  %v1082_v62 = vld.sshfl [vmem:[#allocation1 + $0x38] sm:$0xff pattern:$0x75316420] }
  0x67   : > { %1083 = vst [vmem:[#allocation1] ss:$2 sm:$0xff] %v944_v51  ;;  %v1391_v63 = vsel %vm923_vm0, %v1075_v52, 0.0  ;;  %v1392_v0 = vsel %vm923_vm0, %v1076_v53, 0.0  ;;  %v1394_v1 = vsel %vm923_vm0, %v1077_v55, 0.0  ;;  %v1396_v5 = vsel %vm923_vm0, %v1078_v56, 0.0 }
  0x68   : > { %1084 = vst [vmem:[#allocation1 + $0x10] ss:$2 sm:$0xff] %v945_v54  ;;  %v1393_v3 = vadd.f32 %v1392_v0, %v1391_v63  ;;  %v1398_v9 = vsel %vm923_vm0, %v1079_v58, 0.0  ;;  %v1400_v13 = vsel %vm923_vm0, %v1080_v59, 0.0  ;;  %v1402_v16 = vsel %vm923_vm0, %v1081_v61, 0.0  ;;  %v807_v61 = vld [vmem:[%s4043_s29 + $0x40] sm:$0xff] }
  0x69   : > { %1085 = vst [vmem:[#allocation1 + $0x20] ss:$2 sm:$0xff] %v946_v57  ;;  %v1404_v17 = vsel %vm923_vm0, %v1082_v62, 0.0  ;;  %v952_v54 = vmul.f32 %v4086_v45, %v843_v40  ;;  %v953_v58 = vmul.f32 %v4089_v47, %v844_v42  ;;  %v954_v62 = vmul.f32 %v4092_v49, %v845_v44 }
  0x6a   : > { %1086 = vst [vmem:[#allocation1 + $0x30] ss:$2 sm:$0xff] %v947_v60  ;;  %v1395_v7 = vadd.f32 %v1394_v1, %v1393_v3  ;;  %vm2549_vm1 = vcmask 1041409   ;;  %vm2568_vm2 = vcmask 1041408   ;;  %vm2551_vm3 = vcmask 1042434  }
  0x6b   : > { %vm2553_vm4 = vcmask 1043459   ;;  %vm2555_vm5 = vcmask 1044484   ;;  %vm2557_vm6 = vcmask 1045509   ;;  %vm2559_vm7 = vcmask 1046534  }
  0x6c   : > { %v1397_v11 = vadd.f32 %v1396_v5, %v1395_v7  ;;  %v808_v7 = vld [vmem:[%s4043_s29 + $0x48] sm:$0xff]  ;;  %vm2561_vm8 = vcmask 1047559   ;;  %vm2564_vm9 = vcmask 31744   ;;  %vm2847_vm10 = vcmask 523264  }
  0x6e   : > { %v1399_v15 = vadd.f32 %v1398_v9, %v1397_v11  ;;  %v1087_v26 = vld.sshfl [vmem:[#allocation1] sm:$0xff pattern:$0x75316420]  ;;  %v1088_v33 = vld.sshfl [vmem:[#allocation1 + $0x8] sm:$0xff pattern:$0x75316420]  ;;  %v847_v9 = vunpack.c.l.bf16 %v807_v61  ;;  %v848_v11 = vunpack.c.h.bf16 %v807_v61 }
  0x6f   : > { %v1089_v19 = vld.sshfl [vmem:[#allocation1 + $0x10] sm:$0xff pattern:$0x75316420]  ;;  %v1090_v20 = vld.sshfl [vmem:[#allocation1 + $0x18] sm:$0xff pattern:$0x75316420] }
  0x70   : > { %v1091_v27 = vld.sshfl [vmem:[#allocation1 + $0x20] sm:$0xff pattern:$0x75316420]  ;;  %v1092_v28 = vld.sshfl [vmem:[#allocation1 + $0x28] sm:$0xff pattern:$0x75316420]  ;;  %v1401_v29 = vadd.f32 %v1400_v13, %v1399_v15  ;;  %v849_v13 = vunpack.c.l.bf16 %v808_v7 }
  0x71   : > { %v1093_v31 = vld.sshfl [vmem:[#allocation1 + $0x30] sm:$0xff pattern:$0x75316420]  ;;  %v1094_v32 = vld.sshfl [vmem:[#allocation1 + $0x38] sm:$0xff pattern:$0x75316420] }
  0x72   : > { %1096 = vst [vmem:[#allocation1 + $0x10] ss:$2 sm:$0xff] %v949_v14  ;;  %v1403_v34 = vadd.f32 %v1402_v16, %v1401_v29  ;;  %v1406_v36 = vsel %vm923_vm0, %v1087_v26, 0.0  ;;  %v1408_v39 = vsel %vm923_vm0, %v1088_v33, 0.0  ;;  %v1410_v43 = vsel %vm923_vm0, %v1089_v19, 0.0  ;;  %v810_v33 = vld [vmem:[%s4043_s29 + $0x58] sm:$0xff] }
  0x73   : > { %1097 = vst [vmem:[#allocation1 + $0x20] ss:$2 sm:$0xff] %v950_v18  ;;  %v1412_v52 = vsel %vm923_vm0, %v1090_v20, 0.0  ;;  %v1414_v53 = vsel %vm923_vm0, %v1091_v27, 0.0  ;;  %v1416_v4 = vsel %vm923_vm0, %v1092_v28, 0.0  ;;  %v1418_v6 = vsel %vm923_vm0, %v1093_v31, 0.0 }
  0x74   : > { %1098 = vst [vmem:[#allocation1 + $0x30] ss:$2 sm:$0xff] %v951_v21  ;;  %v1405_v37 = vadd.f32 %v1404_v17, %v1403_v34  ;;  %v1420_v10 = vsel %vm923_vm0, %v1094_v32, 0.0  ;;  %v850_v14 = vunpack.c.h.bf16 %v808_v7  ;;  %v956_v16 = vmul.f32 %v4068_v22, %v847_v9  ;;  %v809_v31 = vld [vmem:[%s4043_s29 + $0x50] sm:$0xff] }
  0x75   : > { %1095 = vst [vmem:[#allocation1] ss:$2 sm:$0xff] %v948_v30  ;;  %v957_v18 = vmul.f32 %v4071_v23, %v848_v11  ;;  %v958_v21 = vmul.f32 %v4074_v24, %v849_v13  ;;  %v851_v34 = vunpack.c.l.bf16 %v809_v31  ;;  %v852_v35 = vunpack.c.h.bf16 %v809_v31 }
  0x76   : > { %v1407_v41 = vadd.f32 %v1406_v36, %v1405_v37  ;;  %v959_v28 = vmul.f32 %v4077_v25, %v850_v14  ;;  %v853_v36 = vunpack.c.l.bf16 %v810_v33  ;;  %v854_v37 = vunpack.c.h.bf16 %v810_v33 }
  0x77   : > { %v960_v38 = vmul.f32 %v4086_v45, %v851_v34 }
  0x78   : > { %v1409_v46 = vadd.f32 %v1408_v39, %v1407_v41  ;;  %v961_v41 = vmul.f32 %v4089_v47, %v852_v35  ;;  %v962_v44 = vmul.f32 %v4092_v49, %v853_v36 }
  0x79   : > { %v4120_v51 = vld.sshfl [vmem:[#allocation1 + $0x10] sm:$0xff pattern:$0x75316420]  ;;  %v4125_v55 = vld.sshfl [vmem:[#allocation1 + $0x18] sm:$0xff pattern:$0x75316420] }
  0x7a   : > { %v4127_v56 = vld.sshfl [vmem:[#allocation1 + $0x20] sm:$0xff pattern:$0x75316420]  ;;  %v1411_v57 = vadd.f32 %v1410_v43, %v1409_v46  ;;  %v4130_v59 = vld.sshfl [vmem:[#allocation1 + $0x28] sm:$0xff pattern:$0x75316420] }
  0x7b   : > { %v4132_v60 = vld.sshfl [vmem:[#allocation1 + $0x30] sm:$0xff pattern:$0x75316420]  ;;  %v4141_v3 = vld.sshfl [vmem:[#allocation1 + $0x38] sm:$0xff pattern:$0x75316420] }
  0x7c   : > { %v1413_v63 = vadd.f32 %v1412_v52, %v1411_v57  ;;  %v4136_v0 = vld.sshfl [vmem:[#allocation1] sm:$0xff pattern:$0x75316420]  ;;  %v4138_v1 = vld.sshfl [vmem:[#allocation1 + $0x8] sm:$0xff pattern:$0x75316420]  ;;  %v963_v52 = vmul.f32 %v4095_v50, %v854_v37 }
  0x7d   : > { %1107 = vst [vmem:[#allocation1] ss:$2 sm:$0xff] %v952_v54 }
  0x7e   : > { %v1415_v5 = vadd.f32 %v1414_v53, %v1413_v63  ;;  %1108 = vst [vmem:[#allocation1 + $0x10] ss:$2 sm:$0xff] %v953_v58 }
  0x7f   : > { %1109 = vst [vmem:[#allocation1 + $0x20] ss:$2 sm:$0xff] %v954_v62  ;;  %v812_v62 = vld [vmem:[%s4043_s29 + $0x68] sm:$0xff] }
  0x80   : > { %v1417_v8 = vadd.f32 %v1416_v4, %v1415_v5  ;;  %1110 = vst [vmem:[#allocation1 + $0x30] ss:$2 sm:$0xff] %v955_v2  ;;  %v3566_v2 = vld [vmem:[%s5054_s7 + $0x30] sm:$0xff]  ;;  %v811_v4 = vld [vmem:[%s4043_s29 + $0x60] sm:$0xff]  ;;  %v857_v9 = vunpack.c.l.bf16 %v812_v62  ;;  %v858_v11 = vunpack.c.h.bf16 %v812_v62 }
  0x81   : > { %704 = vmatpush.bf16.msra.mxu0 %v3566_v2  ;;  %v855_v13 = vunpack.c.l.bf16 %v811_v4 }
  0x82   : > { %v1419_v12 = vadd.f32 %v1418_v6, %v1417_v8  ;;  %v856_v6 = vunpack.c.h.bf16 %v811_v4  ;;  %v3565_v8 = vld [vmem:[%s5054_s7 + $0x28] sm:$0xff]  ;;  %v967_v34 = vmul.f32 %v4077_v25, %v858_v11 }
  0x84   : > { %v1421_v15 = vadd.f32 %v1420_v10, %v1419_v12  ;;  %v4148_v17 = vld.sshfl [vmem:[#allocation1] sm:$0xff pattern:$0x75316420]  ;;  %v4151_v19 = vld.sshfl [vmem:[#allocation1 + $0x8] sm:$0xff pattern:$0x75316420] }
  0x85   : > { %v4153_v20 = vld.sshfl [vmem:[#allocation1 + $0x10] sm:$0xff pattern:$0x75316420]  ;;  %v4156_v26 = vld.sshfl [vmem:[#allocation1 + $0x18] sm:$0xff pattern:$0x75316420]  ;;  %705 = vmatpush.bf16.msra.mxu0 %v3565_v8 }
  0x86   : > { %1422 = vadd.xlane.f32.xlu0 %v1421_v15  ;;  %v4158_v27 = vld.sshfl [vmem:[#allocation1 + $0x20] sm:$0xff pattern:$0x75316420]  ;;  %v4161_v29 = vld.sshfl [vmem:[#allocation1 + $0x28] sm:$0xff pattern:$0x75316420]  ;;  %v965_v15 = vmul.f32 %v4071_v23, %v856_v6 }
  0x87   : > { %v4163_v30 = vld.sshfl [vmem:[#allocation1 + $0x30] sm:$0xff pattern:$0x75316420]  ;;  %v4166_v32 = vld.sshfl [vmem:[#allocation1 + $0x38] sm:$0xff pattern:$0x75316420] }
  0x88   : > { %1119 = vst [vmem:[#allocation1] ss:$2 sm:$0xff] %v956_v16 }
  0x89   : > { %1120 = vst [vmem:[#allocation1 + $0x10] ss:$2 sm:$0xff] %v957_v18 }
  0x8a   : > { %1121 = vst [vmem:[#allocation1 + $0x20] ss:$2 sm:$0xff] %v958_v21 }
  0x8b   : > { %1122 = vst [vmem:[#allocation1 + $0x30] ss:$2 sm:$0xff] %v959_v28  ;;  %v966_v28 = vmul.f32 %v4074_v24, %v857_v9 }
  0x8f   : > { %v1123_v39 = vld.sshfl [vmem:[#allocation1] sm:$0xff pattern:$0x75316420]  ;;  %v1124_v40 = vld.sshfl [vmem:[#allocation1 + $0x8] sm:$0xff pattern:$0x75316420] }
  0x90   : > { %v1125_v42 = vld.sshfl [vmem:[#allocation1 + $0x10] sm:$0xff pattern:$0x75316420]  ;;  %v1126_v43 = vld.sshfl [vmem:[#allocation1 + $0x18] sm:$0xff pattern:$0x75316420] }
  0x91   : > { %v1127_v46 = vld.sshfl [vmem:[#allocation1 + $0x20] sm:$0xff pattern:$0x75316420]  ;;  %v1128_v48 = vld.sshfl [vmem:[#allocation1 + $0x28] sm:$0xff pattern:$0x75316420] }
  0x92   : > { %v1129_v53 = vld.sshfl [vmem:[#allocation1 + $0x30] sm:$0xff pattern:$0x75316420]  ;;  %v1130_v54 = vld.sshfl [vmem:[#allocation1 + $0x38] sm:$0xff pattern:$0x75316420] }
  0x93   : > { %1131 = vst [vmem:[#allocation1] ss:$2 sm:$0xff] %v960_v38  ;;  %v1457_v57 = vsel %vm923_vm0, %v1123_v39, 0.0  ;;  %v1458_v58 = vsel %vm923_vm0, %v1124_v40, 0.0  ;;  %v1460_v61 = vsel %vm923_vm0, %v1125_v42, 0.0  ;;  %v1462_v5 = vsel %vm923_vm0, %v1126_v43, 0.0 }
  0x94   : > { %1132 = vst [vmem:[#allocation1 + $0x10] ss:$2 sm:$0xff] %v961_v41  ;;  %v1459_v63 = vadd.f32 %v1458_v58, %v1457_v57  ;;  %v1464_v10 = vsel %vm923_vm0, %v1127_v46, 0.0  ;;  %v1466_v14 = vsel %vm923_vm0, %v1128_v48, 0.0  ;;  %v1468_v18 = vsel %vm923_vm0, %v1129_v53, 0.0  ;;  %v813_v42 = vld [vmem:[%s4043_s29 + $0x70] sm:$0xff] }
  0x95   : > { %1133 = vst [vmem:[#allocation1 + $0x20] ss:$2 sm:$0xff] %v962_v44  ;;  %v1470_v21 = vsel %vm923_vm0, %v1130_v54, 0.0  ;;  %v964_v39 = vmul.f32 %v4068_v22, %v855_v13  ;;  %v814_v48 = vld [vmem:[%s4043_s29 + $0x78] sm:$0xff]  ;;  %v859_v53 = vunpack.c.l.bf16 %v813_v42  ;;  %v860_v57 = vunpack.c.h.bf16 %v813_v42 }
  0x96   : > { %1134 = vst [vmem:[#allocation1 + $0x30] ss:$2 sm:$0xff] %v963_v52  ;;  %v1461_v7 = vadd.f32 %v1460_v61, %v1459_v63  ;;  %v861_v61 = vunpack.c.l.bf16 %v814_v48  ;;  %v862_v63 = vunpack.c.h.bf16 %v814_v48 }
  0x97   : > { %v968_v4 = vmul.f32 %v4086_v45, %v859_v53  ;;  %v969_v8 = vmul.f32 %v4089_v47, %v860_v57 }
  0x98   : > { %v1463_v12 = vadd.f32 %v1462_v5, %v1461_v7  ;;  %v970_v13 = vmul.f32 %v4092_v49, %v861_v61 }
  0x9a   : > { %v1465_v16 = vadd.f32 %v1464_v10, %v1463_v12  ;;  %v1135_v35 = vld.sshfl [vmem:[#allocation1] sm:$0xff pattern:$0x75316420]  ;;  %v1136_v43 = vld.sshfl [vmem:[#allocation1 + $0x8] sm:$0xff pattern:$0x75316420] }
  0x9b   : > { %v1137_v31 = vld.sshfl [vmem:[#allocation1 + $0x10] sm:$0xff pattern:$0x75316420]  ;;  %v1138_v33 = vld.sshfl [vmem:[#allocation1 + $0x18] sm:$0xff pattern:$0x75316420] }
  0x9c   : > { %v1139_v36 = vld.sshfl [vmem:[#allocation1 + $0x20] sm:$0xff pattern:$0x75316420]  ;;  %v1140_v37 = vld.sshfl [vmem:[#allocation1 + $0x28] sm:$0xff pattern:$0x75316420]  ;;  %v1467_v38 = vadd.f32 %v1466_v14, %v1465_v16  ;;  %v971_v16 = vmul.f32 %v4095_v50, %v862_v63 }
  0x9d   : > { %v1141_v40 = vld.sshfl [vmem:[#allocation1 + $0x30] sm:$0xff pattern:$0x75316420]  ;;  %v1142_v41 = vld.sshfl [vmem:[#allocation1 + $0x38] sm:$0xff pattern:$0x75316420] }
  0x9e   : > { %1144 = vst [vmem:[#allocation1 + $0x10] ss:$2 sm:$0xff] %v965_v15  ;;  %v1469_v44 = vadd.f32 %v1468_v18, %v1467_v38  ;;  %v1472_v46 = vsel %vm923_vm0, %v1135_v35, 0.0  ;;  %v1474_v54 = vsel %vm923_vm0, %v1136_v43, 0.0  ;;  %v1476_v62 = vsel %vm923_vm0, %v1137_v31, 0.0  ;;  %v815_v12 = vld [vmem:[%s4043_s29 + $0x80] sm:$0xff] }
  0x9f   : > { %1145 = vst [vmem:[#allocation1 + $0x20] ss:$2 sm:$0xff] %v966_v28  ;;  %v1478_v6 = vsel %vm923_vm0, %v1138_v33, 0.0  ;;  %v1480_v7 = vsel %vm923_vm0, %v1139_v36, 0.0  ;;  %v1482_v33 = vsel %vm923_vm0, %v1140_v37, 0.0  ;;  %v816_v35 = vld [vmem:[%s4043_s29 + $0x88] sm:$0xff]  ;;  %v863_v38 = vunpack.c.l.bf16 %v815_v12 }
  0xa0   : > { %1146 = vst [vmem:[#allocation1 + $0x30] ss:$2 sm:$0xff] %v967_v34  ;;  %v1471_v52 = vadd.f32 %v1470_v21, %v1469_v44  ;;  %v1484_v36 = vsel %vm923_vm0, %v1141_v40, 0.0  ;;  %v864_v42 = vunpack.c.h.bf16 %v815_v12  ;;  %v1486_v43 = vsel %vm923_vm0, %v1142_v41, 0.0 }
  0xa1   : > { %1143 = vst [vmem:[#allocation1] ss:$2 sm:$0xff] %v964_v39  ;;  %v865_v44 = vunpack.c.l.bf16 %v816_v35  ;;  %v866_v48 = vunpack.c.h.bf16 %v816_v35 }
  0xa2   : > { %v1473_v58 = vadd.f32 %v1472_v46, %v1471_v52  ;;  %v972_v52 = vmul.f32 %v4068_v22, %v863_v38 }
  0xa4   : > { %v1475_v2 = vadd.f32 %v1474_v54, %v1473_v58  ;;  %v973_v54 = vmul.f32 %v4071_v23, %v864_v42  ;;  %v974_v58 = vmul.f32 %v4074_v24, %v865_v44 }
  0xa5   : > { %v4199_v5 = vld.sshfl [vmem:[#allocation1 + $0x10] sm:$0xff pattern:$0x75316420]  ;;  %v4204_v9 = vld.sshfl [vmem:[#allocation1 + $0x18] sm:$0xff pattern:$0x75316420] }
  0xa6   : > { %v4206_v10 = vld.sshfl [vmem:[#allocation1 + $0x20] sm:$0xff pattern:$0x75316420]  ;;  %v1477_v11 = vadd.f32 %v1476_v62, %v1475_v2  ;;  %v4210_v14 = vld.sshfl [vmem:[#allocation1 + $0x28] sm:$0xff pattern:$0x75316420]  ;;  %v975_v62 = vmul.f32 %v4077_v25, %v866_v48 }
  0xa7   : > { %v4212_v15 = vld.sshfl [vmem:[#allocation1 + $0x30] sm:$0xff pattern:$0x75316420]  ;;  %v4219_v31 = vld.sshfl [vmem:[#allocation1 + $0x38] sm:$0xff pattern:$0x75316420] }
  0xa8   : > { %v1479_v18 = vadd.f32 %v1478_v6, %v1477_v11  ;;  %v4215_v21 = vld.sshfl [vmem:[#allocation1] sm:$0xff pattern:$0x75316420]  ;;  %v4217_v28 = vld.sshfl [vmem:[#allocation1 + $0x8] sm:$0xff pattern:$0x75316420] }
  0xa9   : > { %1155 = vst [vmem:[#allocation1] ss:$2 sm:$0xff] %v968_v4  ;;  %v817_v4 = vld [vmem:[%s4043_s29 + $0x90] sm:$0xff] }
  0xaa   : > { %v1481_v34 = vadd.f32 %v1480_v7, %v1479_v18  ;;  %1156 = vst [vmem:[#allocation1 + $0x10] ss:$2 sm:$0xff] %v969_v8  ;;  %v818_v7 = vld [vmem:[%s4043_s29 + $0x98] sm:$0xff]  ;;  %v867_v8 = vunpack.c.l.bf16 %v817_v4  ;;  %v868_v11 = vunpack.c.h.bf16 %v817_v4 }
  0xab   : > { %1157 = vst [vmem:[#allocation1 + $0x20] ss:$2 sm:$0xff] %v970_v13  ;;  %v869_v12 = vunpack.c.l.bf16 %v818_v7  ;;  %v870_v13 = vunpack.c.h.bf16 %v818_v7 }
  0xac   : > { %v1483_v39 = vadd.f32 %v1482_v33, %v1481_v34  ;;  %1158 = vst [vmem:[#allocation1 + $0x30] ss:$2 sm:$0xff] %v971_v16  ;;  %v819_v16 = vld [vmem:[%s4043_s29 + $0xa0] sm:$0xff]  ;;  %v976_v18 = vmul.f32 %v4086_v45, %v867_v8  ;;  %v977_v35 = vmul.f32 %v4089_v47, %v868_v11  ;;  %v1424_v8 = vsel %vm923_vm0, %v4136_v0, 0.0 }
  0xad   : > { %v979_v44 = vmul.f32 %v4095_v50, %v870_v13  ;;  %v1425_v11 = vsel %vm923_vm0, %v4138_v1, 0.0  ;;  %v4270_v1 = vld [vmem:[%s4043_s29 + $0xb8] sm:$0xff] }
  0xae   : > { %v1485_v46 = vadd.f32 %v1484_v36, %v1483_v39  ;;  %v978_v39 = vmul.f32 %v4092_v49, %v869_v12  ;;  %v1427_v12 = vsel %vm923_vm0, %v4120_v51, 0.0 }
  0xb0   : > { %v1487_v37 = vadd.f32 %v1486_v43, %v1485_v46  ;;  %v4226_v53 = vld.sshfl [vmem:[#allocation1] sm:$0xff pattern:$0x75316420]  ;;  %v4229_v40 = vld.sshfl [vmem:[#allocation1 + $0x8] sm:$0xff pattern:$0x75316420] }
  0xb1   : > { %v4231_v57 = vld.sshfl [vmem:[#allocation1 + $0x10] sm:$0xff pattern:$0x75316420]  ;;  %v4234_v41 = vld.sshfl [vmem:[#allocation1 + $0x18] sm:$0xff pattern:$0x75316420] }
  0xb2   : > { %1488 = vadd.xlane.f32.xlu1 %v1487_v37  ;;  %v4236_v61 = vld.sshfl [vmem:[#allocation1 + $0x20] sm:$0xff pattern:$0x75316420]  ;;  %v4239_v63 = vld.sshfl [vmem:[#allocation1 + $0x28] sm:$0xff pattern:$0x75316420] }
  0xb3   : > { %v4241_v2 = vld.sshfl [vmem:[#allocation1 + $0x30] sm:$0xff pattern:$0x75316420]  ;;  %v4244_v6 = vld.sshfl [vmem:[#allocation1 + $0x38] sm:$0xff pattern:$0x75316420] }
  0xb4   : > { %1167 = vst [vmem:[#allocation1] ss:$2 sm:$0xff] %v972_v52 }
  0xb5   : > { %1168 = vst [vmem:[#allocation1 + $0x10] ss:$2 sm:$0xff] %v973_v54 }
  0xb6   : > { %1169 = vst [vmem:[#allocation1 + $0x20] ss:$2 sm:$0xff] %v974_v58  ;;  %v820_v58 = vld [vmem:[%s4043_s29 + $0xa8] sm:$0xff] }
  0xb7   : > { %1170 = vst [vmem:[#allocation1 + $0x30] ss:$2 sm:$0xff] %v975_v62  ;;  %v871_v62 = vunpack.c.l.bf16 %v819_v16 }
  0xb9   : > { %v980_v51 = vmul.f32 %v4068_v22, %v871_v62 }
  0xbb   : > { %v1171_v33 = vld.sshfl [vmem:[#allocation1] sm:$0xff pattern:$0x75316420]  ;;  %v1172_v34 = vld.sshfl [vmem:[#allocation1 + $0x8] sm:$0xff pattern:$0x75316420] }
  0xbc   : > { %v1173_v36 = vld.sshfl [vmem:[#allocation1 + $0x10] sm:$0xff pattern:$0x75316420]  ;;  %v1174_v38 = vld.sshfl [vmem:[#allocation1 + $0x18] sm:$0xff pattern:$0x75316420] }
  0xbd   : > { %v1175_v42 = vld.sshfl [vmem:[#allocation1 + $0x20] sm:$0xff pattern:$0x75316420]  ;;  %v1176_v43 = vld.sshfl [vmem:[#allocation1 + $0x28] sm:$0xff pattern:$0x75316420] }
  0xbe   : > { %v1177_v46 = vld.sshfl [vmem:[#allocation1 + $0x30] sm:$0xff pattern:$0x75316420]  ;;  %v1178_v48 = vld.sshfl [vmem:[#allocation1 + $0x38] sm:$0xff pattern:$0x75316420] }
  0xbf   : > { %1179 = vst [vmem:[#allocation1] ss:$2 sm:$0xff] %v976_v18  ;;  %v1523_v52 = vsel %vm923_vm0, %v1171_v33, 0.0  ;;  %v1524_v37 = vsel %vm923_vm0, %v1172_v34, 0.0  ;;  %v1526_v54 = vsel %vm923_vm0, %v1173_v36, 0.0  ;;  %v1528_v7 = vsel %vm923_vm0, %v1174_v38, 0.0 }
  0xc0   : > { %1180 = vst [vmem:[#allocation1 + $0x10] ss:$2 sm:$0xff] %v977_v35  ;;  %v1525_v4 = vadd.f32 %v1524_v37, %v1523_v52  ;;  %v1426_v18 = vadd.f32 %v1425_v11, %v1424_v8  ;;  %v872_v33 = vunpack.c.h.bf16 %v819_v16  ;;  %v1530_v34 = vsel %vm923_vm0, %v1175_v42, 0.0  ;;  %v4267_v52 = vld [vmem:[%s4043_s29 + $0xb0] sm:$0xff]  ;;  %v4278_v42 = vld [vmem:[%s4043_s29 + $0xc0] sm:$0xff] }
  0xc1   : > { %1181 = vst [vmem:[#allocation1 + $0x20] ss:$2 sm:$0xff] %v978_v39  ;;  %v1429_v35 = vsel %vm923_vm0, %v4125_v55, 0.0  ;;  %v873_v36 = vunpack.c.l.bf16 %v820_v58  ;;  %v874_v38 = vunpack.c.h.bf16 %v820_v58  ;;  %v1534_v37 = vsel %vm923_vm0, %v1177_v46, 0.0 }
  0xc2   : > { %1182 = vst [vmem:[#allocation1 + $0x30] ss:$2 sm:$0xff] %v979_v44  ;;  %v1527_v13 = vadd.f32 %v1526_v54, %v1525_v4  ;;  %v1428_v0 = vadd.f32 %v1427_v12, %v1426_v18  ;;  %v1532_v44 = vsel %vm923_vm0, %v1176_v43, 0.0  ;;  %v1431_v16 = vsel %vm923_vm0, %v4127_v56, 0.0 }
  0xc3   : > { %v1536_v58 = vsel %vm923_vm0, %v1178_v48, 0.0  ;;  %v981_v8 = vmul.f32 %v4071_v23, %v872_v33  ;;  %v982_v43 = vmul.f32 %v4074_v24, %v873_v36  ;;  %v875_v18 = vunpack.c.l.bf16 %v4267_v52 }
  0xc4   : > { %v1529_v39 = vadd.f32 %v1528_v7, %v1527_v13  ;;  %v1430_v4 = vadd.f32 %v1429_v35, %v1428_v0  ;;  %v1433_v7 = vsel %vm923_vm0, %v4130_v59, 0.0  ;;  %v876_v35 = vunpack.c.h.bf16 %v4267_v52 }
  0xc5   : > { %v877_v59 = vunpack.c.l.bf16 %v4270_v1  ;;  %v878_v33 = vunpack.c.h.bf16 %v4270_v1  ;;  %v1437_v1 = vsel %vm923_vm0, %v4141_v3, 0.0 }
  0xc6   : > { %v1183_v55 = vld.sshfl [vmem:[#allocation1] sm:$0xff pattern:$0x75316420]  ;;  %v1531_v54 = vadd.f32 %v1530_v34, %v1529_v39  ;;  %v1184_v62 = vld.sshfl [vmem:[#allocation1 + $0x8] sm:$0xff pattern:$0x75316420]  ;;  %v1432_v56 = vadd.f32 %v1431_v16, %v1430_v4  ;;  %v983_v34 = vmul.f32 %v4077_v25, %v874_v38  ;;  %v880_v16 = vunpack.c.h.bf16 %v4278_v42 }
  0xc7   : > { %v1185_v11 = vld.sshfl [vmem:[#allocation1 + $0x10] sm:$0xff pattern:$0x75316420]  ;;  %v1186_v46 = vld.sshfl [vmem:[#allocation1 + $0x18] sm:$0xff pattern:$0x75316420] }
  0xc8   : > { %v1187_v12 = vld.sshfl [vmem:[#allocation1 + $0x20] sm:$0xff pattern:$0x75316420]  ;;  %v1533_v13 = vadd.f32 %v1532_v44, %v1531_v54  ;;  %v1188_v39 = vld.sshfl [vmem:[#allocation1 + $0x28] sm:$0xff pattern:$0x75316420]  ;;  %v879_v44 = vunpack.c.l.bf16 %v4278_v42  ;;  %v1434_v52 = vadd.f32 %v1433_v7, %v1432_v56 }
  0xc9   : > { %v4287_v48 = vld.sshfl [vmem:[#allocation1 + $0x30] sm:$0xff pattern:$0x75316420]  ;;  %v4292_v0 = vld.sshfl [vmem:[#allocation1 + $0x38] sm:$0xff pattern:$0x75316420] }
  0xca   : > { %v1535_v36 = vadd.f32 %v1534_v37, %v1533_v13  ;;  %1191 = vst [vmem:[#allocation1] ss:$2 sm:$0xff] %v980_v51  ;;  %v1538_v54 = vsel %vm923_vm0, %v1183_v55, 0.0  ;;  %v1435_v38 = vsel %vm923_vm0, %v4132_v60, 0.0  ;;  %v1439_v37 = vsel %vm923_vm0, %v4148_v17, 0.0  ;;  %v3564_v51 = vld [vmem:[%s5054_s7 + $0x20] sm:$0xff] }
  0xcb   : > { %1192 = vst [vmem:[#allocation1 + $0x10] ss:$2 sm:$0xff] %v981_v8  ;;  %v1540_v13 = vsel %vm923_vm0, %v1184_v62, 0.0  ;;  %v1490_v55 = vsel %vm923_vm0, %v4215_v21, 0.0  ;;  %v1491_v60 = vsel %vm923_vm0, %v4217_v28, 0.0  ;;  %v1436_v7 = vadd.f32 %v1435_v38, %v1434_v52  ;;  %706 = vmatpush.bf16.msra.mxu0 %v3564_v51  ;;  %v3563_v62 = vld [vmem:[%s5054_s7 + $0x18] sm:$0xff] }
  0xcc   : > { %v1537_v4 = vadd.f32 %v1536_v58, %v1535_v36  ;;  %1193 = vst [vmem:[#allocation1 + $0x20] ss:$2 sm:$0xff] %v982_v43  ;;  %v1493_v58 = vsel %vm923_vm0, %v4199_v5, 0.0  ;;  %v1441_v17 = vsel %vm923_vm0, %v4151_v19, 0.0  ;;  %v1492_v8 = vadd.f32 %v1491_v60, %v1490_v55 }
  0xcd   : > { %1194 = vst [vmem:[#allocation1 + $0x30] ss:$2 sm:$0xff] %v983_v34  ;;  %v1542_v21 = vsel %vm923_vm0, %v1185_v11, 0.0  ;;  %v1443_v28 = vsel %vm923_vm0, %v4153_v20, 0.0  ;;  %v1445_v5 = vsel %vm923_vm0, %v4156_v26, 0.0  ;;  %v1495_v43 = vsel %vm923_vm0, %v4204_v9, 0.0 }
  0xce   : > { %v1539_v3 = vadd.f32 %v1538_v54, %v1537_v4  ;;  %v1438_v19 = vadd.f32 %v1437_v1, %v1436_v7  ;;  %v1447_v34 = vsel %vm923_vm0, %v4158_v27, 0.0  ;;  %v1494_v36 = vadd.f32 %v1493_v58, %v1492_v8  ;;  %v4334_v26 = vld [vmem:[%s4043_s29 + $0xc8] sm:$0xff] }
  0xcf   : > { %v1544_v54 = vsel %vm923_vm0, %v1186_v46, 0.0  ;;  %v1546_v38 = vsel %vm923_vm0, %v1187_v12, 0.0  ;;  %v1449_v11 = vsel %vm923_vm0, %v4161_v29, 0.0  ;;  %v1497_v20 = vsel %vm923_vm0, %v4206_v10, 0.0  ;;  %707 = vmatpush.bf16.msra.mxu0 %v3563_v62 }
  0xd0   : > { %v1541_v56 = vadd.f32 %v1540_v13, %v1539_v3  ;;  %v1548_v9 = vsel %vm923_vm0, %v1188_v39, 0.0  ;;  %v1440_v52 = vadd.f32 %v1439_v37, %v1438_v19  ;;  %v1496_v1 = vadd.f32 %v1495_v43, %v1494_v36 }
  0xd1   : > { %v1195_v27 = vld.sshfl [vmem:[#allocation1] sm:$0xff pattern:$0x75316420]  ;;  %v984_v51 = vmul.f32 %v4086_v45, %v875_v18  ;;  %v1499_v46 = vsel %vm923_vm0, %v4210_v14, 0.0  ;;  %v1501_v29 = vsel %vm923_vm0, %v4212_v15, 0.0  ;;  %v985_v13 = vmul.f32 %v4089_v47, %v876_v35 }
  0xd2   : > { %v1543_v4 = vadd.f32 %v1542_v21, %v1541_v56  ;;  %v1196_v12 = vld.sshfl [vmem:[#allocation1 + $0x8] sm:$0xff pattern:$0x75316420]  ;;  %v1556_v10 = vsel %vm923_vm0, %v1195_v27, 0.0  ;;  %v1442_v60 = vadd.f32 %v1441_v17, %v1440_v52  ;;  %v1498_v39 = vadd.f32 %v1497_v20, %v1496_v1 }
  0xd3   : > { %v1197_v37 = vld.sshfl [vmem:[#allocation1 + $0x10] sm:$0xff pattern:$0x75316420]  ;;  %v1198_v58 = vld.sshfl [vmem:[#allocation1 + $0x18] sm:$0xff pattern:$0x75316420]  ;;  %v881_v3 = vunpack.c.l.bf16 %v4334_v26  ;;  %v882_v18 = vunpack.c.h.bf16 %v4334_v26  ;;  %v986_v7 = vmul.f32 %v4092_v49, %v877_v59  ;;  %v987_v14 = vmul.f32 %v4095_v50, %v878_v33 }
  0xd4   : > { %v1545_v55 = vadd.f32 %v1544_v54, %v1543_v4  ;;  %v1199_v8 = vld.sshfl [vmem:[#allocation1 + $0x20] sm:$0xff pattern:$0x75316420]  ;;  %v1200_v15 = vld.sshfl [vmem:[#allocation1 + $0x28] sm:$0xff pattern:$0x75316420]  ;;  %v988_v62 = vmul.f32 %v4068_v22, %v879_v44  ;;  %v1444_v43 = vadd.f32 %v1443_v28, %v1442_v60  ;;  %v1500_v35 = vadd.f32 %v1499_v46, %v1498_v39 }
  0xd5   : > { %v1201_v56 = vld.sshfl [vmem:[#allocation1 + $0x30] sm:$0xff pattern:$0x75316420]  ;;  %v1202_v17 = vld.sshfl [vmem:[#allocation1 + $0x38] sm:$0xff pattern:$0x75316420]  ;;  %v989_v60 = vmul.f32 %v4071_v23, %v880_v16 }
  0xd6   : > { %v1547_v21 = vadd.f32 %v1546_v38, %v1545_v55  ;;  %v1550_v19 = vsel %vm923_vm0, %v4287_v48, 0.0  ;;  %v1503_v36 = vsel %vm923_vm0, %v4219_v31, 0.0  ;;  %1203 = vst [vmem:[#allocation1] ss:$2 sm:$0xff] %v984_v51  ;;  %v1557_v59 = vsel %vm923_vm0, %v1196_v12, 0.0 }
  0xd7   : > { %v1559_v33 = vsel %vm923_vm0, %v1197_v37, 0.0  ;;  %v1446_v20 = vadd.f32 %v1445_v5, %v1444_v43  ;;  %v1502_v26 = vadd.f32 %v1501_v29, %v1500_v35  ;;  %1204 = vst [vmem:[#allocation1 + $0x10] ss:$2 sm:$0xff] %v985_v13  ;;  %v1558_v44 = vadd.f32 %v1557_v59, %v1556_v10  ;;  %v825_v35 = vld [vmem:[%s4043_s29 + $0xd0] sm:$0xff] }
  0xd8   : > { %v1549_v54 = vadd.f32 %v1548_v9, %v1547_v21  ;;  %v1552_v28 = vsel %vm923_vm0, %v4292_v0, 0.0  ;;  %v1451_v38 = vsel %vm923_vm0, %v4163_v30, 0.0  ;;  %v1505_v48 = vsel %vm923_vm0, %v4226_v53, 0.0  ;;  %1205 = vst [vmem:[#allocation1 + $0x20] ss:$2 sm:$0xff] %v986_v7 }
  0xd9   : > { %v1561_v31 = vsel %vm923_vm0, %v1198_v58, 0.0  ;;  %v1448_v52 = vadd.f32 %v1447_v34, %v1446_v20  ;;  %v1504_v1 = vadd.f32 %v1503_v36, %v1502_v26  ;;  %1206 = vst [vmem:[#allocation1 + $0x30] ss:$2 sm:$0xff] %v987_v14  ;;  %v1560_v5 = vadd.f32 %v1559_v33, %v1558_v44 }
  0xda   : > { %v1551_v4 = vadd.f32 %v1550_v19, %v1549_v54  ;;  %v1453_v9 = vsel %vm923_vm0, %v4166_v32, 0.0  ;;  %v1507_v0 = vsel %vm923_vm0, %v4229_v40, 0.0  ;;  %v1509_v30 = vsel %vm923_vm0, %v4231_v57, 0.0  ;;  %v826_v19 = vld [vmem:[%s4043_s29 + $0xd8] sm:$0xff] }
  0xdb   : > { %v1563_v27 = vsel %vm923_vm0, %v1199_v8, 0.0  ;;  %v1450_v51 = vadd.f32 %v1449_v11, %v1448_v52  ;;  %v1506_v46 = vadd.f32 %v1505_v48, %v1504_v1  ;;  %v1562_v29 = vadd.f32 %v1561_v31, %v1560_v5 }
  0xdc   : > { %v1553_v53 = vadd.f32 %v1552_v28, %v1551_v4  ;;  %v1511_v34 = vsel %vm923_vm0, %v4234_v41, 0.0  ;;  %v1513_v12 = vsel %vm923_vm0, %v4236_v61, 0.0  ;;  %v1565_v32 = vsel %vm923_vm0, %v1200_v15, 0.0 }
  0xdd   : > { %v1567_v10 = vsel %vm923_vm0, %v1201_v56, 0.0  ;;  %v1452_v40 = vadd.f32 %v1451_v38, %v1450_v51  ;;  %v1508_v13 = vadd.f32 %v1507_v0, %v1506_v46  ;;  %v1207_v57 = vld.sshfl [vmem:[#allocation1] sm:$0xff pattern:$0x75316420]  ;;  %v1564_v55 = vadd.f32 %v1563_v27, %v1562_v29 }
  0xde   : > { %1554 = vadd.xlane.f32.xlu2 %v1553_v53  ;;  %v1569_v11 = vsel %vm923_vm0, %v1202_v17, 0.0  ;;  %v1208_v41 = vld.sshfl [vmem:[#allocation1 + $0x8] sm:$0xff pattern:$0x75316420]  ;;  %v990_v61 = vmul.f32 %v4074_v24, %v881_v3  ;;  %v991_v15 = vmul.f32 %v4077_v25, %v882_v18  ;;  %v1515_v16 = vsel %vm923_vm0, %v4239_v63, 0.0 }
  0xdf   : > { %v1209_v39 = vld.sshfl [vmem:[#allocation1 + $0x10] sm:$0xff pattern:$0x75316420]  ;;  %v1454_v37 = vadd.f32 %v1453_v9, %v1452_v40  ;;  %v1510_v58 = vadd.f32 %v1509_v30, %v1508_v13  ;;  %v1210_v7 = vld.sshfl [vmem:[#allocation1 + $0x18] sm:$0xff pattern:$0x75316420]  ;;  %v1566_v8 = vadd.f32 %v1565_v32, %v1564_v55  ;;  %v883_v33 = vunpack.c.l.bf16 %v825_v35 }
  0xe0   : > { %v1211_v14 = vld.sshfl [vmem:[#allocation1 + $0x20] sm:$0xff pattern:$0x75316420]  ;;  %v1212_v21 = vld.sshfl [vmem:[#allocation1 + $0x28] sm:$0xff pattern:$0x75316420]  ;;  %v884_v20 = vunpack.c.h.bf16 %v825_v35  ;;  %v885_v44 = vunpack.c.l.bf16 %v826_v19  ;;  %v886_v63 = vunpack.c.h.bf16 %v826_v19 }
  0xe1   : > { %v1213_v43 = vld.sshfl [vmem:[#allocation1 + $0x30] sm:$0xff pattern:$0x75316420]  ;;  %1455 = vadd.xlane.f32.xlu0 %v1454_v37  ;;  %v1512_v56 = vadd.f32 %v1511_v34, %v1510_v58  ;;  %v1214_v42 = vld.sshfl [vmem:[#allocation1 + $0x38] sm:$0xff pattern:$0x75316420]  ;;  %v1568_v17 = vadd.f32 %v1567_v10, %v1566_v8  ;;  %v992_v52 = vmul.f32 %v4086_v45, %v883_v33 }
  0xe2   : > { %1215 = vst [vmem:[#allocation1] ss:$2 sm:$0xff] %v988_v62  ;;  %v1571_v3 = vsel %vm923_vm0, %v1207_v57, 0.0  ;;  %v1517_v18 = vsel %vm923_vm0, %v4241_v2, 0.0  ;;  %v1573_v54 = vsel %vm923_vm0, %v1208_v41, 0.0  ;;  %v1519_v28 = vsel %vm923_vm0, %v4244_v6, 0.0 }
  0xe3   : > { %1216 = vst [vmem:[#allocation1 + $0x10] ss:$2 sm:$0xff] %v989_v60  ;;  %v1514_v36 = vadd.f32 %v1513_v12, %v1512_v56  ;;  %v1570_v59 = vadd.f32 %v1569_v11, %v1568_v17  ;;  %v1575_v38 = vsel %vm923_vm0, %v1209_v39, 0.0  ;;  %v1577_v4 = vsel %vm923_vm0, %v1210_v7, 0.0  ;;  %v827_v9 = vld [vmem:[%s4043_s29 + $0xe0] sm:$0xff]  ;;  %v828_v41 = vld [vmem:[%s4043_s29 + $0xe8] sm:$0xff] }
  0xe4   : > { %1217 = vst [vmem:[#allocation1 + $0x20] ss:$2 sm:$0xff] %v990_v61  ;;  %v1579_v2 = vsel %vm923_vm0, %v1211_v14, 0.0  ;;  %v993_v0 = vmul.f32 %v4089_v47, %v884_v20  ;;  %v994_v6 = vmul.f32 %v4092_v49, %v885_v44  ;;  %v995_v34 = vmul.f32 %v4095_v50, %v886_v63 }
  0xe5   : > { %1218 = vst [vmem:[#allocation1 + $0x30] ss:$2 sm:$0xff] %v991_v15  ;;  %v1516_v62 = vadd.f32 %v1515_v16, %v1514_v36  ;;  %v1572_v26 = vadd.f32 %v1571_v3, %v1570_v59  ;;  %v1581_v40 = vsel %vm923_vm0, %v1212_v21, 0.0  ;;  %v887_v39 = vunpack.c.l.bf16 %v827_v9 }
  0xe6   : > { %v1583_v61 = vsel %vm923_vm0, %v1213_v43, 0.0  ;;  %v888_v14 = vunpack.c.h.bf16 %v827_v9  ;;  %v1585_v8 = vsel %vm923_vm0, %v1214_v42, 0.0  ;;  %v889_v21 = vunpack.c.l.bf16 %v828_v41  ;;  %v4415_v42 = vld [vmem:[%s5051_s4] sm:$0xff] }
  0xe7   : > { %v1518_v48 = vadd.f32 %v1517_v18, %v1516_v62  ;;  %v1574_v31 = vadd.f32 %v1573_v54, %v1572_v26  ;;  %v890_v17 = vunpack.c.h.bf16 %v828_v41  ;;  %v996_v16 = vmul.f32 %v4068_v22, %v887_v39 }
  0xe8   : > { %v997_v18 = vmul.f32 %v4071_v23, %v888_v14  ;;  %v998_v20 = vmul.f32 %v4074_v24, %v889_v21  ;;  %v1756_v24 = vperm.slane %v4415_v42, 1 }
  0xe9   : > { %v1219_v1 = vld.sshfl [vmem:[#allocation1] sm:$0xff pattern:$0x75316420]  ;;  %v1220_v5 = vld.sshfl [vmem:[#allocation1 + $0x8] sm:$0xff pattern:$0x75316420]  ;;  %v1520_v30 = vadd.f32 %v1519_v28, %v1518_v48  ;;  %v1576_v27 = vadd.f32 %v1575_v38, %v1574_v31  ;;  %v999_v63 = vmul.f32 %v4077_v25, %v890_v17 }
  0xea   : > { %v1221_v53 = vld.sshfl [vmem:[#allocation1 + $0x10] sm:$0xff pattern:$0x75316420]  ;;  %v1222_v51 = vld.sshfl [vmem:[#allocation1 + $0x18] sm:$0xff pattern:$0x75316420] }
  0xeb   : > { %v1223_v46 = vld.sshfl [vmem:[#allocation1 + $0x20] sm:$0xff pattern:$0x75316420]  ;;  %v1224_v29 = vld.sshfl [vmem:[#allocation1 + $0x28] sm:$0xff pattern:$0x75316420]  ;;  %1521 = vadd.xlane.f32.xlu1 %v1520_v30  ;;  %v1578_v12 = vadd.f32 %v1577_v4, %v1576_v27 }
  0xec   : > { %v1225_v32 = vld.sshfl [vmem:[#allocation1 + $0x30] sm:$0xff pattern:$0x75316420]  ;;  %v1226_v10 = vld.sshfl [vmem:[#allocation1 + $0x38] sm:$0xff pattern:$0x75316420] }
  0xed   : > { %1227 = vst [vmem:[#allocation1] ss:$2 sm:$0xff] %v992_v52  ;;  %v1589_v13 = vsel %vm923_vm0, %v1219_v1, 0.0  ;;  %v1590_v57 = vsel %vm923_vm0, %v1220_v5, 0.0  ;;  %v1592_v55 = vsel %vm923_vm0, %v1221_v53, 0.0  ;;  %v1580_v11 = vadd.f32 %v1579_v2, %v1578_v12  ;;  %v829_v48 = vld [vmem:[%s4043_s29 + $0xf0] sm:$0xff] }
  0xee   : > { %1228 = vst [vmem:[#allocation1 + $0x10] ss:$2 sm:$0xff] %v993_v0  ;;  %v1591_v60 = vadd.f32 %v1590_v57, %v1589_v13  ;;  %v1594_v37 = vsel %vm923_vm0, %v1222_v51, 0.0  ;;  %v1596_v15 = vsel %vm923_vm0, %v1223_v46, 0.0  ;;  %v1598_v3 = vsel %vm923_vm0, %v1224_v29, 0.0  ;;  %v830_v2 = vld [vmem:[%s4043_s29 + $0xf8] sm:$0xff] }
  0xef   : > { %1229 = vst [vmem:[#allocation1 + $0x20] ss:$2 sm:$0xff] %v994_v6  ;;  %v1582_v58 = vadd.f32 %v1581_v40, %v1580_v11  ;;  %v1600_v59 = vsel %vm923_vm0, %v1225_v32, 0.0  ;;  %v1602_v33 = vsel %vm923_vm0, %v1226_v10, 0.0  ;;  %v891_v1 = vunpack.c.l.bf16 %v829_v48  ;;  %s4436_s29 = scalar_select %p626_p6, %s3938_s28, 1  ;;  %v4441_v13 = vld [vmem:[%s4050_s11] sm:$0xff] }
  0xf0   : > { %1230 = vst [vmem:[#allocation1 + $0x30] ss:$2 sm:$0xff] %v995_v34  ;;  %v1593_v7 = vadd.f32 %v1592_v55, %v1591_v60  ;;  %v892_v5 = vunpack.c.h.bf16 %v829_v48  ;;  %v893_v9 = vunpack.c.l.bf16 %v830_v2  ;;  %v894_v0 = vunpack.c.h.bf16 %v830_v2 }
  0xf1   : > { %v1584_v35 = vadd.f32 %v1583_v61, %v1582_v58  ;;  %v1755_v53 = vperm.slane %v4415_v42, 0  ;;  %v1758_v51 = vperm.slane %v4415_v42, 3  ;;  %v1771_v6 = vrot.slane %v1756_v24, 4  ;;  %s3321_s26 = sshll.u32 %s4436_s29, 3  ;;  %s625_s29 = scalar_lea.vmem [#allocation7], %s3320_s20 }
  0xf2   : > { %v1595_v56 = vadd.f32 %v1594_v37, %v1593_v7  ;;  %v1760_v12 = vperm.slane %v4415_v42, 5  ;;  %v1000_v32 = vmul.f32 %v4086_v45, %v891_v1  ;;  %v1001_v57 = vmul.f32 %v4089_v47, %v892_v5  ;;  %s629_s21 = scalar_lea.vmem %s5110_s17, %s3321_s26  ;;  %v3560_v1 = vld [vmem:[%s5054_s7] sm:$0xff]  ;;  %s5111_s17 = sld [smem:[#allocation20_spill]] }
  0xf3   : > { %v1586_v43 = vadd.f32 %v1585_v8, %v1584_v35  ;;  %v1002_v41 = vmul.f32 %v4092_v49, %v893_v9  ;;  %v1003_v37 = vmul.f32 %v4095_v50, %v894_v0  ;;  %v3562_v50 = vld [vmem:[%s5054_s7 + $0x10] sm:$0xff]  ;;  %v1687_v35 = vunpack.c.l.bf16 %v4441_v13  ;;  %s5113_s26 = sld [smem:[#allocation23_spill]]  ;;  %s3198_s12 = sshll.u32 %s625_s29, 4  ;;  %s3199_s12 = int_to_ptr.vmem [resolvable:$true] %s3198_s12 }
  0xf4   : > { %v1231_v19 = vld.sshfl [vmem:[#allocation1] sm:$0xff pattern:$0x75316420]  ;;  %v1597_v36 = vadd.f32 %v1596_v15, %v1595_v56  ;;  %v1232_v54 = vld.sshfl [vmem:[#allocation1 + $0x8] sm:$0xff pattern:$0x75316420]  ;;  %708 = vmatpush.bf16.msra.mxu0 %v3562_v50 }
  0xf5   : > { %v1233_v22 = vld.sshfl [vmem:[#allocation1 + $0x10] sm:$0xff pattern:$0x75316420]  ;;  %1587 = vadd.xlane.f32.xlu2 %v1586_v43  ;;  %v1234_v62 = vld.sshfl [vmem:[#allocation1 + $0x18] sm:$0xff pattern:$0x75316420] }
  0xf6   : > { %v1235_v26 = vld.sshfl [vmem:[#allocation1 + $0x20] sm:$0xff pattern:$0x75316420]  ;;  %v1599_v44 = vadd.f32 %v1598_v3, %v1597_v36  ;;  %v1236_v28 = vld.sshfl [vmem:[#allocation1 + $0x28] sm:$0xff pattern:$0x75316420] }
  0xf7   : > { %v1237_v38 = vld.sshfl [vmem:[#allocation1 + $0x30] sm:$0xff pattern:$0x75316420]  ;;  %v4421_v31 = vld.sshfl [vmem:[#allocation1 + $0x38] sm:$0xff pattern:$0x75316420] }
  0xf8   : > { %v1601_v4 = vadd.f32 %v1600_v59, %v1599_v44  ;;  %1239 = vst [vmem:[#allocation1] ss:$2 sm:$0xff] %v996_v16  ;;  %v1604_v23 = vsel %vm923_vm0, %v1231_v19, 0.0  ;;  %v1606_v25 = vsel %vm923_vm0, %v1232_v54, 0.0  ;;  %v1608_v27 = vsel %vm923_vm0, %v1233_v22, 0.0  ;;  %v3561_v59 = vld [vmem:[%s5054_s7 + $0x8] sm:$0xff] }
  0xf9   : > { %1240 = vst [vmem:[#allocation1 + $0x10] ss:$2 sm:$0xff] %v997_v18  ;;  %v1610_v29 = vsel %vm923_vm0, %v1234_v62, 0.0  ;;  %v1612_v34 = vsel %vm923_vm0, %v1235_v26, 0.0  ;;  %v1614_v45 = vsel %vm923_vm0, %v1236_v28, 0.0  ;;  %v1762_v56 = vperm.slane %v4415_v42, 7  ;;  %709 = vmatpush.bf16.msra.mxu0 %v3561_v59  ;;  %s5114_s30 = smov %s5113_s26 }
  0xfa   : > { %v1603_v52 = vadd.f32 %v1602_v33, %v1601_v4  ;;  %1241 = vst [vmem:[#allocation1 + $0x20] ss:$2 sm:$0xff] %v998_v20  ;;  %v1616_v17 = vsel %vm923_vm0, %v1237_v38, 0.0  ;;  %v1757_v3 = vperm.slane %v4415_v42, 2  ;;  %v1772_v43 = vrot.slane %v1758_v51, 4  ;;  %v1656_v33 = vld [vmem:[%s4050_s11 + $0x8] sm:$0xff] }
  0xfb   : > { %1242 = vst [vmem:[#allocation1 + $0x30] ss:$2 sm:$0xff] %v999_v63  ;;  %v1688_v18 = vunpack.c.h.bf16 %v4441_v13  ;;  %v4465_v54 = vsel %vm923_vm0, %v1755_v53, %v1771_v6  ;;  %v1618_v22 = vsel %vm923_vm0, %v4421_v31, 0.0  ;;  %v4476_v62 = vld [vmem:[%s5051_s4 + $0x8] sm:$0xff]  ;;  %v1759_v26 = vperm.slane %v4415_v42, 4 }
  0xfc   : > { %v1605_v30 = vadd.f32 %v1604_v23, %v1603_v52  ;;  %v1773_v44 = vrot.slane %v1760_v12, 4  ;;  %v1761_v38 = vperm.slane %v4415_v42, 6  ;;  %v1774_v48 = vrot.slane %v1762_v56, 4 }
  0xfd   : > { %v1689_v4 = vunpack.c.l.bf16 %v1656_v33  ;;  %v1690_v2 = vunpack.c.h.bf16 %v1656_v33  ;;  %v4482_v23 = vsel %vm923_vm0, %v1757_v3, %v1772_v43  ;;  %v1764_v5 = vperm.slane %v4476_v62, 1  ;;  %710 = vmatpush.bf16.msra.mxu0 %v3560_v1 }
  0xfe   : > { %v1607_v46 = vadd.f32 %v1606_v25, %v1605_v30  ;;  %v633_v25 = vld [vmem:[%s629_s21] sm:$0xff]  ;;  %v1766_v42 = vperm.slane %v4476_v62, 3  ;;  %v1768_v30 = vperm.slane %v4476_v62, 5  ;;  %s5117_s21 = sld [smem:[#allocation25_spill]] }
  0xff   : > { %v1243_v10 = vld.sshfl [vmem:[#allocation1] sm:$0xff pattern:$0x75316420]  ;;  %v1244_v40 = vld.sshfl [vmem:[#allocation1 + $0x8] sm:$0xff pattern:$0x75316420] }
 0x100   : > { %v1609_v55 = vadd.f32 %v1608_v27, %v1607_v46  ;;  %v1245_v11 = vld.sshfl [vmem:[#allocation1 + $0x10] sm:$0xff pattern:$0x75316420]  ;;  %v1246_v60 = vld.sshfl [vmem:[#allocation1 + $0x18] sm:$0xff pattern:$0x75316420]  ;;  %v4493_v27 = vsel %vm923_vm0, %v1759_v26, %v1773_v44  ;;  %v4496_v46 = vsel %vm923_vm0, %v1761_v38, %v1774_v48 }
 0x101   : > { %v1247_v39 = vld.sshfl [vmem:[#allocation1 + $0x20] sm:$0xff pattern:$0x75316420]  ;;  %v1248_v61 = vld.sshfl [vmem:[#allocation1 + $0x28] sm:$0xff pattern:$0x75316420] }
 0x102   : > { %v1611_v58 = vadd.f32 %v1610_v29, %v1609_v55  ;;  %v1249_v7 = vld.sshfl [vmem:[#allocation1 + $0x30] sm:$0xff pattern:$0x75316420]  ;;  %v1250_v14 = vld.sshfl [vmem:[#allocation1 + $0x38] sm:$0xff pattern:$0x75316420]  ;;  %v1795_v29 = vmul.f32 %v4465_v54, %v1687_v35 }
 0x103   : > { %1251 = vst [vmem:[#allocation1] ss:$2 sm:$0xff] %v1000_v32  ;;  %v1622_v8 = vsel %vm923_vm0, %v1243_v10, 0.0  ;;  %v1623_v47 = vsel %vm923_vm0, %v1244_v40, 0.0  ;;  %v1625_v15 = vsel %vm923_vm0, %v1245_v11, 0.0  ;;  %v1627_v16 = vsel %vm923_vm0, %v1246_v60, 0.0 }
 0x104   : > { %v1613_v21 = vadd.f32 %v1612_v34, %v1611_v58  ;;  %1252 = vst [vmem:[#allocation1 + $0x10] ss:$2 sm:$0xff] %v1001_v57  ;;  %v1624_v49 = vadd.f32 %v1623_v47, %v1622_v8  ;;  %v1629_v20 = vsel %vm923_vm0, %v1247_v39, 0.0  ;;  %v1631_v31 = vsel %vm923_vm0, %v1248_v61, 0.0  ;;  %v1657_v55 = vld [vmem:[%s4050_s11 + $0x10] sm:$0xff] }
 0x105   : > { %1253 = vst [vmem:[#allocation1 + $0x20] ss:$2 sm:$0xff] %v1002_v41  ;;  %v1633_v9 = vsel %vm923_vm0, %v1249_v7, 0.0  ;;  %v1635_v0 = vsel %vm923_vm0, %v1250_v14, 0.0  ;;  %v634_v32 = vpack.c.bf16 %v633_v25, %v633_v25  ;;  %v1796_v10 = vmul.f32 %v4482_v23, %v1688_v18 }
 0x106   : > { %v1615_v19 = vadd.f32 %v1614_v45, %v1613_v21  ;;  %1254 = vst [vmem:[#allocation1 + $0x30] ss:$2 sm:$0xff] %v1003_v37  ;;  %v1626_v36 = vadd.f32 %v1625_v15, %v1624_v49  ;;  %v1797_v11 = vmul.f32 %v4493_v27, %v1689_v4  ;;  %v1763_v39 = vperm.slane %v4476_v62, 0  ;;  %v1658_v21 = vld [vmem:[%s4050_s11 + $0x18] sm:$0xff] }
 0x107   : > { %v1770_v61 = vperm.slane %v4476_v62, 7  ;;  %v1798_v37 = vmul.f32 %v4496_v46, %v1690_v2  ;;  %v1775_v14 = vrot.slane %v1764_v5, 4  ;;  %711 = vmatmul.bf16.vlgmr.msra.gmra.mxu0 %v634_v32  ;;  %v1765_v8 = vperm.slane %v4476_v62, 2  ;;  %v1659_v2 = vld [vmem:[%s4050_s11 + $0x20] sm:$0xff] }
 0x108   : > { %v1617_v63 = vadd.f32 %v1616_v17, %v1615_v19  ;;  %v1628_v28 = vadd.f32 %v1627_v16, %v1626_v36  ;;  %v1776_v47 = vrot.slane %v1766_v42, 4  ;;  %v1767_v49 = vperm.slane %v4476_v62, 4 }
 0x109   : > { %v1777_v50 = vrot.slane %v1768_v30, 4  ;;  %v1691_v56 = vunpack.c.l.bf16 %v1657_v55  ;;  %v1769_v17 = vperm.slane %v4476_v62, 6  ;;  %v1778_v16 = vrot.slane %v1770_v61, 4 }
 0x10a   : > { %v1619_v24 = vadd.f32 %v1618_v22, %v1617_v63  ;;  %v1630_v52 = vadd.f32 %v1629_v20, %v1628_v28  ;;  %v1255_v53 = vld.sshfl [vmem:[#allocation1] sm:$0xff pattern:$0x75316420]  ;;  %v1256_v51 = vld.sshfl [vmem:[#allocation1 + $0x8] sm:$0xff pattern:$0x75316420]  ;;  %v1692_v43 = vunpack.c.h.bf16 %v1657_v55  ;;  %v4513_v19 = vsel %vm923_vm0, %v1763_v39, %v1775_v14 }
 0x10b   : > { %v1257_v34 = vld.sshfl [vmem:[#allocation1 + $0x10] sm:$0xff pattern:$0x75316420]  ;;  %v1258_v12 = vld.sshfl [vmem:[#allocation1 + $0x18] sm:$0xff pattern:$0x75316420]  ;;  %v1693_v59 = vunpack.c.l.bf16 %v1658_v21  ;;  %v4517_v33 = vsel %vm923_vm0, %v1765_v8, %v1776_v47  ;;  %v1694_v22 = vunpack.c.h.bf16 %v1658_v21  ;;  %v4520_v20 = vsel %vm923_vm0, %v1767_v49, %v1777_v50 }
 0x10c   : > { %1620 = vadd.xlane.f32.xlu0 %v1619_v24  ;;  %v1632_v6 = vadd.f32 %v1631_v31, %v1630_v52  ;;  %v1259_v40 = vld.sshfl [vmem:[#allocation1 + $0x20] sm:$0xff pattern:$0x75316420]  ;;  %v1260_v13 = vld.sshfl [vmem:[#allocation1 + $0x28] sm:$0xff pattern:$0x75316420]  ;;  %v4525_v44 = vsel %vm923_vm0, %v1769_v17, %v1778_v16  ;;  %v1799_v63 = vmul.f32 %v4513_v19, %v1691_v56  ;;  %v1800_v48 = vmul.f32 %v4517_v33, %v1692_v43 }
 0x10d   : > { %v1261_v60 = vld.sshfl [vmem:[#allocation1 + $0x30] sm:$0xff pattern:$0x75316420]  ;;  %v1637_v41 = vsel %vm923_vm0, %v1255_v53, 0.0  ;;  %1923 = vst [vmem:[#allocation1] ss:$2 sm:$0xff] %v1795_v29  ;;  %v1801_v24 = vmul.f32 %v4520_v20, %v1693_v59  ;;  %v1802_v5 = vmul.f32 %v4525_v44, %v1694_v22 }
 0x10e   : > { %v1634_v57 = vadd.f32 %v1633_v9, %v1632_v6  ;;  %v1262_v58 = vld.sshfl [vmem:[#allocation1 + $0x38] sm:$0xff pattern:$0x75316420]  ;;  %v1639_v45 = vsel %vm923_vm0, %v1256_v51, 0.0  ;;  %1925 = vst [vmem:[#allocation1 + $0x10] ss:$2 sm:$0xff] %v1796_v10 }
 0x10f   : > { %1927 = vst [vmem:[#allocation1 + $0x20] ss:$2 sm:$0xff] %v1797_v11  ;;  %v1641_v35 = vsel %vm923_vm0, %v1257_v34, 0.0  ;;  %v1643_v36 = vsel %vm923_vm0, %v1258_v12, 0.0  ;;  %v1645_v62 = vsel %vm923_vm0, %v1259_v40, 0.0  ;;  %v1647_v26 = vsel %vm923_vm0, %v1260_v13, 0.0 }
 0x110   : > { %v1636_v7 = vadd.f32 %v1635_v0, %v1634_v57  ;;  %1929 = vst [vmem:[#allocation1 + $0x30] ss:$2 sm:$0xff] %v1798_v37  ;;  %v1649_v0 = vsel %vm923_vm0, %v1261_v60, 0.0  ;;  %v1651_v51 = vsel %vm923_vm0, %v1262_v58, 0.0  ;;  %v1660_v6 = vld [vmem:[%s4050_s11 + $0x28] sm:$0xff]  ;;  %v1695_v34 = vunpack.c.l.bf16 %v1659_v2  ;;  %v1662_v49 = vld [vmem:[%s4050_s11 + $0x38] sm:$0xff] }
 0x111   : > { %v1696_v12 = vunpack.c.h.bf16 %v1659_v2  ;;  %v1697_v10 = vunpack.c.l.bf16 %v1660_v6  ;;  %v1698_v40 = vunpack.c.h.bf16 %v1660_v6 }
 0x112   : > { %v1638_v15 = vadd.f32 %v1637_v41, %v1636_v7  ;;  %v1803_v13 = vmul.f32 %v4465_v54, %v1695_v34 }
 0x113   : > { %v1804_v11 = vmul.f32 %v4482_v23, %v1696_v12  ;;  %v1805_v39 = vmul.f32 %v4493_v27, %v1697_v10  ;;  %v1806_v58 = vmul.f32 %v4496_v46, %v1698_v40 }
 0x114   : > { %v1640_v3 = vadd.f32 %v1639_v45, %v1638_v15  ;;  %v1930_v28 = vld.sshfl [vmem:[#allocation1] sm:$0xff pattern:$0x75316420]  ;;  %v1931_v31 = vld.sshfl [vmem:[#allocation1 + $0x8] sm:$0xff pattern:$0x75316420] }
 0x115   : > { %v1932_v4 = vld.sshfl [vmem:[#allocation1 + $0x10] sm:$0xff pattern:$0x75316420]  ;;  %v1933_v52 = vld.sshfl [vmem:[#allocation1 + $0x18] sm:$0xff pattern:$0x75316420] }
 0x116   : > { %v1642_v18 = vadd.f32 %v1641_v35, %v1640_v3  ;;  %v1934_v1 = vld.sshfl [vmem:[#allocation1 + $0x20] sm:$0xff pattern:$0x75316420]  ;;  %v1935_v42 = vld.sshfl [vmem:[#allocation1 + $0x28] sm:$0xff pattern:$0x75316420]  ;;  %v1701_v3 = vunpack.c.l.bf16 %v1662_v49 }
 0x117   : > { %v1936_v9 = vld.sshfl [vmem:[#allocation1 + $0x30] sm:$0xff pattern:$0x75316420]  ;;  %v1937_v30 = vld.sshfl [vmem:[#allocation1 + $0x38] sm:$0xff pattern:$0x75316420] }
 0x118   : > { %v1644_v38 = vadd.f32 %v1643_v36, %v1642_v18  ;;  %1938 = vst [vmem:[#allocation1] ss:$2 sm:$0xff] %v1799_v63  ;;  %v1661_v45 = vld [vmem:[%s4050_s11 + $0x30] sm:$0xff]  ;;  %v2246_v8 = vsel %vm923_vm0, %v1930_v28, 0.0  ;;  %v2247_v47 = vsel %vm923_vm0, %v1931_v31, 0.0  ;;  %v2249_v15 = vsel %vm923_vm0, %v1932_v4, 0.0 }
 0x119   : > { %1939 = vst [vmem:[#allocation1 + $0x10] ss:$2 sm:$0xff] %v1800_v48  ;;  %v2248_v21 = vadd.f32 %v2247_v47, %v2246_v8  ;;  %v2251_v50 = vsel %vm923_vm0, %v1933_v52, 0.0  ;;  %v1699_v35 = vunpack.c.l.bf16 %v1661_v45  ;;  %v1700_v17 = vunpack.c.h.bf16 %v1661_v45 }
 0x11a   : > { %v1646_v25 = vadd.f32 %v1645_v62, %v1644_v38  ;;  %1940 = vst [vmem:[#allocation1 + $0x20] ss:$2 sm:$0xff] %v1801_v24  ;;  %v2253_v16 = vsel %vm923_vm0, %v1934_v1, 0.0  ;;  %v1702_v36 = vunpack.c.h.bf16 %v1662_v49  ;;  %v2255_v59 = vsel %vm923_vm0, %v1935_v42, 0.0  ;;  %v1663_v38 = vld [vmem:[%s4050_s11 + $0x40] sm:$0xff] }
 0x11b   : > { %1941 = vst [vmem:[#allocation1 + $0x30] ss:$2 sm:$0xff] %v1802_v5  ;;  %v2250_v56 = vadd.f32 %v2249_v15, %v2248_v21  ;;  %v2257_v18 = vsel %vm923_vm0, %v1936_v9, 0.0  ;;  %v2259_v22 = vsel %vm923_vm0, %v1937_v30, 0.0  ;;  %v1807_v62 = vmul.f32 %v4513_v19, %v1699_v35 }
 0x11c   : > { %v1648_v53 = vadd.f32 %v1647_v26, %v1646_v25  ;;  %v1808_v48 = vmul.f32 %v4517_v33, %v1700_v17  ;;  %v1809_v2 = vmul.f32 %v4520_v20, %v1701_v3  ;;  %v1810_v25 = vmul.f32 %v4525_v44, %v1702_v36  ;;  %v1665_v36 = vld [vmem:[%s4050_s11 + $0x50] sm:$0xff] }
 0x11d   : > { %v2252_v43 = vadd.f32 %v2251_v50, %v2250_v56  ;;  %v1703_v34 = vunpack.c.l.bf16 %v1663_v38 }
 0x11e   : > { %v1650_v29 = vadd.f32 %v1649_v0, %v1648_v53 }
 0x11f   : > { %v1942_v57 = vld.sshfl [vmem:[#allocation1] sm:$0xff pattern:$0x75316420]  ;;  %v1943_v55 = vld.sshfl [vmem:[#allocation1 + $0x8] sm:$0xff pattern:$0x75316420]  ;;  %v2254_v26 = vadd.f32 %v2253_v16, %v2252_v43  ;;  %v1811_v47 = vmul.f32 %v4465_v54, %v1703_v34 }
 0x120   : > { %v1652_v32 = vadd.f32 %v1651_v51, %v1650_v29  ;;  %v4537_v60 = vld.sshfl [vmem:[#allocation1 + $0x10] sm:$0xff pattern:$0x75316420]  ;;  %v4539_v41 = vld.sshfl [vmem:[#allocation1 + $0x18] sm:$0xff pattern:$0x75316420] }
 0x121   : > { %v4542_v61 = vld.sshfl [vmem:[#allocation1 + $0x20] sm:$0xff pattern:$0x75316420]  ;;  %v4544_v37 = vld.sshfl [vmem:[#allocation1 + $0x28] sm:$0xff pattern:$0x75316420]  ;;  %v2256_v24 = vadd.f32 %v2255_v59, %v2254_v26 }
 0x122   : > { %1653 = vadd.xlane.f32.xlu1 %v1652_v32  ;;  %v4547_v7 = vld.sshfl [vmem:[#allocation1 + $0x30] sm:$0xff pattern:$0x75316420]  ;;  %v4549_v14 = vld.sshfl [vmem:[#allocation1 + $0x38] sm:$0xff pattern:$0x75316420] }
 0x123   : > { %1950 = vst [vmem:[#allocation1] ss:$2 sm:$0xff] %v1803_v13  ;;  %v2258_v9 = vadd.f32 %v2257_v18, %v2256_v24  ;;  %v2261_v51 = vsel %vm923_vm0, %v1942_v57, 0.0  ;;  %v1664_v29 = vld [vmem:[%s4050_s11 + $0x48] sm:$0xff]  ;;  %v2263_v10 = vsel %vm923_vm0, %v1943_v55, 0.0  ;;  %v1704_v13 = vunpack.c.h.bf16 %v1663_v38 }
 0x124   : > { %1951 = vst [vmem:[#allocation1 + $0x10] ss:$2 sm:$0xff] %v1804_v11  ;;  %v1706_v45 = vunpack.c.h.bf16 %v1664_v29  ;;  %v2265_v57 = vsel %vm923_vm0, %v4537_v60, 0.0  ;;  %v2267_v21 = vsel %vm923_vm0, %v4539_v41, 0.0  ;;  %v2269_v49 = vsel %vm923_vm0, %v4542_v61, 0.0 }
 0x125   : > { %1952 = vst [vmem:[#allocation1 + $0x20] ss:$2 sm:$0xff] %v1805_v39  ;;  %v2260_v12 = vadd.f32 %v2259_v22, %v2258_v9  ;;  %v1812_v60 = vmul.f32 %v4482_v23, %v1704_v13  ;;  %v2273_v24 = vsel %vm923_vm0, %v4547_v7, 0.0 }
 0x126   : > { %1953 = vst [vmem:[#allocation1 + $0x30] ss:$2 sm:$0xff] %v1806_v58  ;;  %v1705_v58 = vunpack.c.l.bf16 %v1664_v29  ;;  %v1814_v61 = vmul.f32 %v4496_v46, %v1706_v45 }
 0x127   : > { %v2262_v11 = vadd.f32 %v2261_v51, %v2260_v12 }
 0x128   : > { %v1813_v41 = vmul.f32 %v4493_v27, %v1705_v58 }
 0x129   : > { %v2264_v15 = vadd.f32 %v2263_v10, %v2262_v11 }
 0x12a   : > { %v1954_v63 = vld.sshfl [vmem:[#allocation1] sm:$0xff pattern:$0x75316420]  ;;  %v1955_v28 = vld.sshfl [vmem:[#allocation1 + $0x8] sm:$0xff pattern:$0x75316420] }
 0x12b   : > { %v1956_v31 = vld.sshfl [vmem:[#allocation1 + $0x10] sm:$0xff pattern:$0x75316420]  ;;  %v1957_v4 = vld.sshfl [vmem:[#allocation1 + $0x18] sm:$0xff pattern:$0x75316420]  ;;  %v2266_v16 = vadd.f32 %v2265_v57, %v2264_v15 }
 0x12c   : > { %v1958_v52 = vld.sshfl [vmem:[#allocation1 + $0x20] sm:$0xff pattern:$0x75316420]  ;;  %v1959_v1 = vld.sshfl [vmem:[#allocation1 + $0x28] sm:$0xff pattern:$0x75316420] }
 0x12d   : > { %v1960_v5 = vld.sshfl [vmem:[#allocation1 + $0x30] sm:$0xff pattern:$0x75316420]  ;;  %v1961_v42 = vld.sshfl [vmem:[#allocation1 + $0x38] sm:$0xff pattern:$0x75316420] }
 0x12e   : > { %1962 = vst [vmem:[#allocation1] ss:$2 sm:$0xff] %v1807_v62  ;;  %v2279_v0 = vsel %vm923_vm0, %v1954_v63, 0.0  ;;  %v2280_v30 = vsel %vm923_vm0, %v1955_v28, 0.0  ;;  %v2282_v53 = vsel %vm923_vm0, %v1956_v31, 0.0  ;;  %v2284_v32 = vsel %vm923_vm0, %v1957_v4, 0.0 }
 0x12f   : > { %1963 = vst [vmem:[#allocation1 + $0x10] ss:$2 sm:$0xff] %v1808_v48  ;;  %v2281_v6 = vadd.f32 %v2280_v30, %v2279_v0  ;;  %v2286_v39 = vsel %vm923_vm0, %v1958_v52, 0.0  ;;  %v2288_v55 = vsel %vm923_vm0, %v1959_v1, 0.0  ;;  %v2290_v56 = vsel %vm923_vm0, %v1960_v5, 0.0 }
 0x130   : > { %1964 = vst [vmem:[#allocation1 + $0x20] ss:$2 sm:$0xff] %v1809_v2  ;;  %v2292_v17 = vsel %vm923_vm0, %v1961_v42, 0.0  ;;  %v2268_v62 = vadd.f32 %v2267_v21, %v2266_v16  ;;  %v2271_v28 = vsel %vm923_vm0, %v4544_v37, 0.0  ;;  %v1666_v2 = vld [vmem:[%s4050_s11 + $0x58] sm:$0xff]  ;;  %v1707_v1 = vunpack.c.l.bf16 %v1665_v36 }
 0x131   : > { %1965 = vst [vmem:[#allocation1 + $0x30] ss:$2 sm:$0xff] %v1810_v25  ;;  %v2283_v40 = vadd.f32 %v2282_v53, %v2281_v6  ;;  %v1708_v37 = vunpack.c.h.bf16 %v1665_v36  ;;  %v2275_v42 = vsel %vm923_vm0, %v4549_v14, 0.0  ;;  %v1709_v0 = vunpack.c.l.bf16 %v1666_v2 }
 0x132   : > { %v2270_v31 = vadd.f32 %v2269_v49, %v2268_v62  ;;  %v1710_v51 = vunpack.c.h.bf16 %v1666_v2  ;;  %v1815_v34 = vmul.f32 %v4513_v19, %v1707_v1 }
 0x133   : > { %v2285_v8 = vadd.f32 %v2284_v32, %v2283_v40  ;;  %v1667_v40 = vld [vmem:[%s4050_s11 + $0x60] sm:$0xff]  ;;  %v1816_v13 = vmul.f32 %v4517_v33, %v1708_v37  ;;  %v1817_v58 = vmul.f32 %v4520_v20, %v1709_v0 }
 0x134   : > { %v2272_v25 = vadd.f32 %v2271_v28, %v2270_v31  ;;  %v1711_v16 = vunpack.c.l.bf16 %v1667_v40 }
 0x135   : > { %v1966_v50 = vld.sshfl [vmem:[#allocation1] sm:$0xff pattern:$0x75316420]  ;;  %v2287_v35 = vadd.f32 %v2286_v39, %v2285_v8  ;;  %v1967_v3 = vld.sshfl [vmem:[#allocation1 + $0x8] sm:$0xff pattern:$0x75316420]  ;;  %v1818_v8 = vmul.f32 %v4525_v44, %v1710_v51 }
 0x136   : > { %v1968_v43 = vld.sshfl [vmem:[#allocation1 + $0x10] sm:$0xff pattern:$0x75316420]  ;;  %v1969_v59 = vld.sshfl [vmem:[#allocation1 + $0x18] sm:$0xff pattern:$0x75316420]  ;;  %v2274_v30 = vadd.f32 %v2273_v24, %v2272_v25 }
 0x137   : > { %v1970_v18 = vld.sshfl [vmem:[#allocation1 + $0x20] sm:$0xff pattern:$0x75316420]  ;;  %v2289_v22 = vadd.f32 %v2288_v55, %v2287_v35  ;;  %v1971_v26 = vld.sshfl [vmem:[#allocation1 + $0x28] sm:$0xff pattern:$0x75316420] }
 0x138   : > { %v1972_v63 = vld.sshfl [vmem:[#allocation1 + $0x30] sm:$0xff pattern:$0x75316420]  ;;  %v1973_v38 = vld.sshfl [vmem:[#allocation1 + $0x38] sm:$0xff pattern:$0x75316420]  ;;  %v2276_v12 = vadd.f32 %v2275_v42, %v2274_v30 }
 0x139   : > { %v2291_v48 = vadd.f32 %v2290_v56, %v2289_v22  ;;  %1974 = vst [vmem:[#allocation1] ss:$2 sm:$0xff] %v1811_v47  ;;  %v2294_v4 = vsel %vm923_vm0, %v1966_v50, 0.0  ;;  %v2296_v5 = vsel %vm923_vm0, %v1967_v3, 0.0  ;;  %v2298_v53 = vsel %vm923_vm0, %v1968_v43, 0.0  ;;  %v1669_v51 = vld [vmem:[%s4050_s11 + $0x70] sm:$0xff] }
 0x13a   : > { %1975 = vst [vmem:[#allocation1 + $0x10] ss:$2 sm:$0xff] %v1812_v60  ;;  %v2300_v7 = vsel %vm923_vm0, %v1969_v59, 0.0  ;;  %v2302_v29 = vsel %vm923_vm0, %v1970_v18, 0.0  ;;  %2277 = vadd.xlane.f32.xlu2 %v2276_v12  ;;  %v2304_v55 = vsel %vm923_vm0, %v1971_v26, 0.0  ;;  %v1668_v60 = vld [vmem:[%s4050_s11 + $0x68] sm:$0xff]  ;;  %v1712_v59 = vunpack.c.h.bf16 %v1667_v40 }
 0x13b   : > { %v2293_v52 = vadd.f32 %v2292_v17, %v2291_v48  ;;  %1976 = vst [vmem:[#allocation1 + $0x20] ss:$2 sm:$0xff] %v1813_v41  ;;  %v2306_v3 = vsel %vm923_vm0, %v1972_v63, 0.0  ;;  %v2308_v18 = vsel %vm923_vm0, %v1973_v38, 0.0  ;;  %v1714_v28 = vunpack.c.h.bf16 %v1668_v60 }
 0x13c   : > { %1977 = vst [vmem:[#allocation1 + $0x30] ss:$2 sm:$0xff] %v1814_v61  ;;  %v1713_v61 = vunpack.c.l.bf16 %v1668_v60  ;;  %v1819_v48 = vmul.f32 %v4465_v54, %v1711_v16  ;;  %v1820_v38 = vmul.f32 %v4482_v23, %v1712_v59  ;;  %v1716_v40 = vunpack.c.h.bf16 %v1669_v51 }
 0x13d   : > { %v2295_v9 = vadd.f32 %v2294_v4, %v2293_v52  ;;  %v1822_v0 = vmul.f32 %v4496_v46, %v1714_v28 }
 0x13f   : > { %v2297_v6 = vadd.f32 %v2296_v5, %v2295_v9  ;;  %v1821_v5 = vmul.f32 %v4493_v27, %v1713_v61 }
 0x140   : > { %v1978_v32 = vld.sshfl [vmem:[#allocation1] sm:$0xff pattern:$0x75316420]  ;;  %v1979_v10 = vld.sshfl [vmem:[#allocation1 + $0x8] sm:$0xff pattern:$0x75316420] }
 0x141   : > { %v2299_v14 = vadd.f32 %v2298_v53, %v2297_v6  ;;  %v1980_v11 = vld.sshfl [vmem:[#allocation1 + $0x10] sm:$0xff pattern:$0x75316420]  ;;  %v1981_v39 = vld.sshfl [vmem:[#allocation1 + $0x18] sm:$0xff pattern:$0x75316420] }
 0x142   : > { %v1982_v45 = vld.sshfl [vmem:[#allocation1 + $0x20] sm:$0xff pattern:$0x75316420]  ;;  %v1983_v57 = vld.sshfl [vmem:[#allocation1 + $0x28] sm:$0xff pattern:$0x75316420] }
 0x143   : > { %v2301_v47 = vadd.f32 %v2300_v7, %v2299_v14  ;;  %v1984_v15 = vld.sshfl [vmem:[#allocation1 + $0x30] sm:$0xff pattern:$0x75316420]  ;;  %v1985_v21 = vld.sshfl [vmem:[#allocation1 + $0x38] sm:$0xff pattern:$0x75316420] }
 0x144   : > { %1986 = vst [vmem:[#allocation1] ss:$2 sm:$0xff] %v1815_v34  ;;  %v2312_v49 = vsel %vm923_vm0, %v1978_v32, 0.0  ;;  %v2313_v50 = vsel %vm923_vm0, %v1979_v10, 0.0  ;;  %v2315_v35 = vsel %vm923_vm0, %v1980_v11, 0.0  ;;  %v2317_v43 = vsel %vm923_vm0, %v1981_v39, 0.0 }
 0x145   : > { %v2303_v56 = vadd.f32 %v2302_v29, %v2301_v47  ;;  %1987 = vst [vmem:[#allocation1 + $0x10] ss:$2 sm:$0xff] %v1816_v13  ;;  %v2314_v17 = vadd.f32 %v2313_v50, %v2312_v49  ;;  %v2319_v22 = vsel %vm923_vm0, %v1982_v45, 0.0  ;;  %v2321_v31 = vsel %vm923_vm0, %v1983_v57, 0.0  ;;  %v1670_v34 = vld [vmem:[%s4050_s11 + $0x78] sm:$0xff] }
 0x146   : > { %1988 = vst [vmem:[#allocation1 + $0x20] ss:$2 sm:$0xff] %v1817_v58  ;;  %v2323_v24 = vsel %vm923_vm0, %v1984_v15, 0.0  ;;  %v2325_v52 = vsel %vm923_vm0, %v1985_v21, 0.0  ;;  %v1715_v32 = vunpack.c.l.bf16 %v1669_v51  ;;  %v1717_v14 = vunpack.c.l.bf16 %v1670_v34  ;;  %v1671_v21 = vld [vmem:[%s4050_s11 + $0x80] sm:$0xff] }
 0x147   : > { %v2305_v36 = vadd.f32 %v2304_v55, %v2303_v56  ;;  %1989 = vst [vmem:[#allocation1 + $0x30] ss:$2 sm:$0xff] %v1818_v8  ;;  %v2316_v41 = vadd.f32 %v2315_v35, %v2314_v17  ;;  %v1718_v39 = vunpack.c.h.bf16 %v1670_v34  ;;  %v1824_v55 = vmul.f32 %v4517_v33, %v1716_v40 }
 0x148   : > { %v1823_v8 = vmul.f32 %v4513_v19, %v1715_v32  ;;  %v1825_v56 = vmul.f32 %v4520_v20, %v1717_v14  ;;  %v1719_v28 = vunpack.c.l.bf16 %v1671_v21 }
 0x149   : > { %v2307_v62 = vadd.f32 %v2306_v3, %v2305_v36  ;;  %v2318_v26 = vadd.f32 %v2317_v43, %v2316_v41  ;;  %v1826_v16 = vmul.f32 %v4525_v44, %v1718_v39 }
 0x14b   : > { %v2309_v63 = vadd.f32 %v2308_v18, %v2307_v62  ;;  %v1990_v4 = vld.sshfl [vmem:[#allocation1] sm:$0xff pattern:$0x75316420]  ;;  %v2320_v2 = vadd.f32 %v2319_v22, %v2318_v26  ;;  %v1991_v1 = vld.sshfl [vmem:[#allocation1 + $0x8] sm:$0xff pattern:$0x75316420] }
 0x14c   : > { %v1992_v25 = vld.sshfl [vmem:[#allocation1 + $0x10] sm:$0xff pattern:$0x75316420]  ;;  %v1993_v37 = vld.sshfl [vmem:[#allocation1 + $0x18] sm:$0xff pattern:$0x75316420] }
 0x14d   : > { %2310 = vadd.xlane.f32.xlu0 %v2309_v63  ;;  %v1994_v42 = vld.sshfl [vmem:[#allocation1 + $0x20] sm:$0xff pattern:$0x75316420]  ;;  %v2322_v9 = vadd.f32 %v2321_v31, %v2320_v2  ;;  %v1995_v30 = vld.sshfl [vmem:[#allocation1 + $0x28] sm:$0xff pattern:$0x75316420]  ;;  %v1720_v2 = vunpack.c.h.bf16 %v1671_v21 }
 0x14e   : > { %v1996_v53 = vld.sshfl [vmem:[#allocation1 + $0x30] sm:$0xff pattern:$0x75316420]  ;;  %v1997_v6 = vld.sshfl [vmem:[#allocation1 + $0x38] sm:$0xff pattern:$0x75316420] }
 0x14f   : > { %v2324_v7 = vadd.f32 %v2323_v24, %v2322_v9  ;;  %1998 = vst [vmem:[#allocation1] ss:$2 sm:$0xff] %v1819_v48  ;;  %v2327_v29 = vsel %vm923_vm0, %v1990_v4, 0.0  ;;  %v2329_v10 = vsel %vm923_vm0, %v1991_v1, 0.0  ;;  %v2331_v11 = vsel %vm923_vm0, %v1992_v25, 0.0  ;;  %v1672_v26 = vld [vmem:[%s4050_s11 + $0x88] sm:$0xff] }
 0x150   : > { %1999 = vst [vmem:[#allocation1 + $0x10] ss:$2 sm:$0xff] %v1820_v38  ;;  %v2333_v45 = vsel %vm923_vm0, %v1993_v37, 0.0  ;;  %v2335_v57 = vsel %vm923_vm0, %v1994_v42, 0.0  ;;  %v2337_v41 = vsel %vm923_vm0, %v1995_v30, 0.0  ;;  %v2339_v48 = vsel %vm923_vm0, %v1996_v53, 0.0 }
 0x151   : > { %v2326_v12 = vadd.f32 %v2325_v52, %v2324_v7  ;;  %2000 = vst [vmem:[#allocation1 + $0x20] ss:$2 sm:$0xff] %v1821_v5  ;;  %v2341_v24 = vsel %vm923_vm0, %v1997_v6, 0.0  ;;  %v1721_v38 = vunpack.c.l.bf16 %v1672_v26  ;;  %v1722_v5 = vunpack.c.h.bf16 %v1672_v26 }
 0x152   : > { %2001 = vst [vmem:[#allocation1 + $0x30] ss:$2 sm:$0xff] %v1822_v0  ;;  %v1827_v37 = vmul.f32 %v4465_v54, %v1719_v28  ;;  %v1828_v6 = vmul.f32 %v4482_v23, %v1720_v2 }
 0x153   : > { %v2328_v13 = vadd.f32 %v2327_v29, %v2326_v12  ;;  %v1829_v34 = vmul.f32 %v4493_v27, %v1721_v38  ;;  %v1830_v40 = vmul.f32 %v4496_v46, %v1722_v5 }
 0x155   : > { %v2330_v58 = vadd.f32 %v2329_v10, %v2328_v13 }
 0x156   : > { %v2002_v47 = vld.sshfl [vmem:[#allocation1] sm:$0xff pattern:$0x75316420]  ;;  %v2003_v15 = vld.sshfl [vmem:[#allocation1 + $0x8] sm:$0xff pattern:$0x75316420] }
 0x157   : > { %v2332_v49 = vadd.f32 %v2331_v11, %v2330_v58  ;;  %v2004_v50 = vld.sshfl [vmem:[#allocation1 + $0x10] sm:$0xff pattern:$0x75316420]  ;;  %v2005_v35 = vld.sshfl [vmem:[#allocation1 + $0x18] sm:$0xff pattern:$0x75316420] }
 0x158   : > { %v2006_v17 = vld.sshfl [vmem:[#allocation1 + $0x20] sm:$0xff pattern:$0x75316420]  ;;  %v2007_v60 = vld.sshfl [vmem:[#allocation1 + $0x28] sm:$0xff pattern:$0x75316420] }
 0x159   : > { %v2334_v3 = vadd.f32 %v2333_v45, %v2332_v49  ;;  %v2008_v43 = vld.sshfl [vmem:[#allocation1 + $0x30] sm:$0xff pattern:$0x75316420]  ;;  %v2009_v36 = vld.sshfl [vmem:[#allocation1 + $0x38] sm:$0xff pattern:$0x75316420] }
 0x15a   : > { %2010 = vst [vmem:[#allocation1] ss:$2 sm:$0xff] %v1823_v8  ;;  %v2345_v59 = vsel %vm923_vm0, %v2002_v47, 0.0  ;;  %v2346_v18 = vsel %vm923_vm0, %v2003_v15, 0.0  ;;  %v2348_v22 = vsel %vm923_vm0, %v2004_v50, 0.0  ;;  %v2350_v31 = vsel %vm923_vm0, %v2005_v35, 0.0 }
 0x15b   : > { %v2336_v61 = vadd.f32 %v2335_v57, %v2334_v3  ;;  %2011 = vst [vmem:[#allocation1 + $0x10] ss:$2 sm:$0xff] %v1824_v55  ;;  %v2347_v62 = vadd.f32 %v2346_v18, %v2345_v59  ;;  %v2352_v52 = vsel %vm923_vm0, %v2006_v17, 0.0  ;;  %v2354_v42 = vsel %vm923_vm0, %v2007_v60, 0.0  ;;  %v1673_v11 = vld [vmem:[%s4050_s11 + $0x90] sm:$0xff]  ;;  %v1674_v57 = vld [vmem:[%s4050_s11 + $0x98] sm:$0xff] }
 0x15c   : > { %2012 = vst [vmem:[#allocation1 + $0x20] ss:$2 sm:$0xff] %v1825_v56  ;;  %v2356_v53 = vsel %vm923_vm0, %v2008_v43, 0.0  ;;  %v2358_v51 = vsel %vm923_vm0, %v2009_v36, 0.0  ;;  %v1723_v47 = vunpack.c.l.bf16 %v1673_v11  ;;  %v1724_v21 = vunpack.c.h.bf16 %v1673_v11  ;;  %v1675_v36 = vld [vmem:[%s4050_s11 + $0xa0] sm:$0xff] }
 0x15d   : > { %v2338_v63 = vadd.f32 %v2337_v41, %v2336_v61  ;;  %2013 = vst [vmem:[#allocation1 + $0x30] ss:$2 sm:$0xff] %v1826_v16  ;;  %v2349_v4 = vadd.f32 %v2348_v22, %v2347_v62  ;;  %v1725_v49 = vunpack.c.l.bf16 %v1674_v57  ;;  %v1726_v35 = vunpack.c.h.bf16 %v1674_v57 }
 0x15e   : > { %v1831_v16 = vmul.f32 %v4513_v19, %v1723_v47  ;;  %v1832_v41 = vmul.f32 %v4517_v33, %v1724_v21  ;;  %v1727_v5 = vunpack.c.l.bf16 %v1675_v36 }
 0x15f   : > { %v2340_v1 = vadd.f32 %v2339_v48, %v2338_v63  ;;  %v2351_v25 = vadd.f32 %v2350_v31, %v2349_v4  ;;  %v1833_v61 = vmul.f32 %v4520_v20, %v1725_v49  ;;  %v1834_v28 = vmul.f32 %v4525_v44, %v1726_v35 }
 0x161   : > { %v2342_v9 = vadd.f32 %v2341_v24, %v2340_v1  ;;  %v2014_v0 = vld.sshfl [vmem:[#allocation1] sm:$0xff pattern:$0x75316420]  ;;  %v2353_v30 = vadd.f32 %v2352_v52, %v2351_v25  ;;  %v2015_v7 = vld.sshfl [vmem:[#allocation1 + $0x8] sm:$0xff pattern:$0x75316420] }
 0x162   : > { %v2016_v29 = vld.sshfl [vmem:[#allocation1 + $0x10] sm:$0xff pattern:$0x75316420]  ;;  %v2017_v12 = vld.sshfl [vmem:[#allocation1 + $0x18] sm:$0xff pattern:$0x75316420] }
 0x163   : > { %2343 = vadd.xlane.f32.xlu1 %v2342_v9  ;;  %v2018_v32 = vld.sshfl [vmem:[#allocation1 + $0x20] sm:$0xff pattern:$0x75316420]  ;;  %v2355_v10 = vadd.f32 %v2354_v42, %v2353_v30  ;;  %v2019_v13 = vld.sshfl [vmem:[#allocation1 + $0x28] sm:$0xff pattern:$0x75316420]  ;;  %v1728_v30 = vunpack.c.h.bf16 %v1675_v36 }
 0x164   : > { %v2020_v14 = vld.sshfl [vmem:[#allocation1 + $0x30] sm:$0xff pattern:$0x75316420]  ;;  %v2021_v39 = vld.sshfl [vmem:[#allocation1 + $0x38] sm:$0xff pattern:$0x75316420] }
 0x165   : > { %v2357_v58 = vadd.f32 %v2356_v53, %v2355_v10  ;;  %2022 = vst [vmem:[#allocation1] ss:$2 sm:$0xff] %v1827_v37  ;;  %v2360_v45 = vsel %vm923_vm0, %v2014_v0, 0.0  ;;  %v2362_v15 = vsel %vm923_vm0, %v2015_v7, 0.0  ;;  %v2364_v50 = vsel %vm923_vm0, %v2016_v29, 0.0  ;;  %v1676_v25 = vld [vmem:[%s4050_s11 + $0xa8] sm:$0xff] }
 0x166   : > { %2023 = vst [vmem:[#allocation1 + $0x10] ss:$2 sm:$0xff] %v1828_v6  ;;  %v2366_v17 = vsel %vm923_vm0, %v2017_v12, 0.0  ;;  %v2368_v60 = vsel %vm923_vm0, %v2018_v32, 0.0  ;;  %v2370_v4 = vsel %vm923_vm0, %v2019_v13, 0.0  ;;  %v2372_v37 = vsel %vm923_vm0, %v2020_v14, 0.0 }
 0x167   : > { %v2359_v8 = vadd.f32 %v2358_v51, %v2357_v58  ;;  %2024 = vst [vmem:[#allocation1 + $0x20] ss:$2 sm:$0xff] %v1829_v34  ;;  %v2374_v53 = vsel %vm923_vm0, %v2021_v39, 0.0  ;;  %v1729_v6 = vunpack.c.l.bf16 %v1676_v25  ;;  %v1730_v34 = vunpack.c.h.bf16 %v1676_v25 }
 0x168   : > { %2025 = vst [vmem:[#allocation1 + $0x30] ss:$2 sm:$0xff] %v1830_v40  ;;  %v1835_v12 = vmul.f32 %v4465_v54, %v1727_v5  ;;  %v1836_v39 = vmul.f32 %v4482_v23, %v1728_v30 }
 0x169   : > { %v2361_v55 = vadd.f32 %v2360_v45, %v2359_v8  ;;  %v1837_v57 = vmul.f32 %v4493_v27, %v1729_v6  ;;  %v1838_v21 = vmul.f32 %v4496_v46, %v1730_v34 }
 0x16b   : > { %v2363_v56 = vadd.f32 %v2362_v15, %v2361_v55 }
 0x16c   : > { %v2026_v3 = vld.sshfl [vmem:[#allocation1] sm:$0xff pattern:$0x75316420]  ;;  %v2027_v43 = vld.sshfl [vmem:[#allocation1 + $0x8] sm:$0xff pattern:$0x75316420] }
 0x16d   : > { %v2365_v59 = vadd.f32 %v2364_v50, %v2363_v56  ;;  %v2028_v18 = vld.sshfl [vmem:[#allocation1 + $0x10] sm:$0xff pattern:$0x75316420]  ;;  %v2029_v22 = vld.sshfl [vmem:[#allocation1 + $0x18] sm:$0xff pattern:$0x75316420] }
 0x16e   : > { %v2030_v62 = vld.sshfl [vmem:[#allocation1 + $0x20] sm:$0xff pattern:$0x75316420]  ;;  %v2031_v26 = vld.sshfl [vmem:[#allocation1 + $0x28] sm:$0xff pattern:$0x75316420] }
 0x16f   : > { %v2367_v48 = vadd.f32 %v2366_v17, %v2365_v59  ;;  %v2032_v31 = vld.sshfl [vmem:[#allocation1 + $0x30] sm:$0xff pattern:$0x75316420]  ;;  %v2033_v63 = vld.sshfl [vmem:[#allocation1 + $0x38] sm:$0xff pattern:$0x75316420] }
 0x170   : > { %2034 = vst [vmem:[#allocation1] ss:$2 sm:$0xff] %v1831_v16  ;;  %v2378_v2 = vsel %vm923_vm0, %v2026_v3, 0.0  ;;  %v2379_v24 = vsel %vm923_vm0, %v2027_v43, 0.0  ;;  %v2381_v52 = vsel %vm923_vm0, %v2028_v18, 0.0  ;;  %v2383_v42 = vsel %vm923_vm0, %v2029_v22, 0.0 }
 0x171   : > { %v2369_v38 = vadd.f32 %v2368_v60, %v2367_v48  ;;  %2035 = vst [vmem:[#allocation1 + $0x10] ss:$2 sm:$0xff] %v1832_v41  ;;  %v2380_v1 = vadd.f32 %v2379_v24, %v2378_v2  ;;  %v2385_v51 = vsel %vm923_vm0, %v2030_v62, 0.0  ;;  %v2387_v32 = vsel %vm923_vm0, %v2031_v26, 0.0  ;;  %v1677_v50 = vld [vmem:[%s4050_s11 + $0xb0] sm:$0xff]  ;;  %v1678_v60 = vld [vmem:[%s4050_s11 + $0xb8] sm:$0xff] }
 0x172   : > { %2036 = vst [vmem:[#allocation1 + $0x20] ss:$2 sm:$0xff] %v1833_v61  ;;  %v2389_v14 = vsel %vm923_vm0, %v2032_v31, 0.0  ;;  %v2391_v11 = vsel %vm923_vm0, %v2033_v63, 0.0  ;;  %v1731_v3 = vunpack.c.l.bf16 %v1677_v50  ;;  %v1732_v36 = vunpack.c.h.bf16 %v1677_v50  ;;  %v1679_v63 = vld [vmem:[%s4050_s11 + $0xc0] sm:$0xff] }
 0x173   : > { %v2371_v9 = vadd.f32 %v2370_v4, %v2369_v38  ;;  %2037 = vst [vmem:[#allocation1 + $0x30] ss:$2 sm:$0xff] %v1834_v28  ;;  %v2382_v0 = vadd.f32 %v2381_v52, %v2380_v1  ;;  %v1733_v59 = vunpack.c.l.bf16 %v1678_v60  ;;  %v1734_v22 = vunpack.c.h.bf16 %v1678_v60 }
 0x174   : > { %v1839_v28 = vmul.f32 %v4513_v19, %v1731_v3  ;;  %v1840_v4 = vmul.f32 %v4517_v33, %v1732_v36  ;;  %v1735_v34 = vunpack.c.l.bf16 %v1679_v63 }
 0x175   : > { %v2373_v7 = vadd.f32 %v2372_v37, %v2371_v9  ;;  %v2384_v29 = vadd.f32 %v2383_v42, %v2382_v0  ;;  %v1841_v38 = vmul.f32 %v4520_v20, %v1733_v59  ;;  %v1842_v5 = vmul.f32 %v4525_v44, %v1734_v22 }
 0x177   : > { %v2375_v10 = vadd.f32 %v2374_v53, %v2373_v7  ;;  %v2038_v40 = vld.sshfl [vmem:[#allocation1] sm:$0xff pattern:$0x75316420]  ;;  %v2386_v13 = vadd.f32 %v2385_v51, %v2384_v29  ;;  %v2039_v58 = vld.sshfl [vmem:[#allocation1 + $0x8] sm:$0xff pattern:$0x75316420] }
 0x178   : > { %v2040_v45 = vld.sshfl [vmem:[#allocation1 + $0x10] sm:$0xff pattern:$0x75316420]  ;;  %v2041_v8 = vld.sshfl [vmem:[#allocation1 + $0x18] sm:$0xff pattern:$0x75316420] }
 0x179   : > { %2376 = vadd.xlane.f32.xlu2 %v2375_v10  ;;  %v2042_v47 = vld.sshfl [vmem:[#allocation1 + $0x20] sm:$0xff pattern:$0x75316420]  ;;  %v2388_v15 = vadd.f32 %v2387_v32, %v2386_v13  ;;  %v2043_v55 = vld.sshfl [vmem:[#allocation1 + $0x28] sm:$0xff pattern:$0x75316420]  ;;  %v1736_v13 = vunpack.c.h.bf16 %v1679_v63 }
 0x17a   : > { %v2044_v49 = vld.sshfl [vmem:[#allocation1 + $0x30] sm:$0xff pattern:$0x75316420]  ;;  %v2045_v35 = vld.sshfl [vmem:[#allocation1 + $0x38] sm:$0xff pattern:$0x75316420] }
 0x17b   : > { %v2390_v56 = vadd.f32 %v2389_v14, %v2388_v15  ;;  %2046 = vst [vmem:[#allocation1] ss:$2 sm:$0xff] %v1835_v12  ;;  %v2393_v17 = vsel %vm923_vm0, %v2038_v40, 0.0  ;;  %v2395_v43 = vsel %vm923_vm0, %v2039_v58, 0.0  ;;  %v2397_v18 = vsel %vm923_vm0, %v2040_v45, 0.0  ;;  %v1680_v29 = vld [vmem:[%s4050_s11 + $0xc8] sm:$0xff] }
 0x17c   : > { %2047 = vst [vmem:[#allocation1 + $0x10] ss:$2 sm:$0xff] %v1836_v39  ;;  %v2399_v62 = vsel %vm923_vm0, %v2041_v8, 0.0  ;;  %v2401_v26 = vsel %vm923_vm0, %v2042_v47, 0.0  ;;  %v2403_v0 = vsel %vm923_vm0, %v2043_v55, 0.0  ;;  %v2405_v12 = vsel %vm923_vm0, %v2044_v49, 0.0 }
 0x17d   : > { %v2392_v16 = vadd.f32 %v2391_v11, %v2390_v56  ;;  %2048 = vst [vmem:[#allocation1 + $0x20] ss:$2 sm:$0xff] %v1837_v57  ;;  %v2407_v14 = vsel %vm923_vm0, %v2045_v35, 0.0  ;;  %v1737_v39 = vunpack.c.l.bf16 %v1680_v29  ;;  %v1738_v57 = vunpack.c.h.bf16 %v1680_v29 }
 0x17e   : > { %2049 = vst [vmem:[#allocation1 + $0x30] ss:$2 sm:$0xff] %v1838_v21  ;;  %v1843_v8 = vmul.f32 %v4465_v54, %v1735_v34  ;;  %v1844_v35 = vmul.f32 %v4482_v23, %v1736_v13 }
 0x17f   : > { %v2394_v41 = vadd.f32 %v2393_v17, %v2392_v16  ;;  %v1845_v60 = vmul.f32 %v4493_v27, %v1737_v39  ;;  %v1846_v36 = vmul.f32 %v4496_v46, %v1738_v57 }
 0x181   : > { %v2396_v61 = vadd.f32 %v2395_v43, %v2394_v41 }
 0x182   : > { %v2050_v48 = vld.sshfl [vmem:[#allocation1] sm:$0xff pattern:$0x75316420]  ;;  %v2051_v31 = vld.sshfl [vmem:[#allocation1 + $0x8] sm:$0xff pattern:$0x75316420] }
 0x183   : > { %v2398_v2 = vadd.f32 %v2397_v18, %v2396_v61  ;;  %v2052_v24 = vld.sshfl [vmem:[#allocation1 + $0x10] sm:$0xff pattern:$0x75316420]  ;;  %v2053_v52 = vld.sshfl [vmem:[#allocation1 + $0x18] sm:$0xff pattern:$0x75316420] }
 0x184   : > { %v2054_v1 = vld.sshfl [vmem:[#allocation1 + $0x20] sm:$0xff pattern:$0x75316420]  ;;  %v2055_v25 = vld.sshfl [vmem:[#allocation1 + $0x28] sm:$0xff pattern:$0x75316420] }
 0x185   : > { %v2400_v37 = vadd.f32 %v2399_v62, %v2398_v2  ;;  %v2056_v42 = vld.sshfl [vmem:[#allocation1 + $0x30] sm:$0xff pattern:$0x75316420]  ;;  %v2057_v9 = vld.sshfl [vmem:[#allocation1 + $0x38] sm:$0xff pattern:$0x75316420] }
 0x186   : > { %2058 = vst [vmem:[#allocation1] ss:$2 sm:$0xff] %v1839_v28  ;;  %v2411_v30 = vsel %vm923_vm0, %v2050_v48, 0.0  ;;  %v2412_v53 = vsel %vm923_vm0, %v2051_v31, 0.0  ;;  %v2414_v51 = vsel %vm923_vm0, %v2052_v24, 0.0  ;;  %v2416_v32 = vsel %vm923_vm0, %v2053_v52, 0.0 }
 0x187   : > { %v2402_v6 = vadd.f32 %v2401_v26, %v2400_v37  ;;  %2059 = vst [vmem:[#allocation1 + $0x10] ss:$2 sm:$0xff] %v1840_v4  ;;  %v2413_v7 = vadd.f32 %v2412_v53, %v2411_v30  ;;  %v2418_v11 = vsel %vm923_vm0, %v2054_v1, 0.0  ;;  %v2420_v47 = vsel %vm923_vm0, %v2055_v25, 0.0  ;;  %v1681_v18 = vld [vmem:[%s4050_s11 + $0xd0] sm:$0xff]  ;;  %v1682_v26 = vld [vmem:[%s4050_s11 + $0xd8] sm:$0xff] }
 0x188   : > { %2060 = vst [vmem:[#allocation1 + $0x20] ss:$2 sm:$0xff] %v1841_v38  ;;  %v2422_v49 = vsel %vm923_vm0, %v2056_v42, 0.0  ;;  %v2424_v50 = vsel %vm923_vm0, %v2057_v9, 0.0  ;;  %v1739_v48 = vunpack.c.l.bf16 %v1681_v18  ;;  %v1740_v63 = vunpack.c.h.bf16 %v1681_v18  ;;  %v1683_v9 = vld [vmem:[%s4050_s11 + $0xe0] sm:$0xff] }
 0x189   : > { %v2404_v10 = vadd.f32 %v2403_v0, %v2402_v6  ;;  %2061 = vst [vmem:[#allocation1 + $0x30] ss:$2 sm:$0xff] %v1842_v5  ;;  %v2415_v40 = vadd.f32 %v2414_v51, %v2413_v7  ;;  %v1741_v2 = vunpack.c.l.bf16 %v1682_v26  ;;  %v1742_v52 = vunpack.c.h.bf16 %v1682_v26 }
 0x18a   : > { %v1847_v5 = vmul.f32 %v4513_v19, %v1739_v48  ;;  %v1848_v0 = vmul.f32 %v4517_v33, %v1740_v63  ;;  %v1743_v57 = vunpack.c.l.bf16 %v1683_v9 }
 0x18b   : > { %v2406_v58 = vadd.f32 %v2405_v12, %v2404_v10  ;;  %v2417_v45 = vadd.f32 %v2416_v32, %v2415_v40  ;;  %v1849_v6 = vmul.f32 %v4520_v20, %v1741_v2  ;;  %v1850_v34 = vmul.f32 %v4525_v44, %v1742_v52  ;;  %v1685_v2 = vld [vmem:[%s4050_s11 + $0xf0] sm:$0xff] }
 0x18d   : > { %v2408_v15 = vadd.f32 %v2407_v14, %v2406_v58  ;;  %v2062_v21 = vld.sshfl [vmem:[#allocation1] sm:$0xff pattern:$0x75316420]  ;;  %v2419_v55 = vadd.f32 %v2418_v11, %v2417_v45  ;;  %v2063_v56 = vld.sshfl [vmem:[#allocation1 + $0x8] sm:$0xff pattern:$0x75316420] }
 0x18e   : > { %v2064_v17 = vld.sshfl [vmem:[#allocation1 + $0x10] sm:$0xff pattern:$0x75316420]  ;;  %v2065_v16 = vld.sshfl [vmem:[#allocation1 + $0x18] sm:$0xff pattern:$0x75316420] }
 0x18f   : > { %2409 = vadd.xlane.f32.xlu0 %v2408_v15  ;;  %v2066_v3 = vld.sshfl [vmem:[#allocation1 + $0x20] sm:$0xff pattern:$0x75316420]  ;;  %v2421_v43 = vadd.f32 %v2420_v47, %v2419_v55  ;;  %v2067_v41 = vld.sshfl [vmem:[#allocation1 + $0x28] sm:$0xff pattern:$0x75316420]  ;;  %v1744_v55 = vunpack.c.h.bf16 %v1683_v9 }
 0x190   : > { %v2068_v59 = vld.sshfl [vmem:[#allocation1 + $0x30] sm:$0xff pattern:$0x75316420]  ;;  %v2069_v22 = vld.sshfl [vmem:[#allocation1 + $0x38] sm:$0xff pattern:$0x75316420] }
 0x191   : > { %v2423_v61 = vadd.f32 %v2422_v49, %v2421_v43  ;;  %2070 = vst [vmem:[#allocation1] ss:$2 sm:$0xff] %v1843_v8  ;;  %v2426_v62 = vsel %vm923_vm0, %v2062_v21, 0.0  ;;  %v2428_v31 = vsel %vm923_vm0, %v2063_v56, 0.0  ;;  %v2430_v24 = vsel %vm923_vm0, %v2064_v17, 0.0  ;;  %v1684_v45 = vld [vmem:[%s4050_s11 + $0xe8] sm:$0xff] }
 0x192   : > { %2071 = vst [vmem:[#allocation1 + $0x10] ss:$2 sm:$0xff] %v1844_v35  ;;  %v2432_v1 = vsel %vm923_vm0, %v2065_v16, 0.0  ;;  %v2434_v25 = vsel %vm923_vm0, %v2066_v3, 0.0  ;;  %v2436_v40 = vsel %vm923_vm0, %v2067_v41, 0.0  ;;  %v2438_v8 = vsel %vm923_vm0, %v2068_v59, 0.0 }
 0x193   : > { %v2425_v28 = vadd.f32 %v2424_v50, %v2423_v61  ;;  %2072 = vst [vmem:[#allocation1 + $0x20] ss:$2 sm:$0xff] %v1845_v60  ;;  %v2440_v49 = vsel %vm923_vm0, %v2069_v22, 0.0  ;;  %v1745_v35 = vunpack.c.l.bf16 %v1684_v45  ;;  %v1746_v60 = vunpack.c.h.bf16 %v1684_v45 }
 0x194   : > { %2073 = vst [vmem:[#allocation1 + $0x30] ss:$2 sm:$0xff] %v1846_v36  ;;  %v1851_v16 = vmul.f32 %v4465_v54, %v1743_v57  ;;  %v1852_v22 = vmul.f32 %v4482_v23, %v1744_v55  ;;  %v1686_v23 = vld [vmem:[%s4050_s11 + $0xf8] sm:$0xff] }
 0x195   : > { %v2427_v4 = vadd.f32 %v2426_v62, %v2425_v28  ;;  %v1853_v26 = vmul.f32 %v4493_v27, %v1745_v35  ;;  %v1750_v9 = vunpack.c.h.bf16 %v1686_v23 }
 0x197   : > { %v2429_v38 = vadd.f32 %v2428_v31, %v2427_v4  ;;  %v1854_v31 = vmul.f32 %v4496_v46, %v1746_v60 }
 0x198   : > { %v2074_v37 = vld.sshfl [vmem:[#allocation1] sm:$0xff pattern:$0x75316420]  ;;  %v2075_v42 = vld.sshfl [vmem:[#allocation1 + $0x8] sm:$0xff pattern:$0x75316420] }
 0x199   : > { %v2431_v30 = vadd.f32 %v2430_v24, %v2429_v38  ;;  %v2076_v53 = vld.sshfl [vmem:[#allocation1 + $0x10] sm:$0xff pattern:$0x75316420]  ;;  %v2077_v51 = vld.sshfl [vmem:[#allocation1 + $0x18] sm:$0xff pattern:$0x75316420] }
 0x19a   : > { %v2078_v7 = vld.sshfl [vmem:[#allocation1 + $0x20] sm:$0xff pattern:$0x75316420]  ;;  %v2079_v29 = vld.sshfl [vmem:[#allocation1 + $0x28] sm:$0xff pattern:$0x75316420] }
 0x19b   : > { %v2433_v12 = vadd.f32 %v2432_v1, %v2431_v30  ;;  %v2080_v32 = vld.sshfl [vmem:[#allocation1 + $0x30] sm:$0xff pattern:$0x75316420]  ;;  %v2081_v10 = vld.sshfl [vmem:[#allocation1 + $0x38] sm:$0xff pattern:$0x75316420] }
 0x19c   : > { %2082 = vst [vmem:[#allocation1] ss:$2 sm:$0xff] %v1847_v5  ;;  %v2444_v13 = vsel %vm923_vm0, %v2074_v37, 0.0  ;;  %v2445_v14 = vsel %vm923_vm0, %v2075_v42, 0.0  ;;  %v2447_v11 = vsel %vm923_vm0, %v2076_v53, 0.0  ;;  %v2449_v47 = vsel %vm923_vm0, %v2077_v51, 0.0 }
 0x19d   : > { %v2435_v39 = vadd.f32 %v2434_v25, %v2433_v12  ;;  %2083 = vst [vmem:[#allocation1 + $0x10] ss:$2 sm:$0xff] %v1848_v0  ;;  %v2446_v58 = vadd.f32 %v2445_v14, %v2444_v13  ;;  %v2451_v50 = vsel %vm923_vm0, %v2078_v7, 0.0  ;;  %v2453_v3 = vsel %vm923_vm0, %v2079_v29, 0.0 }
 0x19e   : > { %2084 = vst [vmem:[#allocation1 + $0x20] ss:$2 sm:$0xff] %v1849_v6  ;;  %v2455_v59 = vsel %vm923_vm0, %v2080_v32, 0.0  ;;  %v2457_v18 = vsel %vm923_vm0, %v2081_v10, 0.0  ;;  %v1747_v25 = vunpack.c.l.bf16 %v1685_v2  ;;  %v1748_v5 = vunpack.c.h.bf16 %v1685_v2 }
 0x19f   : > { %v2437_v15 = vadd.f32 %v2436_v40, %v2435_v39  ;;  %2085 = vst [vmem:[#allocation1 + $0x30] ss:$2 sm:$0xff] %v1850_v34  ;;  %v2448_v21 = vadd.f32 %v2447_v11, %v2446_v58  ;;  %v1749_v42 = vunpack.c.l.bf16 %v1686_v23  ;;  %v1858_v13 = vmul.f32 %v4525_v44, %v1750_v9  ;;  %v1423_v39 = vpop.xlane.xlu0 %1422  ;;  %v1489_v58 = vpop.xlane.xlu1 %1488  ;;  %v3575_v44 = vld [vmem:[%s5055_s8 + $0x38] sm:$0xff] }
 0x1a0   : > { %v1855_v30 = vmul.f32 %v4513_v19, %v1747_v25  ;;  %v1856_v6 = vmul.f32 %v4517_v33, %v1748_v5  ;;  %786 = vmatpush.bf16.msra.mxu1 %v3575_v44 }
 0x1a1   : > { %v2439_v56 = vadd.f32 %v2438_v8, %v2437_v15  ;;  %v2450_v17 = vadd.f32 %v2449_v47, %v2448_v21  ;;  %v1857_v12 = vmul.f32 %v4520_v20, %v1749_v42  ;;  %v1555_v8 = vpop.xlane.xlu2 %1554 }
 0x1a3   : > { %v2441_v43 = vadd.f32 %v2440_v49, %v2439_v56  ;;  %v2086_v36 = vld.sshfl [vmem:[#allocation1] sm:$0xff pattern:$0x75316420]  ;;  %v2452_v41 = vadd.f32 %v2451_v50, %v2450_v17  ;;  %v2087_v61 = vld.sshfl [vmem:[#allocation1 + $0x8] sm:$0xff pattern:$0x75316420]  ;;  %v2539_v56 = vlaneseq  ;;  %v2510_v17 = vpack.c.bf16 %v1423_v39, %v1423_v39 }
 0x1a4   : > { %v2088_v62 = vld.sshfl [vmem:[#allocation1 + $0x10] sm:$0xff pattern:$0x75316420]  ;;  %v2089_v28 = vld.sshfl [vmem:[#allocation1 + $0x18] sm:$0xff pattern:$0x75316420] }
 0x1a5   : > { %2442 = vadd.xlane.f32.xlu1 %v2441_v43  ;;  %v2090_v54 = vld.sshfl [vmem:[#allocation1 + $0x20] sm:$0xff pattern:$0x75316420]  ;;  %v2454_v48 = vadd.f32 %v2453_v3, %v2452_v41  ;;  %v2091_v63 = vld.sshfl [vmem:[#allocation1 + $0x28] sm:$0xff pattern:$0x75316420]  ;;  %v2512_v3 = vpack.c.bf16 %v1489_v58, %v1489_v58 }
 0x1a6   : > { %v2092_v4 = vld.sshfl [vmem:[#allocation1 + $0x30] sm:$0xff pattern:$0x75316420]  ;;  %v2093_v24 = vld.sshfl [vmem:[#allocation1 + $0x38] sm:$0xff pattern:$0x75316420] }
 0x1a7   : > { %v2456_v52 = vadd.f32 %v2455_v59, %v2454_v48  ;;  %2094 = vst [vmem:[#allocation1] ss:$2 sm:$0xff] %v1851_v16  ;;  %v2459_v38 = vsel %vm923_vm0, %v2086_v36, 0.0  ;;  %v2461_v27 = vsel %vm923_vm0, %v2087_v61, 0.0  ;;  %v2463_v46 = vsel %vm923_vm0, %v2088_v62, 0.0  ;;  %v3574_v43 = vld [vmem:[%s5055_s8 + $0x30] sm:$0xff] }
 0x1a8   : > { %2095 = vst [vmem:[#allocation1 + $0x10] ss:$2 sm:$0xff] %v1852_v22  ;;  %v2465_v53 = vsel %vm923_vm0, %v2089_v28, 0.0  ;;  %v2467_v32 = vsel %vm923_vm0, %v2090_v54, 0.0  ;;  %v2469_v10 = vsel %vm923_vm0, %v2091_v63, 0.0  ;;  %v2471_v45 = vsel %vm923_vm0, %v2092_v4, 0.0  ;;  %v1456_v28 = vpop.xlane.xlu0 %1455  ;;  %v1522_v54 = vpop.xlane.xlu1 %1521  ;;  %787 = vmatpush.bf16.msra.mxu1 %v3574_v43 }
 0x1a9   : > { %v2458_v1 = vadd.f32 %v2457_v18, %v2456_v52  ;;  %2096 = vst [vmem:[#allocation1 + $0x20] ss:$2 sm:$0xff] %v1853_v26  ;;  %v2473_v60 = vsel %vm923_vm0, %v2093_v24, 0.0  ;;  %v2514_v18 = vpack.c.bf16 %v1555_v8, %v1555_v8  ;;  %v4759_v62 = vand.u32 127, %v2539_v56  ;;  %v1588_v2 = vpop.xlane.xlu2 %1587  ;;  %v3573_v24 = vld [vmem:[%s5055_s8 + $0x28] sm:$0xff]  ;;  %v3571_v8 = vld [vmem:[%s5055_s8 + $0x18] sm:$0xff] }
 0x1aa   : > { %2097 = vst [vmem:[#allocation1 + $0x30] ss:$2 sm:$0xff] %v1854_v31  ;;  %v2531_v26 = vunpack.c.l.b16 %v2510_v17  ;;  %v2533_v31 = vunpack.c.l.b16 %v2512_v3  ;;  %v2511_v63 = vpack.c.bf16 %v1456_v28, %v1456_v28  ;;  %v2513_v4 = vpack.c.bf16 %v1522_v54, %v1522_v54 }
 0x1ab   : > { %v2460_v37 = vadd.f32 %v2459_v38, %v2458_v1  ;;  %v2535_v1 = vunpack.c.l.b16 %v2514_v18  ;;  %v2515_v5 = vpack.c.bf16 %v1588_v2, %v1588_v2 }
 0x1ac   : > { %v2532_v25 = vunpack.c.l.b16 %v2511_v63  ;;  %v2541_v9 = vperm.slane %v2531_v26, %v4759_v62  ;;  %788 = vmatpush.bf16.msra.mxu1 %v3573_v24 }
 0x1ad   : > { %v2462_v0 = vadd.f32 %v2461_v27, %v2460_v37  ;;  %v2534_v27 = vunpack.c.l.b16 %v2513_v4  ;;  %v2518_v37 = vld [vmem:[%s5052_s5] sm:$0x3] }
 0x1ae   : > { %v2098_v51 = vld.sshfl [vmem:[#allocation1] sm:$0xff pattern:$0x75316420]  ;;  %v2099_v29 = vld.sshfl [vmem:[#allocation1 + $0x8] sm:$0xff pattern:$0x75316420] }
 0x1af   : > { %v2464_v7 = vadd.f32 %v2463_v46, %v2462_v0  ;;  %v2100_v34 = vld.sshfl [vmem:[#allocation1 + $0x10] sm:$0xff pattern:$0x75316420]  ;;  %v2101_v40 = vld.sshfl [vmem:[#allocation1 + $0x18] sm:$0xff pattern:$0x75316420] }
 0x1b0   : > { %v2102_v11 = vld.sshfl [vmem:[#allocation1 + $0x20] sm:$0xff pattern:$0x75316420]  ;;  %v2103_v19 = vld.sshfl [vmem:[#allocation1 + $0x28] sm:$0xff pattern:$0x75316420]  ;;  %v1621_v39 = vpop.xlane.xlu0 %1620  ;;  %v1654_v58 = vpop.xlane.xlu1 %1653 }
 0x1b1   : > { %v2466_v14 = vadd.f32 %v2465_v53, %v2464_v7  ;;  %2106 = vst [vmem:[#allocation1] ss:$2 sm:$0xff] %v1855_v30  ;;  %v2477_v33 = vsel %vm923_vm0, %v2098_v51, 0.0  ;;  %v2478_v57 = vsel %vm923_vm0, %v2099_v29, 0.0  ;;  %v2480_v20 = vsel %vm923_vm0, %v2100_v34, 0.0  ;;  %v3572_v0 = vld [vmem:[%s5055_s8 + $0x20] sm:$0xff]  ;;  %v4773_v30 = vpop.f32.mrf.mxu0  ;;  %v2278_v24 = vpop.xlane.xlu2 %2277 }
 0x1b2   : > { %v2104_v15 = vld.sshfl [vmem:[#allocation1 + $0x30] sm:$0xff pattern:$0x75316420]  ;;  %2107 = vst [vmem:[#allocation1 + $0x10] ss:$2 sm:$0xff] %v1856_v6  ;;  %v2479_v21 = vadd.f32 %v2478_v57, %v2477_v33  ;;  %v2482_v49 = vsel %vm923_vm0, %v2101_v40, 0.0  ;;  %v2543_v6 = vperm.slane %v2533_v31, %v4759_v62  ;;  %v2542_v29 = vperm.slane %v2532_v25, %v4759_v62  ;;  %789 = vmatpush.bf16.msra.mxu1 %v3572_v0 }
 0x1b3   : > { %v2468_v47 = vadd.f32 %v2467_v32, %v2466_v14  ;;  %v2105_v55 = vld.sshfl [vmem:[#allocation1 + $0x38] sm:$0xff pattern:$0x75316420]  ;;  %2108 = vst [vmem:[#allocation1 + $0x20] ss:$2 sm:$0xff] %v1857_v12  ;;  %v2484_v16 = vsel %vm923_vm0, %v2102_v11, 0.0  ;;  %v2544_v34 = vperm.slane %v2534_v27, %v4759_v62  ;;  %v2545_v32 = vperm.slane %v2535_v1, %v4759_v62 }
 0x1b4   : > { %2109 = vst [vmem:[#allocation1 + $0x30] ss:$2 sm:$0xff] %v1858_v13  ;;  %v2481_v35 = vadd.f32 %v2480_v20, %v2479_v21  ;;  %v2486_v59 = vsel %vm923_vm0, %v2103_v19, 0.0  ;;  %v2488_v48 = vsel %vm923_vm0, %v2104_v15, 0.0  ;;  %v2490_v23 = vsel %vm923_vm0, %v2105_v55, 0.0  ;;  %v3569_v31 = vld [vmem:[%s5055_s8 + $0x8] sm:$0xff] }
 0x1b5   : > { %v2470_v50 = vadd.f32 %v2469_v10, %v2468_v47  ;;  %v2536_v10 = vunpack.c.l.b16 %v2515_v5  ;;  %v2570_v40 = vsel %vm2568_vm2, %v2518_v37, 0  ;;  %v2550_v19 = vsel %vm2549_vm1, %v2542_v29, %v2541_v9  ;;  %v3568_v5 = vld [vmem:[%s5055_s8] sm:$0xff] }
 0x1b6   : > { %v2483_v41 = vadd.f32 %v2482_v49, %v2481_v35  ;;  %2579 = vmatpush.bf16.msra.mxu2 %v2570_v40  ;;  %v2516_v57 = vpack.c.bf16 %v1621_v39, %v1621_v39  ;;  %v2517_v20 = vpack.c.bf16 %v1654_v58, %v1654_v58  ;;  %790 = vmatpush.bf16.msra.mxu1 %v3571_v8  ;;  %v3582_v39 = vld [vmem:[%s5056_s9 + $0x30] sm:$0xff]  ;;  %v3581_v58 = vld [vmem:[%s5056_s9 + $0x28] sm:$0xff]  ;;  %v3580_v8 = vld [vmem:[%s5056_s9 + $0x20] sm:$0xff] }
 0x1b7   : > { %v2472_v36 = vadd.f32 %v2471_v45, %v2470_v50  ;;  %v2552_v45 = vsel %vm2551_vm3, %v2543_v6, %v2550_v19  ;;  %v2546_v33 = vperm.slane %v2536_v10, %v4759_v62 }
 0x1b8   : > { %v2485_v61 = vadd.f32 %v2484_v16, %v2483_v41  ;;  %v2110_v52 = vld.sshfl [vmem:[#allocation1] sm:$0xff pattern:$0x75316420]  ;;  %v2111_v42 = vld.sshfl [vmem:[#allocation1 + $0x8] sm:$0xff pattern:$0x75316420]  ;;  %v2554_v21 = vsel %vm2553_vm4, %v2544_v34, %v2552_v45  ;;  %v2537_v49 = vunpack.c.l.b16 %v2516_v57  ;;  %v2538_v50 = vunpack.c.l.b16 %v2517_v20 }
 0x1b9   : > { %v2474_v22 = vadd.f32 %v2473_v60, %v2472_v36  ;;  %v2112_v53 = vld.sshfl [vmem:[#allocation1 + $0x10] sm:$0xff pattern:$0x75316420]  ;;  %v2492_v51 = vsel %vm923_vm0, %v2110_v52, 0.0  ;;  %v2494_v12 = vsel %vm923_vm0, %v2111_v42, 0.0  ;;  %v2556_v55 = vsel %vm2555_vm5, %v2545_v32, %v2554_v21  ;;  %v714_v60 = vpop.f32.mrf.mxu0 }
 0x1ba   : > { %v2487_v38 = vadd.f32 %v2486_v59, %v2485_v61  ;;  %v2113_v13 = vld.sshfl [vmem:[#allocation1 + $0x18] sm:$0xff pattern:$0x75316420]  ;;  %v2496_v11 = vsel %vm923_vm0, %v2112_v53, 0.0  ;;  %v2558_v17 = vsel %vm2557_vm6, %v2546_v33, %v2556_v55  ;;  %v2547_v3 = vperm.slane %v2537_v49, %v4759_v62  ;;  %v3570_v36 = vld [vmem:[%s5055_s8 + $0x10] sm:$0xff] }
 0x1bb   : > { %2475 = vadd.xlane.f32.xlu2 %v2474_v22  ;;  %v2114_v47 = vld.sshfl [vmem:[#allocation1 + $0x20] sm:$0xff pattern:$0x75316420]  ;;  %v2498_v44 = vsel %vm923_vm0, %v2113_v13, 0.0  ;;  %v2548_v43 = vperm.slane %v2538_v50, %v4759_v62  ;;  %791 = vmatpush.bf16.msra.mxu1 %v3570_v36  ;;  %v3591_v33 = vld [vmem:[%s5111_s17 + $0x38] sm:$0xff] }
 0x1bc   : > { %v2489_v46 = vadd.f32 %v2488_v48, %v2487_v38  ;;  %v2115_v35 = vld.sshfl [vmem:[#allocation1 + $0x28] sm:$0xff pattern:$0x75316420]  ;;  %v2500_v16 = vsel %vm923_vm0, %v2114_v47, 0.0  ;;  %v2560_v22 = vsel %vm2559_vm7, %v2547_v3, %v2558_v17  ;;  %v2585_v38 = vpack.c.bf16 %v2278_v24, %v2278_v24  ;;  %2731 = vmatpush.bf16.msrb.mxu2 %v3591_v33  ;;  %v3587_v24 = vld [vmem:[%s5111_s17 + $0x18] sm:$0xff] }
 0x1bd   : > { %v2116_v41 = vld.sshfl [vmem:[#allocation1 + $0x30] sm:$0xff pattern:$0x75316420]  ;;  %v2502_v18 = vsel %vm923_vm0, %v2115_v35, 0.0  ;;  %v2562_v28 = vsel %vm2561_vm8, %v2548_v43, %v2560_v22  ;;  %v3577_v3 = vld [vmem:[%s5056_s9 + $0x8] sm:$0xff] }
 0x1be   : > { %v2491_v7 = vadd.f32 %v2490_v23, %v2489_v46  ;;  %v2117_v61 = vld.sshfl [vmem:[#allocation1 + $0x38] sm:$0xff pattern:$0x75316420]  ;;  %v2504_v54 = vsel %vm923_vm0, %v2116_v41, 0.0  ;;  %v2563_v48 = vpack.c.b16 %v2562_v28, %v2562_v28  ;;  %v2606_v25 = vunpack.c.l.b16 %v2585_v38  ;;  %v3578_v35 = vld [vmem:[%s5056_s9 + $0x10] sm:$0xff] }
 0x1bf   : > { %v2506_v4 = vsel %vm923_vm0, %v2117_v61, 0.0  ;;  %792 = vmatpush.bf16.msra.mxu1 %v3569_v31  ;;  %v3590_v61 = vld [vmem:[%s5111_s17 + $0x30] sm:$0xff]  ;;  %v3671_v31 = vld [vmem:[%s5063_s16 + $0x2] ss:$0 sm:$0xff] }
 0x1c0   : > { %v2493_v14 = vadd.f32 %v2492_v51, %v2491_v7  ;;  %3386 = vmatmul.msk.bf16.vlgmr.msra.gmra.mxu2 %vm2564_vm9, %v2563_v48  ;;  %v2311_v52 = vpop.xlane.xlu0 %2310  ;;  %v2614_v37 = vperm.slane %v2606_v25, %v4759_v62  ;;  %v3670_v7 = vld [vmem:[%s5063_s16] ss:$0 sm:$0xff]  ;;  %v3586_v38 = vld [vmem:[%s5111_s17 + $0x10] sm:$0xff] }
 0x1c1   : > { %v2586_v23 = vpack.c.bf16 %v2311_v52, %v2311_v52  ;;  %v713_v29 = vadd.f32 %v3670_v7, %v4773_v30  ;;  %v3583_v30 = vld [vmem:[%s5056_s9 + $0x38] sm:$0xff]  ;;  %2732 = vmatpush.bf16.msrb.mxu2 %v3590_v61 }
 0x1c2   : > { %v2495_v15 = vadd.f32 %v2494_v12, %v2493_v14  ;;  %2792 = vmatpush.bf16.msra.mxu3 %v3583_v30 }
 0x1c3   : > { %v2607_v27 = vunpack.c.l.b16 %v2586_v23  ;;  %793 = vmatpush.bf16.msra.mxu1 %v3568_v5  ;;  %v716_v34 = vmax.f32 %v713_v29, 0.0  ;;  %v3585_v23 = vld [vmem:[%s5111_s17 + $0x8] sm:$0xff]  ;;  %v3595_v5 = vld [vmem:[%s5112_s13 + $0x18] sm:$0xff]  ;;  %v3592_v29 = vld [vmem:[%s5112_s13] sm:$0xff] }
 0x1c4   : > { %v2497_v56 = vadd.f32 %v2496_v11, %v2495_v15  ;;  %v2593_v11 = vld [vmem:[%s5053_s6] sm:$0x3]  ;;  %2855 = vmatpush.bf16.msrb.mxu0 %v3595_v5 }
 0x1c5   : > { %v2615_v42 = vperm.slane %v2607_v27, %v4759_v62  ;;  %v717_v12 = vpack.c.bf16 %v716_v34, %v716_v34  ;;  %v2634_v19 = vsel %vm2568_vm2, %v2593_v11, 0  ;;  %v3584_v27 = vld [vmem:[%s5111_s17] sm:$0xff] }
 0x1c6   : > { %v2499_v59 = vadd.f32 %v2498_v44, %v2497_v56  ;;  %2793 = vmatpush.bf16.msra.mxu3 %v3582_v39  ;;  %v3579_v44 = vld [vmem:[%s5056_s9 + $0x18] sm:$0xff]  ;;  %v3674_v34 = vld [vmem:[%s5063_s16 + $0x4] ss:$0 sm:$0xff]  ;;  %v3675_v11 = vld [vmem:[%s5063_s16 + $0x5] ss:$0 sm:$0xff] }
 0x1c7   : > { %v2622_v53 = vsel %vm2549_vm1, %v2615_v42, %v2614_v37  ;;  %794 = vmatmul.bf16.vlgmr.msra.gmra.mxu1 %v717_v12  ;;  %v3594_v37 = vld [vmem:[%s5112_s13 + $0x10] sm:$0xff]  ;;  %v3593_v42 = vld [vmem:[%s5112_s13 + $0x8] sm:$0xff]  ;;  %v3608_v5 = vld [vmem:[%s5116_s15 + $0x20] sm:$0xff] }
 0x1c8   : > { %v2501_v26 = vadd.f32 %v2500_v16, %v2499_v59  ;;  %2643 = vmatpush.bf16.msrb.mxu1 %v2634_v19  ;;  %2856 = vmatpush.bf16.msrb.mxu0 %v3594_v37  ;;  %v3607_v37 = vld [vmem:[%s5116_s15 + $0x18] sm:$0xff] }
 0x1ca   : > { %v2503_v63 = vadd.f32 %v2502_v18, %v2501_v26  ;;  %2794 = vmatpush.bf16.msra.mxu3 %v3581_v58  ;;  %v3576_v18 = vld [vmem:[%s5056_s9] sm:$0xff] }
 0x1cc   : > { %v2505_v2 = vadd.f32 %v2504_v54, %v2503_v63  ;;  %v3589_v54 = vld [vmem:[%s5111_s17 + $0x28] sm:$0xff]  ;;  %2857 = vmatpush.bf16.msrb.mxu0 %v3593_v42  ;;  %v3606_v42 = vld [vmem:[%s5116_s15 + $0x10] sm:$0xff] }
 0x1cd   : > { %2733 = vmatpush.bf16.msrb.mxu2 %v3589_v54 }
 0x1ce   : > { %v2507_v1 = vadd.f32 %v2506_v4, %v2505_v2  ;;  %2795 = vmatpush.bf16.msra.mxu3 %v3580_v8  ;;  %v3588_v4 = vld [vmem:[%s5111_s17 + $0x20] sm:$0xff] }
 0x1d0   : > { %2508 = vadd.xlane.f32.xlu0 %v2507_v1  ;;  %2858 = vmatpush.bf16.msrb.mxu0 %v3592_v29 }
 0x1d1   : > { %2734 = vmatpush.bf16.msrb.mxu2 %v3588_v4 }
 0x1d2   : > { %2796 = vmatpush.bf16.msra.mxu3 %v3579_v44 }
 0x1d5   : > { %2735 = vmatpush.bf16.msrb.mxu2 %v3587_v24  ;;  %v3677_v24 = vld [vmem:[%s5063_s16 + $0x7] ss:$0 sm:$0xff] }
 0x1d6   : > { %v2344_v46 = vpop.xlane.xlu1 %2343  ;;  %2797 = vmatpush.bf16.msra.mxu3 %v3578_v35 }
 0x1d7   : > { %v2587_v9 = vpack.c.bf16 %v2344_v46, %v2344_v46  ;;  %v3673_v46 = vld [vmem:[%s5063_s16 + $0x3] ss:$0 sm:$0xff] }
 0x1d9   : > { %v2608_v0 = vunpack.c.l.b16 %v2587_v9  ;;  %2736 = vmatpush.bf16.msrb.mxu2 %v3586_v38 }
 0x1da   : > { %2798 = vmatpush.bf16.msra.mxu3 %v3577_v3  ;;  %v3598_v3 = vld [vmem:[%s5115_s1 + $0x10] sm:$0xff] }
 0x1db   : > { %v2616_v51 = vperm.slane %v2608_v0, %v4759_v62 }
 0x1dd   : > { %v2623_v6 = vsel %vm2551_vm3, %v2616_v51, %v2622_v53  ;;  %2737 = vmatpush.bf16.msrb.mxu2 %v3585_v23 }
 0x1de   : > { %2799 = vmatpush.bf16.msra.mxu3 %v3576_v18 }
 0x1e1   : > { %2738 = vmatpush.bf16.msrb.mxu2 %v3584_v27  ;;  %v3609_v27 = vld [vmem:[%s5116_s15 + $0x28] sm:$0xff] }
 0x1ec   : > { %v2377_v32 = vpop.xlane.xlu2 %2376 }
 0x1ed   : > { %v2588_v10 = vpack.c.bf16 %v2377_v32, %v2377_v32 }
 0x1ef   : > { %v2609_v40 = vunpack.c.l.b16 %v2588_v10 }
 0x1f1   : > { %v2617_v13 = vperm.slane %v2609_v40, %v4759_v62 }
 0x1f3   : > { %v2624_v14 = vsel %vm2553_vm4, %v2617_v13, %v2623_v6 }
 0x202   : > { %v2410_v45 = vpop.xlane.xlu0 %2409 }
 0x203   : > { %v2589_v57 = vpack.c.bf16 %v2410_v45, %v2410_v45 }
 0x205   : > { %v2610_v21 = vunpack.c.l.b16 %v2589_v57  ;;  %v3826_v57 = vmov 64.0  }
 0x206   : > { %3684 = vrcp.f32 %v3826_v57  ;;  %v3680_v57 = vld [vmem:[%s5063_s16 + $0xa] ss:$0 sm:$0xff] }
 0x207   : > { %v2618_v50 = vperm.slane %v2610_v21, %v4759_v62 }
 0x209   : > { %v2625_v60 = vsel %vm2555_vm5, %v2618_v50, %v2624_v14  ;;  %v3672_v14 = vld [vmem:[%s5063_s16 + $0x1] ss:$0 sm:$0xff] }
 0x218   : > { %v2443_v20 = vpop.xlane.xlu1 %2442 }
 0x219   : > { %v2590_v47 = vpack.c.bf16 %v2443_v20, %v2443_v20  ;;  %v3685_v20 = vpop.eup %3684 }
 0x21a   : > { %v2871_v8 = vmul.f32 64.0, %v3685_v20  ;;  %vm2875_vm11 = vweird.f32 %v3685_v20 }
 0x21b   : > { %v2611_v49 = vunpack.c.l.b16 %v2590_v47 }
 0x21c   : > { %v2872_v47 = vsub.f32 1.0, %v2871_v8 }
 0x21d   : > { %v2619_v17 = vperm.slane %v2611_v49, %v4759_v62 }
 0x21f   : > { %v2626_v41 = vsel %vm2557_vm6, %v2619_v17, %v2625_v60  ;;  %v3603_v17 = vld [vmem:[%s5113_s26 + $0x18] sm:$0xff]  ;;  %s3200_s26 = sshll.u32 %s3196_s23, 4  ;;  %s3201_s26 = int_to_ptr.hbm [resolvable:$true] %s3200_s26 }
 0x220   : > { %v3599_v60 = vld [vmem:[%s5115_s1 + $0x18] sm:$0xff]  ;;  %2997 = vmatpush.bf16.msra.mxu2 %v3603_v17  ;;  %s3766_s28 = sshra.s32 %s3201_s26, 4  ;;  %s3767_s28 = int_to_ptr.hbm [resolvable:$true] %s3766_s28 }
 0x221   : > { %2948 = vmatpush.bf16.msra.mxu1 %v3599_v60  ;;  %v3615_v17 = vld [vmem:[%s5117_s21 + $0x18] sm:$0xff]  ;;  %v3613_v60 = vld [vmem:[%s5117_s21 + $0x8] sm:$0xff]  ;;  %s3768_s2 = scalar_lea.hbm %s3767_s28, 8  ;;  %p3773_p2 = scmp.lt.s32.totalorder %s3767_s28, %s5118_s14 }
 0x222   : > { %3175 = vmatpush.bf16.msra.mxu0 %v3615_v17  ;;  %p3769_p13 = scmp.ne.s32.totalorder %s3767_s28, %s3768_s2  ;;  %p3774_p9 = scmp.lt.s32.totalorder %s3772_s19, %s3768_s2 }
 0x224   : > { %p3770_p3 = pnand %p3769_p13, %p3967_p11  ;;  %p3775_p0 = por %p3774_p9, %p3773_p2 }
 0x225   : > { %2949 = vmatpush.bf16.msra.mxu1 %v3598_v3 }
 0x226   : > { %p3771_p10 = pneg %p3770_p3 }
 0x228   : > { %p3776_p1 = pnand %p3775_p0, %p3771_p10 }
 0x22e   : > { %v2476_v15 = vpop.xlane.xlu2 %2475 }
 0x22f   : > { %v2591_v55 = vpack.c.bf16 %v2476_v15, %v2476_v15  ;;  %v2873_v15 = vmul.f32 %v3685_v20, %v2872_v47 }
 0x231   : > { %v2612_v56 = vunpack.c.l.b16 %v2591_v55  ;;  %v2874_v21 = vadd.f32 %v3685_v20, %v2873_v15 }
 0x233   : > { %v2620_v36 = vperm.slane %v2612_v56, %v4759_v62  ;;  %v4915_v44 = vsel %vm2875_vm11, %v3685_v20, %v2874_v21 }
 0x235   : > { %v2627_v26 = vsel %vm2559_vm7, %v2620_v36, %v2626_v41  ;;  %v3597_v36 = vld [vmem:[%s5115_s1 + $0x8] sm:$0xff]  ;;  %v3600_v41 = vld [vmem:[%s5114_s30] sm:$0xff] }
 0x236   : > { %2950 = vmatpush.bf16.msra.mxu1 %v3597_v36 }
 0x243   : > { %v2509_v16 = vpop.xlane.xlu0 %2508 }
 0x244   : > { %v2592_v43 = vpack.c.bf16 %v2509_v16, %v2509_v16  ;;  %v795_v1 = vpop.f32.mrf.mxu1  ;;  %v3602_v16 = vld [vmem:[%s5114_s30 + $0x10] sm:$0xff] }
 0x245   : > { %v796_v30 = vadd.f32 %v3672_v14, %v795_v1  ;;  %2998 = vmatpush.bf16.msra.mxu2 %v3602_v16  ;;  %v3611_v1 = vld [vmem:[%s5116_s15 + $0x38] sm:$0xff]  ;;  %v3678_v14 = vld [vmem:[%s5063_s16 + $0x8] ss:$0 sm:$0xff]  ;;  %v3612_v16 = vld [vmem:[%s5117_s21] sm:$0xff] }
 0x246   : > { %v2613_v59 = vunpack.c.l.b16 %v2592_v43  ;;  %v3601_v43 = vld [vmem:[%s5114_s30 + $0x8] sm:$0xff]  ;;  %3085 = vmatpush.bf16.msrb.mxu3 %v3611_v1 }
 0x248   : > { %v2621_v22 = vperm.slane %v2613_v59, %v4759_v62  ;;  %v2581_v62 = vpop.f32.mrf.mxu2  ;;  %v3596_v59 = vld [vmem:[%s5115_s1] sm:$0xff]  ;;  %s3186_s1 = scalar_lea.sflag [#allocation4], %s4039_s0 }
 0x249   : > { %v2582_v63 = vadd.f32 %v3671_v31, %v2581_v62  ;;  %2999 = vmatpush.bf16.msra.mxu2 %v3601_v43  ;;  %2951 = vmatpush.bf16.msra.mxu1 %v3596_v59 }
 0x24a   : > { %v2628_v28 = vsel %vm2561_vm8, %v2621_v22, %v2627_v26 }
 0x24b   : > { %v2629_v48 = vpack.c.b16 %v2628_v28, %v2628_v28  ;;  %v2649_v2 = vpack.c.bf16 %v2582_v63, %v2582_v63  ;;  %v3676_v63 = vld [vmem:[%s5063_s16 + $0x6] ss:$0 sm:$0xff] }
 0x24c   : > { %v797_v25 = vpop.f32.mrf.mxu1 }
 0x24d   : > { %3387 = vmatmul.msk.bf16.vlgmr.msrb.gmra.mxu1 %vm2564_vm9, %v2629_v48  ;;  %2800 = vmatmul.bf16.vlgmr.msra.gmra.mxu3 %v2649_v2  ;;  %v3610_v25 = vld [vmem:[%s5116_s15 + $0x30] sm:$0xff] }
 0x24e   : > { %3000 = vmatpush.bf16.msra.mxu2 %v3600_v41  ;;  %3086 = vmatpush.bf16.msrb.mxu3 %v3610_v25 }
 0x250   : > { %v2583_v52 = vpop.f32.mrf.mxu2 }
 0x252   : > { %3087 = vmatpush.bf16.msrb.mxu3 %v3609_v27 }
 0x256   : > { %3088 = vmatpush.bf16.msrb.mxu3 %v3608_v5 }
 0x25a   : > { %3089 = vmatpush.bf16.msrb.mxu3 %v3607_v37 }
 0x25e   : > { %3090 = vmatpush.bf16.msrb.mxu3 %v3606_v42 }
 0x2ca   : > { %v2645_v9 = vpop.f32.mrf.mxu1 }
 0x2cb   : > { %v2646_v0 = vadd.f32 %v3673_v46, %v2645_v9  ;;  %v3605_v46 = vld [vmem:[%s5116_s15 + $0x8] sm:$0xff]  ;;  %v3604_v9 = vld [vmem:[%s5116_s15] sm:$0xff] }
 0x2cc   : > { %3091 = vmatpush.bf16.msrb.mxu3 %v3605_v46 }
 0x2cd   : > { %v2666_v53 = vpack.c.bf16 %v2646_v0, %v2646_v0 }
 0x2cf   : > { %2739 = vmatmul.bf16.vlgmr.msrb.gmra.mxu2 %v2666_v53  ;;  %v3679_v53 = vld [vmem:[%s5063_s16 + $0x9] ss:$0 sm:$0xff] }
 0x2d0   : > { %v2801_v6 = vpop.f32.mrf.mxu3  ;;  %3092 = vmatpush.bf16.msrb.mxu3 %v3604_v9 }
 0x2d2   : > { %v2647_v51 = vpop.f32.mrf.mxu1 }
 0x2d8   : > { %v2803_v7 = vpop.f32.mrf.mxu3 }
 0x352   : > { %v2740_v12 = vpop.f32.mrf.mxu2 }
 0x353   : > { %v2802_v32 = vadd.f32 %v2801_v6, %v2740_v12 }
 0x355   : > { %v2809_v10 = vadd.f32 %v3674_v34, %v2802_v32 }
 0x357   : > { %v2810_v40 = vpack.c.bf16 %v2809_v10, %v2809_v10 }
 0x359   : > { %3468 = vmatmul.msk.bf16.vlgmr.msrb.gmra.mxu0 %vm2847_vm10, %v2810_v40 }
 0x35a   : > { %v2742_v13 = vpop.f32.mrf.mxu2 }
 0x3d6   : > { %v2860_v19 = vpop.f32.mrf.mxu0 }
 0x3d7   : > { %v2861_v39 = vadd.f32 %v3675_v11, %v2860_v19 }
 0x3d9   : > { %v4911_v58 = vadd.f32 %v2861_v39, %v796_v30 }
 0x3db   : > { %v2867_v45 = vsel %vm2847_vm10, %v4911_v58, 0.0 }
 0x3dc   : > { %2868 = vadd.xlane.f32.xlu1 %v2867_v45 }
 0x3de   : > { %v2862_v33 = vpop.f32.mrf.mxu0 }
 0x44f   : > { %v2869_v55 = vpop.xlane.xlu1 %2868 }
 0x450   : > { %v2877_v49 = vmul.f32 %v4915_v44, %v2869_v55 }
 0x452   : > { %v2878_v50 = vsub.f32 %v4911_v58, %v2877_v49 }
 0x454   : > { %v2879_v35 = vmul.f32 %v2878_v50, %v2878_v50 }
 0x456   : > { %v2880_v56 = vsel %vm2847_vm10, %v2879_v35, 0.0 }
 0x457   : > { %2881 = vadd.xlane.f32.xlu2 %v2880_v56 }
 0x4ca   : > { %v2882_v18 = vpop.xlane.xlu2 %2881 }
 0x4cb   : > { %v2883_v22 = vmul.f32 %v2882_v18, %v4915_v44 }
 0x4cd   : > { %v2884_v61 = vadd.f32 1e-05, %v2883_v22 }
 0x4cf   : > { %3686 = vrsqrt.f32 %v2884_v61  ;;  %vm2891_vm13 = vweird.f32 %v2884_v61 }
 0x4d5   : > { %v3687_v26 = vpop.eup %3686 }
 0x4d6   : > { %v2886_v28 = vmul.f32 %v3687_v26, %v2884_v61  ;;  %vm2892_vm12 = vweird.f32 %v3687_v26 }
 0x4d7   : > { %vm2893_vm14 = vmor %vm2891_vm13, %vm2892_vm12 }
 0x4d8   : > { %v2887_v54 = vmul.f32 %v3687_v26, %v2886_v28  ;;  %v3681_v28 = vld [vmem:[%s5063_s16 + $0xb] ss:$0 sm:$0xff] }
 0x4da   : > { %v2888_v48 = vmul.f32 0.5, %v2887_v54 }
 0x4dc   : > { %v2889_v31 = vsub.f32 1.5, %v2888_v48 }
 0x4de   : > { %v2890_v62 = vmul.f32 %v3687_v26, %v2889_v31 }
 0x4e0   : > { %v2894_v4 = vsel %vm2893_vm14, %v3687_v26, %v2890_v62 }
 0x4e1   : > { %v2895_v2 = vmul.f32 %v2894_v4, %v2878_v50  ;;  %v3683_v4 = vld [vmem:[%s5063_s16 + $0xd] ss:$0 sm:$0xff] }
 0x4e3   : > { %v2899_v52 = vmul.f32 %v3676_v63, %v2895_v2 }
 0x4e5   : > { %v2903_v38 = vadd.f32 %v3677_v24, %v2899_v52 }
 0x4e7   : > { %v2904_v23 = vpack.c.bf16 %v2903_v38, %v2903_v38 }
 0x4e9   : > { %3485 = vmatmul.msk.bf16.vlgmr.msra.gmra.mxu1 %vm2847_vm10, %v2904_v23  ;;  %3502 = vmatmul.msk.bf16.vlgmr.msra.gmra.mxu2 %vm2847_vm10, %v2904_v23 }
 0x566   : > { %v2953_v0 = vpop.f32.mrf.mxu1 }
 0x567   : > { %v2954_v30 = vadd.f32 %v3678_v14, %v2953_v0 }
 0x56c   : > { %v3002_v51 = vpop.f32.mrf.mxu2 }
 0x56d   : > { %v3003_v6 = vadd.f32 %v3679_v53, %v3002_v51 }
 0x56e   : > { %v2955_v7 = vpop.f32.mrf.mxu1 }
 0x56f   : > { %v3006_v29 = vmul.f32 %v3003_v6, %v3003_v6 }
 0x571   : > { %v3007_v34 = vmul.f32 %v3006_v29, %v3003_v6 }
 0x573   : > { %v3008_v12 = vmul.f32 0.044715, %v3007_v34 }
 0x574   : > { %v3004_v32 = vpop.f32.mrf.mxu2 }
 0x575   : > { %v3009_v10 = vadd.f32 %v3008_v12, %v3003_v6 }
 0x577   : > { %v3010_v40 = vmul.f32 0.7978846, %v3009_v10 }
 0x579   : > { %3688 = vtanh.f32 %v3010_v40 }
 0x57f   : > { %v3689_v13 = vpop.eup %3688 }
 0x580   : > { %v3012_v11 = vadd.f32 1.0, %v3689_v13 }
 0x582   : > { %v3013_v19 = vmul.f32 0.5, %v3012_v11 }
 0x584   : > { %v3014_v39 = vmul.f32 %v3013_v19, %v3003_v6 }
 0x586   : > { %v3015_v45 = vmul.f32 %v3014_v39, %v2954_v30 }
 0x588   : > { %v3016_v33 = vpack.c.bf16 %v3015_v45, %v3015_v45 }
 0x58a   : > { %3093 = vmatmul.bf16.vlgmr.msrb.gmra.mxu3 %v3016_v33 }
 0x60d   : > { %v3094_v20 = vpop.f32.mrf.mxu3 }
 0x60e   : > { %v3095_v8 = vadd.f32 %v3680_v57, %v3094_v20 }
 0x610   : > { %v3098_v47 = vadd.f32 %v3095_v8, %v4911_v58  ;;  %v3614_v58 = vld [vmem:[%s5117_s21 + $0x10] sm:$0xff] }
 0x611   : > { %3176 = vmatpush.bf16.msra.mxu0 %v3614_v58 }
 0x612   : > { %v3101_v15 = vsel %vm2847_vm10, %v3098_v47, 0.0 }
 0x613   : > { %3102 = vadd.xlane.f32.xlu0 %v3101_v15 }
 0x615   : > { %v3096_v21 = vpop.f32.mrf.mxu3  ;;  %3177 = vmatpush.bf16.msra.mxu0 %v3613_v60 }
 0x619   : > { %3178 = vmatpush.bf16.msra.mxu0 %v3612_v16 }
 0x686   : > { %v3103_v55 = vpop.xlane.xlu0 %3102 }
 0x687   : > { %v3104_v49 = vmul.f32 %v3103_v55, %v4915_v44 }
 0x689   : > { %v3105_v50 = vsub.f32 %v3098_v47, %v3104_v49 }
 0x68b   : > { %v3106_v35 = vmul.f32 %v3105_v50, %v3105_v50 }
 0x68d   : > { %v3107_v56 = vsel %vm2847_vm10, %v3106_v35, 0.0 }
 0x68e   : > { %3108 = vadd.xlane.f32.xlu1 %v3107_v56 }
 0x701   : > { %v3109_v3 = vpop.xlane.xlu1 %3108 }
 0x702   : > { %v3110_v43 = vmul.f32 %v3109_v3, %v4915_v44  ;;  %v3682_v44 = vld [vmem:[%s5063_s16 + $0xc] ss:$0 sm:$0xff] }
 0x704   : > { %v3111_v36 = vadd.f32 1e-05, %v3110_v43 }
 0x706   : > { %3690 = vrsqrt.f32 %v3111_v36  ;;  %vm3118_vm0 = vweird.f32 %v3111_v36 }
 0x70c   : > { %v3691_v41 = vpop.eup %3690 }
 0x70d   : > { %v3113_v59 = vmul.f32 %v3691_v41, %v3111_v36  ;;  %vm3119_vm15 = vweird.f32 %v3691_v41 }
 0x70e   : > { %vm3120_vm1 = vmor %vm3118_vm0, %vm3119_vm15 }
 0x70f   : > { %v3114_v18 = vmul.f32 %v3691_v41, %v3113_v59 }
 0x711   : > { %v3115_v22 = vmul.f32 0.5, %v3114_v18 }
 0x713   : > { %v3116_v61 = vsub.f32 1.5, %v3115_v22 }
 0x715   : > { %v3117_v26 = vmul.f32 %v3691_v41, %v3116_v61 }
 0x717   : > { %v3121_v54 = vsel %vm3120_vm1, %v3691_v41, %v3117_v26 }
 0x718   : > { %v3122_v48 = vmul.f32 %v3121_v54, %v3105_v50 }
 0x71a   : > { %v3126_v31 = vmul.f32 %v3681_v28, %v3122_v48 }
 0x71c   : > { %v3130_v62 = vadd.f32 %v3682_v44, %v3126_v31 }
 0x71e   : > { %v3131_v63 = vpack.c.bf16 %v3130_v62, %v3130_v62 }
 0x720   : > { %3551 = vmatmul.msk.bf16.vlgmr.msra.gmra.mxu0 %vm2847_vm10, %v3131_v63 }
 0x79d   : > { %v3180_v2 = vpop.f32.mrf.mxu0 }
 0x79e   : > { %v3181_v24 = vadd.f32 %v3683_v4, %v3180_v2 }
 0x7a0   : > { %3184 = vst [vmem:[%s625_s29] sm:$0xff] %v3181_v24 }
 0x7a1   : > { %3779 = shalt.err (!%p3776_p1)
}
 0x7a2   : > { %3620 = dma.vmem_to_hbm [thread:$0]  (%p3967_p11), %s3199_s12, 128, %s3201_s26, %s3186_s1  }
 0x7a5   : > { %v3182_v52 = vpop.f32.mrf.mxu0 }
 0x7a6 PF: > { %s5120_s0 = sld [smem:[#allocation11_spill]]  ;;  %p5122_p4 = scmp.ge.s32.totalorder %s3822_s27, 2 }
 0x7a8   : > { %p3630_p7 = pnand %p5122_p4, %p3971_p12 }
 0x7aa   : > { %p3631_p5 = pneg %p3630_p7 }
 0x7ac   : > { %s3212_s10 = sand.u32 1, %s5120_s0  }
 0x7ad   : > { %s3213_s29 = scalar_lea.sflag [#allocation4], %s3212_s10 }
 0x7ae   : > { %3805 = dma.done.wait (%p3631_p5), %s3213_s29, 128  }
 0x7af   : > { %3807 = vsyncadd (%p3631_p5), %s3213_s29, 4294967168  ;;  %s5123_s27 = sld [smem:[#allocation13_spill]]  ;;  %s5126_s24 = smov %s3814_s25 }
 0x7b0   : > { %s5124_s2 = sld [smem:[#allocation12_spill]] }
 0x7b1   : > { %s5125_s26 = sld [smem:[#allocation14_spill]] }
 0x7b5   : > { %p33_p8 = scmp.ge.s32.totalorder %s5123_s27, 4  }
 0x7b6   : > { %s5127_s25 = smov %s5124_s2 }
 0x7b7   :  { %35 = sbr.rel (!%p33_p8) target bundleno = 18 (0x12), region = 155 }
 0x7bc   :  { %3219 = vsyncpa [#allocation3], 1 }
 0x7bd   :  { %3221 = vsyncpa [#allocation3 + $0x1], 1 }
 0x7be   :  { %3222 = vsyncpa [#allocation6], 1 }
 0x7bf   :  { %3224 = vsyncpa [#allocation6 + $0x1], 1 }
 0x7c0   :  { %3225 = vsyncpa [#allocation4], 1 }
 0x7c1   :  { %3227 = vsyncpa [#allocation4 + $0x1], 1 }

</bundles_post_ra>
